<compile_context>
chip_gen: v7x
topology: tpu7x:2x2x1
jax: 0.10.0
libtpu: 0.0.40
codegen_flags: <defaults>
</compile_context>

<pallas_src>
import jax
import jax.numpy as jnp
from jax import lax
from jax.experimental import pallas as pl
from jax.experimental.pallas import tpu as pltpu

EPS = 1e-5
_COMPILER_PARAMS = pltpu.CompilerParams(
    dimension_semantics=("arbitrary",),
    vmem_limit_bytes=32 * 1024 * 1024,
)


# ----------------------------- fused Pallas kernels ------------------------------

def _make_proj_kernel(count):
    """Linear -> BatchNorm2d(train) -> ReLU, fused.  Output columns ordered (h, w, c)."""
    inv_count = 1.0 / float(count)

    def kernel(z_ref, w_ref, q_ref, gf_ref, bf_ref, o_ref):
        y = jnp.dot(z_ref[...].astype(jnp.bfloat16), w_ref[...],
                    preferred_element_type=jnp.float32)              # (B, hw*hw*C0)
        # two-pass batch statistics (no E[x^2]-mean^2 cancellation); the (N, N) group-sum
        # matrix folds the hw*hw spatial column groups per channel and broadcasts the
        # result back in one MXU op -> no lane slicing / concatenation in the kernel.
        s1 = jnp.sum(y, axis=0, keepdims=True)
        mean = jnp.dot(s1, q_ref[...]) * inv_count                   # per-channel, replicated
        d = y - mean
        var = jnp.dot(jnp.sum(d * d, axis=0, keepdims=True), q_ref[...]) * inv_count
        scale = gf_ref[...] * lax.rsqrt(var + EPS)
        shift = bf_ref[...] - mean * scale
        o_ref[...] = jnp.maximum(y * scale + shift, 0.0)

    return kernel


def fused_project_bn_relu(z, w_cl, q, gamma_full, beta_full, count):
    B, L = z.shape
    N = w_cl.shape[1]
    return pl.pallas_call(
        _make_proj_kernel(count),
        out_shape=jax.ShapeDtypeStruct((B, N), jnp.float32),
        grid=(1,),
        in_specs=[
            pl.BlockSpec((B, L), lambda i: (0, 0)),
            pl.BlockSpec((L, N), lambda i: (0, 0)),
            pl.BlockSpec((N, N), lambda i: (0, 0)),
            pl.BlockSpec((1, N), lambda i: (0, 0)),
            pl.BlockSpec((1, N), lambda i: (0, 0)),
        ],
        out_specs=pl.BlockSpec((B, N), lambda i: (0, 0)),
        compiler_params=_COMPILER_PARAMS,
    )(z.astype(jnp.float32), w_cl, q, gamma_full, beta_full)


def _make_convt_kernel(Mp, Wp2, final_tanh, count=None):
    """ConvTranspose2d(4, stride=2, pad=1) phase-decomposed into 9 shift matmuls, fused
    with BatchNorm+ReLU (intermediate layers) or Tanh (final layer).

    x_ref: (Mp + 2G, Cin) zero-padded pixel grid flattened over (b, ph, pw) plus G = Wp2+1
           guard rows, so every shifted operand is a contiguous row slice.
    o_ref: (Mp, 4*Cp) pixel-shuffled result, columns ordered (r, c, co); rows at pad
           positions hold garbage and are dropped by the caller.
    """
    G = Wp2 + 1
    deltas = [dh * Wp2 + dw for dh in (-1, 0, 1) for dw in (-1, 0, 1)]

    def accumulate(x_ref, w_ref):
        acc = None
        for s, d in enumerate(deltas):
            xs = x_ref[G + d:G + d + Mp, :].astype(jnp.bfloat16)
            term = jnp.dot(xs, w_ref[s], preferred_element_type=jnp.float32)
            acc = term if acc is None else acc + term
        return acc                                                    # (Mp, 4*Cp) f32

    if final_tanh:
        def kernel(x_ref, w_ref, o_ref):
            o_ref[...] = jnp.tanh(accumulate(x_ref, w_ref))
        return kernel

    inv_count = 1.0 / float(count)

    def kernel(x_ref, w_ref, q_ref, gf_ref, bf_ref, m_ref, o_ref):
        acc = accumulate(x_ref, w_ref)
        mask = m_ref[...]                                             # 1.0 at interior rows
        s1 = jnp.sum(acc * mask, axis=0, keepdims=True)
        mean = jnp.dot(s1, q_ref[...]) * inv_count                    # fold 4 parity groups
        d = (acc - mean) * mask
        var = jnp.dot(jnp.sum(d * d, axis=0, keepdims=True), q_ref[...]) * inv_count
        scale = gf_ref[...] * lax.rsqrt(var + EPS)
        shift = bf_ref[...] - mean * scale
        o_ref[...] = jnp.maximum(acc * scale + shift, 0.0)

    return kernel


def fused_convt_layer(x_sp, wphase, cout, q=None, gamma_full=None, beta_full=None,
                      mask=None, final_tanh=False):
    """x_sp: (B, H, W, Cin) channels-last activation -> (B, 2H, 2W, cout)."""
    B, H, W, Cin = x_sp.shape
    Hp2, Wp2 = H + 2, W + 2
    Mp = B * Hp2 * Wp2
    G = Wp2 + 1
    NC = wphase.shape[-1]                 # 4 * Cp, a multiple of 128
    Cp = NC // 4

    # tiny XLA glue in: zero-pad spatially, flatten, add guard rows for the shifted slices
    xpad = jnp.pad(x_sp, ((0, 0), (1, 1), (1, 1), (0, 0)))
    xg = jnp.pad(xpad.reshape(Mp, Cin), ((G, G), (0, 0)))

    kernel = _make_convt_kernel(Mp, Wp2, final_tanh,
                                count=None if final_tanh else 4 * B * H * W)
    x_spec = pl.BlockSpec((Mp + 2 * G, Cin), lambda i: (0, 0))
    w_spec = pl.BlockSpec(wphase.shape, lambda i: (0, 0, 0))
    o_spec = pl.BlockSpec((Mp, NC), lambda i: (0, 0))
    out_shape = jax.ShapeDtypeStruct((Mp, NC), jnp.float32)

    if final_tanh:
        out_ps = pl.pallas_call(
            kernel, out_shape=out_shape, grid=(1,),
            in_specs=[x_spec, w_spec], out_specs=o_spec,
            compiler_params=_COMPILER_PARAMS,
        )(xg, wphase)
    else:
        out_ps = pl.pallas_call(
            kernel, out_shape=out_shape, grid=(1,),
            in_specs=[
                x_spec, w_spec,
                pl.BlockSpec((NC, NC), lambda i: (0, 0)),
                pl.BlockSpec((1, NC), lambda i: (0, 0)),
                pl.BlockSpec((1, NC), lambda i: (0, 0)),
                pl.BlockSpec((Mp, 1), lambda i: (0, 0)),
            ],
            out_specs=o_spec,
            compiler_params=_COMPILER_PARAMS,
        )(xg, wphase, q, gamma_full, beta_full, mask)

    # tiny XLA glue out: drop pad rows / pad channels and un-shuffle the (r, c) parities
    o6 = out_ps.reshape(B, Hp2, Wp2, 2, 2, Cp)[:, 1:H + 1, 1:W + 1, :, :, :cout]
    return o6.transpose(0, 1, 3, 2, 4, 5).reshape(B, 2 * H, 2 * W, cout)


# --------------------------- parameter preparation --------------------------------

def _phase_weights(w, cp):
    """PyTorch ConvTranspose2d weight (Cin, Cout, 4, 4), stride=2, padding=1 ->
    (9, Cin, 4*cp) per-shift phase weights.  Shift (dh, dw) contributes
    w[:, :, r+1-2dh, c+1-2dw] to output parity (r, c); columns ordered (r, c, co),
    co zero-padded to cp so 4*cp is a multiple of 128 (lane-dense stores)."""
    Cin, Cout, KH, KW = w.shape
    mats = []
    for dh in (-1, 0, 1):
        for dw in (-1, 0, 1):
            blocks = []
            for r in (0, 1):
                for c in (0, 1):
                    kh = r + 1 - 2 * dh
                    kw = c + 1 - 2 * dw
                    if 0 <= kh < KH and 0 <= kw < KW:
                        blk = w[:, :, kh, kw]
                    else:
                        blk = jnp.zeros((Cin, Cout), w.dtype)
                    blocks.append(jnp.pad(blk, ((0, 0), (0, cp - Cout))))
            mats.append(jnp.concatenate(blocks, axis=1))              # (Cin, 4*cp)
    return jnp.stack(mats, axis=0)                                    # (9, Cin, 4*cp)


def _group_sum_matrix(groups, C):
    """(groups*C, groups*C): row-vector @ this = per-channel sum over the column groups,
    replicated back into every group (fold + broadcast in one MXU op)."""
    return jnp.tile(jnp.eye(C, dtype=jnp.float32), (groups, groups))


def _interior_mask(B, H, W):
    m = jnp.zeros((B, H + 2, W + 2, 1), jnp.float32)
    m = m.at[:, 1:H + 1, 1:W + 1, :].set(1.0)
    return m.reshape(B * (H + 2) * (W + 2), 1)


# ------------------------------- Generator ----------------------------------

class Generator:
    def __init__(self, key, latent_dim_size=32, img_size=16, img_channels=3,
                 hidden_channels=(8, 16)):
        n_layers = len(hidden_channels)
        assert img_size % (2 ** n_layers) == 0, "activation size must double at each layer"
        hidden_channels = list(hidden_channels)[::-1]        # work backwards from the image
        self.hidden_channels = hidden_channels
        self.n_layers = n_layers
        self.img_channels = img_channels
        self.fc_hw = img_size // 2 ** n_layers
        C0 = hidden_channels[0]
        self.C0 = C0
        fc_out = C0 * self.fc_hw ** 2

        keys = jax.random.split(key, 1 + n_layers)

        # Linear(latent, fc_out, bias=False); columns permuted (c,h,w)->(h,w,c) once so
        # the projection lands channels-last for free.
        sf = 1.0 / latent_dim_size ** 0.5
        self.w_fc = jax.random.uniform(keys[0], (latent_dim_size, fc_out),
                                       jnp.float32, -sf, sf)
        w_fc_cl = (self.w_fc.reshape(latent_dim_size, C0, self.fc_hw, self.fc_hw)
                   .transpose(0, 2, 3, 1).reshape(latent_dim_size, fc_out))
        self.w_fc_cl = w_fc_cl.astype(jnp.bfloat16)
        self.q_proj = _group_sum_matrix(self.fc_hw ** 2, C0)

        # BatchNorm2d params (PyTorch default init: weight=1, bias=0)
        self.bn_params = [(jnp.ones((C0,), jnp.float32), jnp.zeros((C0,), jnp.float32))]
        self.proj_gamma_full = jnp.tile(self.bn_params[0][0].reshape(1, C0),
                                        (1, self.fc_hw ** 2))
        self.proj_beta_full = jnp.tile(self.bn_params[0][1].reshape(1, C0),
                                       (1, self.fc_hw ** 2))

        in_ch = hidden_channels
        out_ch = hidden_channels[1:] + [img_channels]
        self.conv_weights = []      # natural (Cin, Cout, 4, 4), for the XLA reference
        self.conv_wphase = []       # (9, Cin, 4*Cp) bf16, phase-decomposed
        self.conv_cout = []
        self.conv_q = []
        self.conv_gamma_full = []
        self.conv_beta_full = []
        for i, (ic, oc) in enumerate(zip(in_ch, out_ch)):
            sf = 1.0 / (oc * 4 * 4) ** 0.5
            w = jax.random.uniform(keys[1 + i], (ic, oc, 4, 4), jnp.float32, -sf, sf)
            self.conv_weights.append(w)
            cp = -(-oc // 32) * 32                 # pad Cout so 4*cp is a multiple of 128
            self.conv_cout.append(oc)
            self.conv_wphase.append(_phase_weights(w, cp).astype(jnp.bfloat16))
            if i < n_layers - 1:
                g = jnp.ones((oc,), jnp.float32)
                b = jnp.zeros((oc,), jnp.float32)
                self.bn_params.append((g, b))
                gpad = jnp.concatenate([g, jnp.ones((cp - oc,), jnp.float32)])
                bpad = jnp.concatenate([b, jnp.zeros((cp - oc,), jnp.float32)])
                self.conv_q.append(_group_sum_matrix(4, cp))
                self.conv_gamma_full.append(jnp.tile(gpad.reshape(1, cp), (1, 4)))
                self.conv_beta_full.append(jnp.tile(bpad.reshape(1, cp), (1, 4)))
            else:
                self.conv_q.append(None)
                self.conv_gamma_full.append(None)
                self.conv_beta_full.append(None)

    def __call__(self, z):
        B = z.shape[0]
        hw, C0 = self.fc_hw, self.C0
        x = fused_project_bn_relu(z, self.w_fc_cl, self.q_proj,
                                  self.proj_gamma_full, self.proj_beta_full,
                                  count=B * hw * hw)
        x_sp = x.reshape(B, hw, hw, C0)                       # channels-last
        for i in range(self.n_layers):
            final = i == self.n_layers - 1
            if final:
                x_sp = fused_convt_layer(x_sp, self.conv_wphase[i], self.conv_cout[i],
                                         final_tanh=True)
            else:
                H, W = x_sp.shape[1], x_sp.shape[2]
                x_sp = fused_convt_layer(
                    x_sp, self.conv_wphase[i], self.conv_cout[i],
                    q=self.conv_q[i], gamma_full=self.conv_gamma_full[i],
                    beta_full=self.conv_beta_full[i], mask=_interior_mask(B, H, W))
        return x_sp.transpose(0, 3, 1, 2)                     # final NCHW

    # ---- pure-JAX/XLA reference of the same forward (for self-validation only) ----
    def reference_forward(self, z):
        def bn_relu(x, gamma, beta, eps=EPS):
            mean = jnp.mean(x, axis=(0, 2, 3), keepdims=True)
            var = jnp.mean((x - mean) ** 2, axis=(0, 2, 3), keepdims=True)
            y = ((x - mean) / jnp.sqrt(var + eps) * gamma.reshape(1, -1, 1, 1)
                 + beta.reshape(1, -1, 1, 1))
            return jnp.maximum(y, 0.0)

        def conv_t(x, w, s, p):
            Cin, Cout, KH, KW = w.shape
            w_flip = jnp.flip(w, axis=(2, 3)).transpose(1, 0, 2, 3)
            return jax.lax.conv_general_dilated(
                x, w_flip, window_strides=(1, 1),
                padding=[(KH - 1 - p,) * 2, (KW - 1 - p,) * 2],
                lhs_dilation=(s, s), dimension_numbers=("NCHW", "OIHW", "NCHW"),
                precision=jax.lax.Precision.HIGHEST)

        B = z.shape[0]
        x = (z @ self.w_fc).reshape(B, self.hidden_channels[0], self.fc_hw, self.fc_hw)
        x = bn_relu(x, *self.bn_params[0])
        for i, w in enumerate(self.conv_weights):
            x = conv_t(x, w, 2, 1)
            if i < self.n_layers - 1:
                x = bn_relu(x, *self.bn_params[1 + i])
            else:
                x = jnp.tanh(x)
        return x


# --------------------------------- main --------------------------------------

if __name__ == "__main__":
    key = jax.random.PRNGKey(0)
    k_z, k_params = jax.random.split(key)

    # small shapes: latent=32, img_size=16, channels=3, hidden=[8, 16], batch=2
    gen = Generator(k_params, latent_dim_size=32, img_size=16,
                    img_channels=3, hidden_channels=[8, 16])

    z = jax.random.normal(k_z, (2, 32), jnp.float32)
    fwd = jax.jit(gen.__call__)
    out = jax.block_until_ready(fwd(z))

    assert out.shape == (2, 3, 16, 16), out.shape
    assert bool(jnp.all(jnp.isfinite(out)))
    assert bool(jnp.all(jnp.abs(out) <= 1.0 + 1e-5))          # tanh output range

    # cross-check against an independent XLA reference (bf16 MXU inputs -> loose tol)
    ref = gen.reference_forward(z)
    err = float(jnp.max(jnp.abs(out - ref)))
    assert err < 5e-2, f"max abs diff vs reference: {err}"

    print("KERNEL_OK")
</pallas_src>

<mosaic_0001>
module attributes {stable_mosaic.version = 11 : i64} {
  func.func @kernel(%arg0: i32, %arg1: memref<2x32xf32, #tpu.memory_space<vmem>>, %arg2: memref<32x256xbf16, #tpu.memory_space<vmem>>, %arg3: memref<256x256xf32, #tpu.memory_space<vmem>>, %arg4: memref<1x256xf32, #tpu.memory_space<vmem>>, %arg5: memref<1x256xf32, #tpu.memory_space<vmem>>, %arg6: memref<2x256xf32, #tpu.memory_space<vmem>>) attributes {dimension_semantics = [#tpu.dimension_semantics<arbitrary>], iteration_bounds = array<i64: 1>, scalar_prefetch = 0 : i64, scratch_operands = 0 : i64, tpu.core_type = #tpu.core_type<tc>, window_params = [{pipeline_mode = #tpu.pipeline_mode<synchronous>, transform_indices = @transform_0, window_bounds = array<i64: 2, 32>}, {pipeline_mode = #tpu.pipeline_mode<synchronous>, transform_indices = @transform_1, window_bounds = array<i64: 32, 256>}, {pipeline_mode = #tpu.pipeline_mode<synchronous>, transform_indices = @transform_2, window_bounds = array<i64: 256, 256>}, {pipeline_mode = #tpu.pipeline_mode<synchronous>, transform_indices = @transform_3, window_bounds = array<i64: 1, 256>}, {pipeline_mode = #tpu.pipeline_mode<synchronous>, transform_indices = @transform_4, window_bounds = array<i64: 1, 256>}, {pipeline_mode = #tpu.pipeline_mode<synchronous>, transform_indices = @transform_5, window_bounds = array<i64: 2, 256>}]} {
    %c0 = arith.constant 0 : index
    %c0_0 = arith.constant 0 : index
    %0 = vector.load %arg1[%c0, %c0_0] : memref<2x32xf32, #tpu.memory_space<vmem>>, vector<2x32xf32>
    %1 = arith.truncf %0 : vector<2x32xf32> to vector<2x32xbf16>
    %c0_1 = arith.constant 0 : index
    %c0_2 = arith.constant 0 : index
    %2 = vector.load %arg2[%c0_1, %c0_2] : memref<32x256xbf16, #tpu.memory_space<vmem>>, vector<32x256xbf16>
    %cst = arith.constant dense<0.000000e+00> : vector<2x256xf32>
    %3 = tpu.matmul %1, %2, %cst {dimension_numbers = #tpu.dot_dimension_numbers<[1], [0], [0], [1], [0, 0, 1, 1], [], []>} : vector<2x32xbf16>, vector<32x256xbf16>, vector<2x256xf32> -> vector<2x256xf32>
    %cst_3 = arith.constant dense<0.000000e+00> : vector<256xf32>
    %4 = vector.multi_reduction <add>, %3, %cst_3 [0] : vector<2x256xf32> to vector<256xf32>
    %5 = vector.shape_cast %4 : vector<256xf32> to vector<1x256xf32>
    %c0_4 = arith.constant 0 : index
    %c0_5 = arith.constant 0 : index
    %6 = vector.load %arg3[%c0_4, %c0_5] : memref<256x256xf32, #tpu.memory_space<vmem>>, vector<256x256xf32>
    %cst_6 = arith.constant dense<0.000000e+00> : vector<1x256xf32>
    %7 = tpu.matmul %5, %6, %cst_6 {dimension_numbers = #tpu.dot_dimension_numbers<[1], [0], [0], [1], [0, 0, 1, 1], [], []>} : vector<1x256xf32>, vector<256x256xf32>, vector<1x256xf32> -> vector<1x256xf32>
    %cst_7 = arith.constant 3.125000e-02 : f32
    %8 = vector.broadcast %cst_7 : f32 to vector<1x256xf32>
    %9 = arith.mulf %7, %8 : vector<1x256xf32>
    %10 = vector.broadcast %9 : vector<1x256xf32> to vector<2x256xf32>
    %11 = arith.subf %3, %10 : vector<2x256xf32>
    %12 = arith.mulf %11, %11 : vector<2x256xf32>
    %cst_8 = arith.constant dense<0.000000e+00> : vector<256xf32>
    %13 = vector.multi_reduction <add>, %12, %cst_8 [0] : vector<2x256xf32> to vector<256xf32>
    %14 = vector.shape_cast %13 : vector<256xf32> to vector<1x256xf32>
    %c0_9 = arith.constant 0 : index
    %c0_10 = arith.constant 0 : index
    %15 = vector.load %arg3[%c0_9, %c0_10] : memref<256x256xf32, #tpu.memory_space<vmem>>, vector<256x256xf32>
    %cst_11 = arith.constant dense<0.000000e+00> : vector<1x256xf32>
    %16 = tpu.matmul %14, %15, %cst_11 {dimension_numbers = #tpu.dot_dimension_numbers<[1], [0], [0], [1], [0, 0, 1, 1], [], []>} : vector<1x256xf32>, vector<256x256xf32>, vector<1x256xf32> -> vector<1x256xf32>
    %cst_12 = arith.constant 3.125000e-02 : f32
    %17 = vector.broadcast %cst_12 : f32 to vector<1x256xf32>
    %18 = arith.mulf %16, %17 : vector<1x256xf32>
    %c0_13 = arith.constant 0 : index
    %c0_14 = arith.constant 0 : index
    %19 = vector.load %arg4[%c0_13, %c0_14] : memref<1x256xf32, #tpu.memory_space<vmem>>, vector<1x256xf32>
    %cst_15 = arith.constant 9.99999974E-6 : f32
    %20 = vector.broadcast %cst_15 : f32 to vector<1x256xf32>
    %21 = arith.addf %18, %20 : vector<1x256xf32>
    %22 = math.rsqrt %21 : vector<1x256xf32>
    %23 = arith.mulf %19, %22 : vector<1x256xf32>
    %c0_16 = arith.constant 0 : index
    %c0_17 = arith.constant 0 : index
    %24 = vector.load %arg5[%c0_16, %c0_17] : memref<1x256xf32, #tpu.memory_space<vmem>>, vector<1x256xf32>
    %25 = arith.mulf %9, %23 : vector<1x256xf32>
    %26 = arith.subf %24, %25 : vector<1x256xf32>
    %27 = vector.broadcast %23 : vector<1x256xf32> to vector<2x256xf32>
    %28 = arith.mulf %3, %27 : vector<2x256xf32>
    %29 = vector.broadcast %26 : vector<1x256xf32> to vector<2x256xf32>
    %30 = arith.addf %28, %29 : vector<2x256xf32>
    %cst_18 = arith.constant 0.000000e+00 : f32
    %31 = vector.broadcast %cst_18 : f32 to vector<2x256xf32>
    %32 = arith.maximumf %30, %31 : vector<2x256xf32>
    %c0_19 = arith.constant 0 : index
    %c0_20 = arith.constant 0 : index
    %33 = vector.load %arg6[%c0_19, %c0_20] : memref<2x256xf32, #tpu.memory_space<vmem>>, vector<2x256xf32>
    tpu.vector_store %arg6[%c0_19, %c0_20], %32 {strides = array<i32>} : memref<2x256xf32, #tpu.memory_space<vmem>>, vector<2x256xf32>,
    return
  }
  func.func @transform_0(%arg0: i32) -> (i32, i32) {
    %c0_i32 = arith.constant 0 : i32
    %c0_i32_0 = arith.constant 0 : i32
    %c0_i32_1 = arith.constant 0 : i32
    return %c0_i32, %c0_i32_0 : i32, i32
  }
  func.func @transform_1(%arg0: i32) -> (i32, i32) {
    %c0_i32 = arith.constant 0 : i32
    %c0_i32_0 = arith.constant 0 : i32
    %c0_i32_1 = arith.constant 0 : i32
    return %c0_i32, %c0_i32_0 : i32, i32
  }
  func.func @transform_2(%arg0: i32) -> (i32, i32) {
    %c0_i32 = arith.constant 0 : i32
    %c0_i32_0 = arith.constant 0 : i32
    %c0_i32_1 = arith.constant 0 : i32
    return %c0_i32, %c0_i32_0 : i32, i32
  }
  func.func @transform_3(%arg0: i32) -> (i32, i32) {
    %c0_i32 = arith.constant 0 : i32
    %c0_i32_0 = arith.constant 0 : i32
    %c0_i32_1 = arith.constant 0 : i32
    return %c0_i32, %c0_i32_0 : i32, i32
  }
  func.func @transform_4(%arg0: i32) -> (i32, i32) {
    %c0_i32 = arith.constant 0 : i32
    %c0_i32_0 = arith.constant 0 : i32
    %c0_i32_1 = arith.constant 0 : i32
    return %c0_i32, %c0_i32_0 : i32, i32
  }
  func.func @transform_5(%arg0: i32) -> (i32, i32) {
    %c0_i32 = arith.constant 0 : i32
    %c0_i32_0 = arith.constant 0 : i32
    %c0_i32_1 = arith.constant 0 : i32
    return %c0_i32, %c0_i32_0 : i32, i32
  }
}

module attributes {stable_mosaic.version = 11 : i64} {
  func.func @kernel(%arg0: i32, %arg1: memref<86x16xf32, #tpu.memory_space<vmem>>, %arg2: memref<9x16x128xbf16, #tpu.memory_space<vmem>>, %arg3: memref<128x128xf32, #tpu.memory_space<vmem>>, %arg4: memref<1x128xf32, #tpu.memory_space<vmem>>, %arg5: memref<1x128xf32, #tpu.memory_space<vmem>>, %arg6: memref<72x1xf32, #tpu.memory_space<vmem>>, %arg7: memref<72x128xf32, #tpu.memory_space<vmem>>) attributes {dimension_semantics = [#tpu.dimension_semantics<arbitrary>], iteration_bounds = array<i64: 1>, scalar_prefetch = 0 : i64, scratch_operands = 0 : i64, tpu.core_type = #tpu.core_type<tc>, window_params = [{pipeline_mode = #tpu.pipeline_mode<synchronous>, transform_indices = @transform_0, window_bounds = array<i64: 86, 16>}, {pipeline_mode = #tpu.pipeline_mode<synchronous>, transform_indices = @transform_1, window_bounds = array<i64: 9, 16, 128>}, {pipeline_mode = #tpu.pipeline_mode<synchronous>, transform_indices = @transform_2, window_bounds = array<i64: 128, 128>}, {pipeline_mode = #tpu.pipeline_mode<synchronous>, transform_indices = @transform_3, window_bounds = array<i64: 1, 128>}, {pipeline_mode = #tpu.pipeline_mode<synchronous>, transform_indices = @transform_4, window_bounds = array<i64: 1, 128>}, {pipeline_mode = #tpu.pipeline_mode<synchronous>, transform_indices = @transform_5, window_bounds = array<i64: 72, 1>}, {pipeline_mode = #tpu.pipeline_mode<synchronous>, transform_indices = @transform_6, window_bounds = array<i64: 72, 128>}]} {
    %c0 = arith.constant 0 : index
    %c0_0 = arith.constant 0 : index
    %0 = vector.load %arg1[%c0, %c0_0] : memref<86x16xf32, #tpu.memory_space<vmem>>, vector<72x16xf32>
    %1 = arith.truncf %0 : vector<72x16xf32> to vector<72x16xbf16>
    %c0_1 = arith.constant 0 : index
    %c0_2 = arith.constant 0 : index
    %c0_3 = arith.constant 0 : index
    %2 = vector.load %arg2[%c0_1, %c0_2, %c0_3] : memref<9x16x128xbf16, #tpu.memory_space<vmem>>, vector<1x16x128xbf16>
    %3 = vector.shape_cast %2 : vector<1x16x128xbf16> to vector<16x128xbf16>
    %cst = arith.constant dense<0.000000e+00> : vector<72x128xf32>
    %4 = tpu.matmul %1, %3, %cst {dimension_numbers = #tpu.dot_dimension_numbers<[1], [0], [0], [1], [0, 0, 1, 1], [], []>} : vector<72x16xbf16>, vector<16x128xbf16>, vector<72x128xf32> -> vector<72x128xf32>
    %c1 = arith.constant 1 : index
    %c0_4 = arith.constant 0 : index
    %5 = vector.load %arg1[%c1, %c0_4] : memref<86x16xf32, #tpu.memory_space<vmem>>, vector<72x16xf32>
    %6 = arith.truncf %5 : vector<72x16xf32> to vector<72x16xbf16>
    %c1_5 = arith.constant 1 : index
    %c0_6 = arith.constant 0 : index
    %c0_7 = arith.constant 0 : index
    %7 = vector.load %arg2[%c1_5, %c0_6, %c0_7] : memref<9x16x128xbf16, #tpu.memory_space<vmem>>, vector<1x16x128xbf16>
    %8 = vector.shape_cast %7 : vector<1x16x128xbf16> to vector<16x128xbf16>
    %cst_8 = arith.constant dense<0.000000e+00> : vector<72x128xf32>
    %9 = tpu.matmul %6, %8, %cst_8 {dimension_numbers = #tpu.dot_dimension_numbers<[1], [0], [0], [1], [0, 0, 1, 1], [], []>} : vector<72x16xbf16>, vector<16x128xbf16>, vector<72x128xf32> -> vector<72x128xf32>
    %10 = arith.addf %4, %9 : vector<72x128xf32>
    %c2 = arith.constant 2 : index
    %c0_9 = arith.constant 0 : index
    %11 = vector.load %arg1[%c2, %c0_9] : memref<86x16xf32, #tpu.memory_space<vmem>>, vector<72x16xf32>
    %12 = arith.truncf %11 : vector<72x16xf32> to vector<72x16xbf16>
    %c2_10 = arith.constant 2 : index
    %c0_11 = arith.constant 0 : index
    %c0_12 = arith.constant 0 : index
    %13 = vector.load %arg2[%c2_10, %c0_11, %c0_12] : memref<9x16x128xbf16, #tpu.memory_space<vmem>>, vector<1x16x128xbf16>
    %14 = vector.shape_cast %13 : vector<1x16x128xbf16> to vector<16x128xbf16>
    %cst_13 = arith.constant dense<0.000000e+00> : vector<72x128xf32>
    %15 = tpu.matmul %12, %14, %cst_13 {dimension_numbers = #tpu.dot_dimension_numbers<[1], [0], [0], [1], [0, 0, 1, 1], [], []>} : vector<72x16xbf16>, vector<16x128xbf16>, vector<72x128xf32> -> vector<72x128xf32>
    %16 = arith.addf %10, %15 : vector<72x128xf32>
    %c6 = arith.constant 6 : index
    %c0_14 = arith.constant 0 : index
    %17 = vector.load %arg1[%c6, %c0_14] : memref<86x16xf32, #tpu.memory_space<vmem>>, vector<72x16xf32>
    %18 = arith.truncf %17 : vector<72x16xf32> to vector<72x16xbf16>
    %c3 = arith.constant 3 : index
    %c0_15 = arith.constant 0 : index
    %c0_16 = arith.constant 0 : index
    %19 = vector.load %arg2[%c3, %c0_15, %c0_16] : memref<9x16x128xbf16, #tpu.memory_space<vmem>>, vector<1x16x128xbf16>
    %20 = vector.shape_cast %19 : vector<1x16x128xbf16> to vector<16x128xbf16>
    %cst_17 = arith.constant dense<0.000000e+00> : vector<72x128xf32>
    %21 = tpu.matmul %18, %20, %cst_17 {dimension_numbers = #tpu.dot_dimension_numbers<[1], [0], [0], [1], [0, 0, 1, 1], [], []>} : vector<72x16xbf16>, vector<16x128xbf16>, vector<72x128xf32> -> vector<72x128xf32>
    %22 = arith.addf %16, %21 : vector<72x128xf32>
    %c7 = arith.constant 7 : index
    %c0_18 = arith.constant 0 : index
    %23 = vector.load %arg1[%c7, %c0_18] : memref<86x16xf32, #tpu.memory_space<vmem>>, vector<72x16xf32>
    %24 = arith.truncf %23 : vector<72x16xf32> to vector<72x16xbf16>
    %c4 = arith.constant 4 : index
    %c0_19 = arith.constant 0 : index
    %c0_20 = arith.constant 0 : index
    %25 = vector.load %arg2[%c4, %c0_19, %c0_20] : memref<9x16x128xbf16, #tpu.memory_space<vmem>>, vector<1x16x128xbf16>
    %26 = vector.shape_cast %25 : vector<1x16x128xbf16> to vector<16x128xbf16>
    %cst_21 = arith.constant dense<0.000000e+00> : vector<72x128xf32>
    %27 = tpu.matmul %24, %26, %cst_21 {dimension_numbers = #tpu.dot_dimension_numbers<[1], [0], [0], [1], [0, 0, 1, 1], [], []>} : vector<72x16xbf16>, vector<16x128xbf16>, vector<72x128xf32> -> vector<72x128xf32>
    %28 = arith.addf %22, %27 : vector<72x128xf32>
    %c8 = arith.constant 8 : index
    %c0_22 = arith.constant 0 : index
    %29 = vector.load %arg1[%c8, %c0_22] : memref<86x16xf32, #tpu.memory_space<vmem>>, vector<72x16xf32>
    %30 = arith.truncf %29 : vector<72x16xf32> to vector<72x16xbf16>
    %c5 = arith.constant 5 : index
    %c0_23 = arith.constant 0 : index
    %c0_24 = arith.constant 0 : index
    %31 = vector.load %arg2[%c5, %c0_23, %c0_24] : memref<9x16x128xbf16, #tpu.memory_space<vmem>>, vector<1x16x128xbf16>
    %32 = vector.shape_cast %31 : vector<1x16x128xbf16> to vector<16x128xbf16>
    %cst_25 = arith.constant dense<0.000000e+00> : vector<72x128xf32>
    %33 = tpu.matmul %30, %32, %cst_25 {dimension_numbers = #tpu.dot_dimension_numbers<[1], [0], [0], [1], [0, 0, 1, 1], [], []>} : vector<72x16xbf16>, vector<16x128xbf16>, vector<72x128xf32> -> vector<72x128xf32>
    %34 = arith.addf %28, %33 : vector<72x128xf32>
    %c12 = arith.constant 12 : index
    %c0_26 = arith.constant 0 : index
    %35 = vector.load %arg1[%c12, %c0_26] : memref<86x16xf32, #tpu.memory_space<vmem>>, vector<72x16xf32>
    %36 = arith.truncf %35 : vector<72x16xf32> to vector<72x16xbf16>
    %c6_27 = arith.constant 6 : index
    %c0_28 = arith.constant 0 : index
    %c0_29 = arith.constant 0 : index
    %37 = vector.load %arg2[%c6_27, %c0_28, %c0_29] : memref<9x16x128xbf16, #tpu.memory_space<vmem>>, vector<1x16x128xbf16>
    %38 = vector.shape_cast %37 : vector<1x16x128xbf16> to vector<16x128xbf16>
    %cst_30 = arith.constant dense<0.000000e+00> : vector<72x128xf32>
    %39 = tpu.matmul %36, %38, %cst_30 {dimension_numbers = #tpu.dot_dimension_numbers<[1], [0], [0], [1], [0, 0, 1, 1], [], []>} : vector<72x16xbf16>, vector<16x128xbf16>, vector<72x128xf32> -> vector<72x128xf32>
    %40 = arith.addf %34, %39 : vector<72x128xf32>
    %c13 = arith.constant 13 : index
    %c0_31 = arith.constant 0 : index
    %41 = vector.load %arg1[%c13, %c0_31] : memref<86x16xf32, #tpu.memory_space<vmem>>, vector<72x16xf32>
    %42 = arith.truncf %41 : vector<72x16xf32> to vector<72x16xbf16>
    %c7_32 = arith.constant 7 : index
    %c0_33 = arith.constant 0 : index
    %c0_34 = arith.constant 0 : index
    %43 = vector.load %arg2[%c7_32, %c0_33, %c0_34] : memref<9x16x128xbf16, #tpu.memory_space<vmem>>, vector<1x16x128xbf16>
    %44 = vector.shape_cast %43 : vector<1x16x128xbf16> to vector<16x128xbf16>
    %cst_35 = arith.constant dense<0.000000e+00> : vector<72x128xf32>
    %45 = tpu.matmul %42, %44, %cst_35 {dimension_numbers = #tpu.dot_dimension_numbers<[1], [0], [0], [1], [0, 0, 1, 1], [], []>} : vector<72x16xbf16>, vector<16x128xbf16>, vector<72x128xf32> -> vector<72x128xf32>
    %46 = arith.addf %40, %45 : vector<72x128xf32>
    %c14 = arith.constant 14 : index
    %c0_36 = arith.constant 0 : index
    %47 = vector.load %arg1[%c14, %c0_36] : memref<86x16xf32, #tpu.memory_space<vmem>>, vector<72x16xf32>
    %48 = arith.truncf %47 : vector<72x16xf32> to vector<72x16xbf16>
    %c8_37 = arith.constant 8 : index
    %c0_38 = arith.constant 0 : index
    %c0_39 = arith.constant 0 : index
    %49 = vector.load %arg2[%c8_37, %c0_38, %c0_39] : memref<9x16x128xbf16, #tpu.memory_space<vmem>>, vector<1x16x128xbf16>
    %50 = vector.shape_cast %49 : vector<1x16x128xbf16> to vector<16x128xbf16>
    %cst_40 = arith.constant dense<0.000000e+00> : vector<72x128xf32>
    %51 = tpu.matmul %48, %50, %cst_40 {dimension_numbers = #tpu.dot_dimension_numbers<[1], [0], [0], [1], [0, 0, 1, 1], [], []>} : vector<72x16xbf16>, vector<16x128xbf16>, vector<72x128xf32> -> vector<72x128xf32>
    %52 = arith.addf %46, %51 : vector<72x128xf32>
    %c0_41 = arith.constant 0 : index
    %c0_42 = arith.constant 0 : index
    %53 = vector.load %arg6[%c0_41, %c0_42] : memref<72x1xf32, #tpu.memory_space<vmem>>, vector<72x1xf32>
    %54 = vector.broadcast %53 : vector<72x1xf32> to vector<72x128xf32>
    %55 = arith.mulf %52, %54 : vector<72x128xf32>
    %cst_43 = arith.constant dense<0.000000e+00> : vector<128xf32>
    %56 = vector.multi_reduction <add>, %55, %cst_43 [0] : vector<72x128xf32> to vector<128xf32>
    %57 = vector.shape_cast %56 : vector<128xf32> to vector<1x128xf32>
    %c0_44 = arith.constant 0 : index
    %c0_45 = arith.constant 0 : index
    %58 = vector.load %arg3[%c0_44, %c0_45] : memref<128x128xf32, #tpu.memory_space<vmem>>, vector<128x128xf32>
    %cst_46 = arith.constant dense<0.000000e+00> : vector<1x128xf32>
    %59 = tpu.matmul %57, %58, %cst_46 {dimension_numbers = #tpu.dot_dimension_numbers<[1], [0], [0], [1], [0, 0, 1, 1], [], []>} : vector<1x128xf32>, vector<128x128xf32>, vector<1x128xf32> -> vector<1x128xf32>
    %cst_47 = arith.constant 7.812500e-03 : f32
    %60 = vector.broadcast %cst_47 : f32 to vector<1x128xf32>
    %61 = arith.mulf %59, %60 : vector<1x128xf32>
    %62 = vector.broadcast %61 : vector<1x128xf32> to vector<72x128xf32>
    %63 = arith.subf %52, %62 : vector<72x128xf32>
    %64 = vector.broadcast %53 : vector<72x1xf32> to vector<72x128xf32>
    %65 = arith.mulf %63, %64 : vector<72x128xf32>
    %66 = arith.mulf %65, %65 : vector<72x128xf32>
    %cst_48 = arith.constant dense<0.000000e+00> : vector<128xf32>
    %67 = vector.multi_reduction <add>, %66, %cst_48 [0] : vector<72x128xf32> to vector<128xf32>
    %68 = vector.shape_cast %67 : vector<128xf32> to vector<1x128xf32>
    %c0_49 = arith.constant 0 : index
    %c0_50 = arith.constant 0 : index
    %69 = vector.load %arg3[%c0_49, %c0_50] : memref<128x128xf32, #tpu.memory_space<vmem>>, vector<128x128xf32>
    %cst_51 = arith.constant dense<0.000000e+00> : vector<1x128xf32>
    %70 = tpu.matmul %68, %69, %cst_51 {dimension_numbers = #tpu.dot_dimension_numbers<[1], [0], [0], [1], [0, 0, 1, 1], [], []>} : vector<1x128xf32>, vector<128x128xf32>, vector<1x128xf32> -> vector<1x128xf32>
    %cst_52 = arith.constant 7.812500e-03 : f32
    %71 = vector.broadcast %cst_52 : f32 to vector<1x128xf32>
    %72 = arith.mulf %70, %71 : vector<1x128xf32>
    %c0_53 = arith.constant 0 : index
    %c0_54 = arith.constant 0 : index
    %73 = vector.load %arg4[%c0_53, %c0_54] : memref<1x128xf32, #tpu.memory_space<vmem>>, vector<1x128xf32>
    %cst_55 = arith.constant 9.99999974E-6 : f32
    %74 = vector.broadcast %cst_55 : f32 to vector<1x128xf32>
    %75 = arith.addf %72, %74 : vector<1x128xf32>
    %76 = math.rsqrt %75 : vector<1x128xf32>
    %77 = arith.mulf %73, %76 : vector<1x128xf32>
    %c0_56 = arith.constant 0 : index
    %c0_57 = arith.constant 0 : index
    %78 = vector.load %arg5[%c0_56, %c0_57] : memref<1x128xf32, #tpu.memory_space<vmem>>, vector<1x128xf32>
    %79 = arith.mulf %61, %77 : vector<1x128xf32>
    %80 = arith.subf %78, %79 : vector<1x128xf32>
    %81 = vector.broadcast %77 : vector<1x128xf32> to vector<72x128xf32>
    %82 = arith.mulf %52, %81 : vector<72x128xf32>
    %83 = vector.broadcast %80 : vector<1x128xf32> to vector<72x128xf32>
    %84 = arith.addf %82, %83 : vector<72x128xf32>
    %cst_58 = arith.constant 0.000000e+00 : f32
    %85 = vector.broadcast %cst_58 : f32 to vector<72x128xf32>
    %86 = arith.maximumf %84, %85 : vector<72x128xf32>
    %c0_59 = arith.constant 0 : index
    %c0_60 = arith.constant 0 : index
    %87 = vector.load %arg7[%c0_59, %c0_60] : memref<72x128xf32, #tpu.memory_space<vmem>>, vector<72x128xf32>
    tpu.vector_store %arg7[%c0_59, %c0_60], %86 {strides = array<i32>} : memref<72x128xf32, #tpu.memory_space<vmem>>, vector<72x128xf32>,
    return
  }
  func.func @transform_0(%arg0: i32) -> (i32, i32) {
    %c0_i32 = arith.constant 0 : i32
    %c0_i32_0 = arith.constant 0 : i32
    %c0_i32_1 = arith.constant 0 : i32
    return %c0_i32, %c0_i32_0 : i32, i32
  }
  func.func @transform_1(%arg0: i32) -> (i32, i32, i32) {
    %c0_i32 = arith.constant 0 : i32
    %c0_i32_0 = arith.constant 0 : i32
    %c0_i32_1 = arith.constant 0 : i32
    %c0_i32_2 = arith.constant 0 : i32
    return %c0_i32, %c0_i32_0, %c0_i32_1 : i32, i32, i32
  }
  func.func @transform_2(%arg0: i32) -> (i32, i32) {
    %c0_i32 = arith.constant 0 : i32
    %c0_i32_0 = arith.constant 0 : i32
    %c0_i32_1 = arith.constant 0 : i32
    return %c0_i32, %c0_i32_0 : i32, i32
  }
  func.func @transform_3(%arg0: i32) -> (i32, i32) {
    %c0_i32 = arith.constant 0 : i32
    %c0_i32_0 = arith.constant 0 : i32
    %c0_i32_1 = arith.constant 0 : i32
    return %c0_i32, %c0_i32_0 : i32, i32
  }
  func.func @transform_4(%arg0: i32) -> (i32, i32) {
    %c0_i32 = arith.constant 0 : i32
    %c0_i32_0 = arith.constant 0 : i32
    %c0_i32_1 = arith.constant 0 : i32
    return %c0_i32, %c0_i32_0 : i32, i32
  }
  func.func @transform_5(%arg0: i32) -> (i32, i32) {
    %c0_i32 = arith.constant 0 : i32
    %c0_i32_0 = arith.constant 0 : i32
    %c0_i32_1 = arith.constant 0 : i32
    return %c0_i32, %c0_i32_0 : i32, i32
  }
  func.func @transform_6(%arg0: i32) -> (i32, i32) {
    %c0_i32 = arith.constant 0 : i32
    %c0_i32_0 = arith.constant 0 : i32
    %c0_i32_1 = arith.constant 0 : i32
    return %c0_i32, %c0_i32_0 : i32, i32
  }
}

module attributes {stable_mosaic.version = 11 : i64} {
  func.func @kernel(%arg0: i32, %arg1: memref<222x8xf32, #tpu.memory_space<vmem>>, %arg2: memref<9x8x128xbf16, #tpu.memory_space<vmem>>, %arg3: memref<200x128xf32, #tpu.memory_space<vmem>>) attributes {dimension_semantics = [#tpu.dimension_semantics<arbitrary>], iteration_bounds = array<i64: 1>, scalar_prefetch = 0 : i64, scratch_operands = 0 : i64, tpu.core_type = #tpu.core_type<tc>, window_params = [{pipeline_mode = #tpu.pipeline_mode<synchronous>, transform_indices = @transform_0, window_bounds = array<i64: 222, 8>}, {pipeline_mode = #tpu.pipeline_mode<synchronous>, transform_indices = @transform_1, window_bounds = array<i64: 9, 8, 128>}, {pipeline_mode = #tpu.pipeline_mode<synchronous>, transform_indices = @transform_2, window_bounds = array<i64: 200, 128>}]} {
    %c0 = arith.constant 0 : index
    %c0_0 = arith.constant 0 : index
    %0 = vector.load %arg1[%c0, %c0_0] : memref<222x8xf32, #tpu.memory_space<vmem>>, vector<200x8xf32>
    %1 = arith.truncf %0 : vector<200x8xf32> to vector<200x8xbf16>
    %c0_1 = arith.constant 0 : index
    %c0_2 = arith.constant 0 : index
    %c0_3 = arith.constant 0 : index
    %2 = vector.load %arg2[%c0_1, %c0_2, %c0_3] : memref<9x8x128xbf16, #tpu.memory_space<vmem>>, vector<1x8x128xbf16>
    %3 = vector.shape_cast %2 : vector<1x8x128xbf16> to vector<8x128xbf16>
    %cst = arith.constant dense<0.000000e+00> : vector<200x128xf32>
    %4 = tpu.matmul %1, %3, %cst {dimension_numbers = #tpu.dot_dimension_numbers<[1], [0], [0], [1], [0, 0, 1, 1], [], []>} : vector<200x8xbf16>, vector<8x128xbf16>, vector<200x128xf32> -> vector<200x128xf32>
    %c1 = arith.constant 1 : index
    %c0_4 = arith.constant 0 : index
    %5 = vector.load %arg1[%c1, %c0_4] : memref<222x8xf32, #tpu.memory_space<vmem>>, vector<200x8xf32>
    %6 = arith.truncf %5 : vector<200x8xf32> to vector<200x8xbf16>
    %c1_5 = arith.constant 1 : index
    %c0_6 = arith.constant 0 : index
    %c0_7 = arith.constant 0 : index
    %7 = vector.load %arg2[%c1_5, %c0_6, %c0_7] : memref<9x8x128xbf16, #tpu.memory_space<vmem>>, vector<1x8x128xbf16>
    %8 = vector.shape_cast %7 : vector<1x8x128xbf16> to vector<8x128xbf16>
    %cst_8 = arith.constant dense<0.000000e+00> : vector<200x128xf32>
    %9 = tpu.matmul %6, %8, %cst_8 {dimension_numbers = #tpu.dot_dimension_numbers<[1], [0], [0], [1], [0, 0, 1, 1], [], []>} : vector<200x8xbf16>, vector<8x128xbf16>, vector<200x128xf32> -> vector<200x128xf32>
    %10 = arith.addf %4, %9 : vector<200x128xf32>
    %c2 = arith.constant 2 : index
    %c0_9 = arith.constant 0 : index
    %11 = vector.load %arg1[%c2, %c0_9] : memref<222x8xf32, #tpu.memory_space<vmem>>, vector<200x8xf32>
    %12 = arith.truncf %11 : vector<200x8xf32> to vector<200x8xbf16>
    %c2_10 = arith.constant 2 : index
    %c0_11 = arith.constant 0 : index
    %c0_12 = arith.constant 0 : index
    %13 = vector.load %arg2[%c2_10, %c0_11, %c0_12] : memref<9x8x128xbf16, #tpu.memory_space<vmem>>, vector<1x8x128xbf16>
    %14 = vector.shape_cast %13 : vector<1x8x128xbf16> to vector<8x128xbf16>
    %cst_13 = arith.constant dense<0.000000e+00> : vector<200x128xf32>
    %15 = tpu.matmul %12, %14, %cst_13 {dimension_numbers = #tpu.dot_dimension_numbers<[1], [0], [0], [1], [0, 0, 1, 1], [], []>} : vector<200x8xbf16>, vector<8x128xbf16>, vector<200x128xf32> -> vector<200x128xf32>
    %16 = arith.addf %10, %15 : vector<200x128xf32>
    %c10 = arith.constant 10 : index
    %c0_14 = arith.constant 0 : index
    %17 = vector.load %arg1[%c10, %c0_14] : memref<222x8xf32, #tpu.memory_space<vmem>>, vector<200x8xf32>
    %18 = arith.truncf %17 : vector<200x8xf32> to vector<200x8xbf16>
    %c3 = arith.constant 3 : index
    %c0_15 = arith.constant 0 : index
    %c0_16 = arith.constant 0 : index
    %19 = vector.load %arg2[%c3, %c0_15, %c0_16] : memref<9x8x128xbf16, #tpu.memory_space<vmem>>, vector<1x8x128xbf16>
    %20 = vector.shape_cast %19 : vector<1x8x128xbf16> to vector<8x128xbf16>
    %cst_17 = arith.constant dense<0.000000e+00> : vector<200x128xf32>
    %21 = tpu.matmul %18, %20, %cst_17 {dimension_numbers = #tpu.dot_dimension_numbers<[1], [0], [0], [1], [0, 0, 1, 1], [], []>} : vector<200x8xbf16>, vector<8x128xbf16>, vector<200x128xf32> -> vector<200x128xf32>
    %22 = arith.addf %16, %21 : vector<200x128xf32>
    %c11 = arith.constant 11 : index
    %c0_18 = arith.constant 0 : index
    %23 = vector.load %arg1[%c11, %c0_18] : memref<222x8xf32, #tpu.memory_space<vmem>>, vector<200x8xf32>
    %24 = arith.truncf %23 : vector<200x8xf32> to vector<200x8xbf16>
    %c4 = arith.constant 4 : index
    %c0_19 = arith.constant 0 : index
    %c0_20 = arith.constant 0 : index
    %25 = vector.load %arg2[%c4, %c0_19, %c0_20] : memref<9x8x128xbf16, #tpu.memory_space<vmem>>, vector<1x8x128xbf16>
    %26 = vector.shape_cast %25 : vector<1x8x128xbf16> to vector<8x128xbf16>
    %cst_21 = arith.constant dense<0.000000e+00> : vector<200x128xf32>
    %27 = tpu.matmul %24, %26, %cst_21 {dimension_numbers = #tpu.dot_dimension_numbers<[1], [0], [0], [1], [0, 0, 1, 1], [], []>} : vector<200x8xbf16>, vector<8x128xbf16>, vector<200x128xf32> -> vector<200x128xf32>
    %28 = arith.addf %22, %27 : vector<200x128xf32>
    %c12 = arith.constant 12 : index
    %c0_22 = arith.constant 0 : index
    %29 = vector.load %arg1[%c12, %c0_22] : memref<222x8xf32, #tpu.memory_space<vmem>>, vector<200x8xf32>
    %30 = arith.truncf %29 : vector<200x8xf32> to vector<200x8xbf16>
    %c5 = arith.constant 5 : index
    %c0_23 = arith.constant 0 : index
    %c0_24 = arith.constant 0 : index
    %31 = vector.load %arg2[%c5, %c0_23, %c0_24] : memref<9x8x128xbf16, #tpu.memory_space<vmem>>, vector<1x8x128xbf16>
    %32 = vector.shape_cast %31 : vector<1x8x128xbf16> to vector<8x128xbf16>
    %cst_25 = arith.constant dense<0.000000e+00> : vector<200x128xf32>
    %33 = tpu.matmul %30, %32, %cst_25 {dimension_numbers = #tpu.dot_dimension_numbers<[1], [0], [0], [1], [0, 0, 1, 1], [], []>} : vector<200x8xbf16>, vector<8x128xbf16>, vector<200x128xf32> -> vector<200x128xf32>
    %34 = arith.addf %28, %33 : vector<200x128xf32>
    %c20 = arith.constant 20 : index
    %c0_26 = arith.constant 0 : index
    %35 = vector.load %arg1[%c20, %c0_26] : memref<222x8xf32, #tpu.memory_space<vmem>>, vector<200x8xf32>
    %36 = arith.truncf %35 : vector<200x8xf32> to vector<200x8xbf16>
    %c6 = arith.constant 6 : index
    %c0_27 = arith.constant 0 : index
    %c0_28 = arith.constant 0 : index
    %37 = vector.load %arg2[%c6, %c0_27, %c0_28] : memref<9x8x128xbf16, #tpu.memory_space<vmem>>, vector<1x8x128xbf16>
    %38 = vector.shape_cast %37 : vector<1x8x128xbf16> to vector<8x128xbf16>
    %cst_29 = arith.constant dense<0.000000e+00> : vector<200x128xf32>
    %39 = tpu.matmul %36, %38, %cst_29 {dimension_numbers = #tpu.dot_dimension_numbers<[1], [0], [0], [1], [0, 0, 1, 1], [], []>} : vector<200x8xbf16>, vector<8x128xbf16>, vector<200x128xf32> -> vector<200x128xf32>
    %40 = arith.addf %34, %39 : vector<200x128xf32>
    %c21 = arith.constant 21 : index
    %c0_30 = arith.constant 0 : index
    %41 = vector.load %arg1[%c21, %c0_30] : memref<222x8xf32, #tpu.memory_space<vmem>>, vector<200x8xf32>
    %42 = arith.truncf %41 : vector<200x8xf32> to vector<200x8xbf16>
    %c7 = arith.constant 7 : index
    %c0_31 = arith.constant 0 : index
    %c0_32 = arith.constant 0 : index
    %43 = vector.load %arg2[%c7, %c0_31, %c0_32] : memref<9x8x128xbf16, #tpu.memory_space<vmem>>, vector<1x8x128xbf16>
    %44 = vector.shape_cast %43 : vector<1x8x128xbf16> to vector<8x128xbf16>
    %cst_33 = arith.constant dense<0.000000e+00> : vector<200x128xf32>
    %45 = tpu.matmul %42, %44, %cst_33 {dimension_numbers = #tpu.dot_dimension_numbers<[1], [0], [0], [1], [0, 0, 1, 1], [], []>} : vector<200x8xbf16>, vector<8x128xbf16>, vector<200x128xf32> -> vector<200x128xf32>
    %46 = arith.addf %40, %45 : vector<200x128xf32>
    %c22 = arith.constant 22 : index
    %c0_34 = arith.constant 0 : index
    %47 = vector.load %arg1[%c22, %c0_34] : memref<222x8xf32, #tpu.memory_space<vmem>>, vector<200x8xf32>
    %48 = arith.truncf %47 : vector<200x8xf32> to vector<200x8xbf16>
    %c8 = arith.constant 8 : index
    %c0_35 = arith.constant 0 : index
    %c0_36 = arith.constant 0 : index
    %49 = vector.load %arg2[%c8, %c0_35, %c0_36] : memref<9x8x128xbf16, #tpu.memory_space<vmem>>, vector<1x8x128xbf16>
    %50 = vector.shape_cast %49 : vector<1x8x128xbf16> to vector<8x128xbf16>
    %cst_37 = arith.constant dense<0.000000e+00> : vector<200x128xf32>
    %51 = tpu.matmul %48, %50, %cst_37 {dimension_numbers = #tpu.dot_dimension_numbers<[1], [0], [0], [1], [0, 0, 1, 1], [], []>} : vector<200x8xbf16>, vector<8x128xbf16>, vector<200x128xf32> -> vector<200x128xf32>
    %52 = arith.addf %46, %51 : vector<200x128xf32>
    %53 = math.tanh %52 : vector<200x128xf32>
    %c0_38 = arith.constant 0 : index
    %c0_39 = arith.constant 0 : index
    %54 = vector.load %arg3[%c0_38, %c0_39] : memref<200x128xf32, #tpu.memory_space<vmem>>, vector<200x128xf32>
    tpu.vector_store %arg3[%c0_38, %c0_39], %53 {strides = array<i32>} : memref<200x128xf32, #tpu.memory_space<vmem>>, vector<200x128xf32>,
    return
  }
  func.func @transform_0(%arg0: i32) -> (i32, i32) {
    %c0_i32 = arith.constant 0 : i32
    %c0_i32_0 = arith.constant 0 : i32
    %c0_i32_1 = arith.constant 0 : i32
    return %c0_i32, %c0_i32_0 : i32, i32
  }
  func.func @transform_1(%arg0: i32) -> (i32, i32, i32) {
    %c0_i32 = arith.constant 0 : i32
    %c0_i32_0 = arith.constant 0 : i32
    %c0_i32_1 = arith.constant 0 : i32
    %c0_i32_2 = arith.constant 0 : i32
    return %c0_i32, %c0_i32_0, %c0_i32_1 : i32, i32, i32
  }
  func.func @transform_2(%arg0: i32) -> (i32, i32) {
    %c0_i32 = arith.constant 0 : i32
    %c0_i32_0 = arith.constant 0 : i32
    %c0_i32_1 = arith.constant 0 : i32
    return %c0_i32, %c0_i32_0 : i32, i32
  }
}

</mosaic_0001>

<bundles_post_ra>
// kernel: a_call__.3
= control target key start
LH: loop header
LB: loop body
LE: loop exit
PB: predicated region body
PF: predicated region fallthrough
CT: control target
= control target key end

     0   :  { %10 = vsyncpa [#allocation3], 0  ;;  %s621_s18 = smov [#allocation2]   ;;  %s706_s0 = inlined_call_operand.vmem [shape: f32[2,32], index: 0, kind: input, shape index: {}]   ;;  %s707_s1 = inlined_call_operand.vmem [shape: bf16[32,256], index: 1, kind: input, shape index: {}]   ;;  %s708_s2 = inlined_call_operand.hbm [shape: f32[256,256], index: 2, kind: input, shape index: {}]   ;;  %s709_s3 = inlined_call_operand.vmem [shape: f32[1,256], index: 3, kind: input, shape index: {}]   ;;  %s710_s4 = inlined_call_operand.vmem [shape: f32[1,256], index: 4, kind: input, shape index: {}]   ;;  %s711_s5 = inlined_call_operand.vmem [shape: f32[2,256], index: 5, kind: output, shape index: {}]  }
   0x1   :  { %s20_s19 = sshll.u32 %s621_s18, 4  ;;  %s597_s22 = scalar_lea.hbm %s708_s2, 8192  ;;  %s21_s19 = int_to_ptr.vmem [resolvable:$true] %s20_s19 }
   0x2   :  { %p598_p0 = scmp.ne.s32.totalorder %s708_s2, %s597_s22  ;;  %p601_p1 = scmp.lt.u32.totalorder %s597_s22, %s708_s2 }
   0x4   :  { %p603_p2 = pnand %p601_p1, %p598_p0 }
   0x6   :  { %606 = shalt.err (!%p603_p2)
}
   0x7   :  { %s607_s27 = scalar_lea.vmem %s21_s19, 8192  ;;  %p612_p4 = scmp.lt.s32.totalorder %s21_s19, %s21_s19 }
   0x8   :  { %p608_p3 = scmp.ne.s32.totalorder %s21_s19, %s607_s27  ;;  %p613_p5 = scmp.lt.s32.totalorder %s607_s27, %s607_s27 }
   0xa   :  { %p614_p6 = por %p613_p5, %p612_p4 }
   0xc   :  { %p615_p7 = pnand %p614_p6, %p608_p3 }
   0xe   :  { %618 = shalt.err (!%p615_p7)
}
   0xf   :  { %s622_s28 = smov 256   ;;  %s623_s29 = smov 16  }
  0x10   :  { %26 = dma.hbm_to_vmem [thread:$0]  %s708_s2, 8192, %s21_s19, [#allocation3], %s622_s28, %s622_s28, %s623_s29  }
  0x11   :  { %619 = dma.done.wait [#allocation3], 8192  }
  0x12   :  { %620 = vsyncadd [#allocation3], 4294959104  ;;  %v624_v0 = vmov 0   ;;  %v587_v1 = vld [vmem:[%s707_s1 + $0x4] ss:$8 sps:$4 sm:$0xff]   ;;  %v124_v7 = vld [vmem:[#allocation2 + $0x18] sm:$0xff] }
  0x13   :  { %97 = vmatprep.mubr.bf16.mxu0 %v624_v0  ;;  %v589_v2 = vld [vmem:[%s707_s1] ss:$8 sps:$4 sm:$0xff]   ;;  %65 = vmatprep.subr.bf16.mxu0 %v587_v1  ;;  %v590_v3 = vld [vmem:[%s707_s1 + $0x14] ss:$8 sps:$4 sm:$0xff]   ;;  %v592_v4 = vld [vmem:[%s707_s1 + $0x10] ss:$8 sps:$4 sm:$0xff]  }
  0x14   :  { %v35_v5 = vld [vmem:[%s706_s0] sm:$0x3]  ;;  %66 = vmatpush1.bf16.msra.mxu0 %v589_v2  ;;  %v122_v6 = vld [vmem:[#allocation2 + $0x8] sm:$0xff]  ;;  %v123_v10 = vld [vmem:[#allocation2 + $0x10] sm:$0xff]  ;;  %vm61_vm0 = vcmask 261120   ;;  %vm106_vm1 = vcmask 1041408  }
  0x15   :  { %v121_v8 = vld [vmem:[#allocation2] sm:$0xff]  ;;  %67 = vmatprep.subr.bf16.mxu0 %v590_v3  ;;  %v454_v9 = vpack.c.bf16 %v124_v7, %v122_v6  ;;  %v126_v11 = vld [vmem:[#allocation2 + $0x28] sm:$0xff]  ;;  %v128_v12 = vld [vmem:[#allocation2 + $0x38] sm:$0xff]  ;;  %v36_v18 = vpack.c.bf16 %v35_v5, %v35_v5 }
  0x16   :  { %v456_v13 = vpack.c.bf16 %v123_v10, %v121_v8  ;;  %v458_v14 = vpack.c.bf16 %v128_v12, %v126_v11  ;;  %v125_v15 = vld [vmem:[#allocation2 + $0x20] sm:$0xff]  ;;  %v127_v16 = vld [vmem:[#allocation2 + $0x30] sm:$0xff]  ;;  %v130_v17 = vld [vmem:[#allocation2 + $0x48] sm:$0xff] }
  0x17   :  { %455 = vmatprep.subr.bf16.mxu1 %v454_v9  ;;  %v132_v19 = vld [vmem:[#allocation2 + $0x58] sm:$0xff]  ;;  %v460_v20 = vpack.c.bf16 %v127_v16, %v125_v15  ;;  %v129_v22 = vld [vmem:[#allocation2 + $0x40] sm:$0xff]  ;;  %v131_v23 = vld [vmem:[#allocation2 + $0x50] sm:$0xff] }
  0x18   :  { %68 = vmatpush1.bf16.msra.mxu0 %v592_v4  ;;  %457 = vmatpush1.bf16.msra.mxu1 %v456_v13  ;;  %v462_v21 = vpack.c.bf16 %v132_v19, %v130_v17  ;;  %v134_v24 = vld [vmem:[#allocation2 + $0x68] sm:$0xff]  ;;  %v136_v25 = vld [vmem:[#allocation2 + $0x78] sm:$0xff]  ;;  %v464_v26 = vpack.c.bf16 %v131_v23, %v129_v22  ;;  %v133_v28 = vld [vmem:[#allocation2 + $0x60] sm:$0xff] }
  0x19   :  { %459 = vmatprep.subr.bf16.mxu1 %v458_v14  ;;  %519 = vmatprep.subr.bf16.mxu0 %v454_v9  ;;  %v466_v27 = vpack.c.bf16 %v136_v25, %v134_v24  ;;  %v135_v29 = vld [vmem:[#allocation2 + $0x70] sm:$0xff]  ;;  %v138_v30 = vld [vmem:[#allocation2 + $0x88] sm:$0xff]  ;;  %v140_v31 = vld [vmem:[#allocation2 + $0x98] sm:$0xff] }
  0x1a   :  { %v468_v32 = vpack.c.bf16 %v135_v29, %v133_v28  ;;  %v470_v33 = vpack.c.bf16 %v140_v31, %v138_v30  ;;  %v137_v34 = vld [vmem:[#allocation2 + $0x80] sm:$0xff]  ;;  %v139_v35 = vld [vmem:[#allocation2 + $0x90] sm:$0xff]  ;;  %v142_v36 = vld [vmem:[#allocation2 + $0xa8] sm:$0xff] }
  0x1b   :  { %452 = vmatmul.mubr.msk.bf16.vlgmr.msra.gmra.mrb[0].mxu0 %vm61_vm0, %v36_v18  ;;  %v144_v37 = vld [vmem:[#allocation2 + $0xb8] sm:$0xff]  ;;  %v472_v38 = vpack.c.bf16 %v139_v35, %v137_v34  ;;  %v141_v40 = vld [vmem:[#allocation2 + $0xa0] sm:$0xff]  ;;  %v143_v41 = vld [vmem:[#allocation2 + $0xb0] sm:$0xff] }
  0x1c   :  { %461 = vmatpush1.bf16.msra.mxu1 %v460_v20  ;;  %521 = vmatpush1.bf16.msra.mxu0 %v456_v13  ;;  %v474_v39 = vpack.c.bf16 %v144_v37, %v142_v36  ;;  %v146_v42 = vld [vmem:[#allocation2 + $0xc8] sm:$0xff]  ;;  %v148_v43 = vld [vmem:[#allocation2 + $0xd8] sm:$0xff]  ;;  %v476_v44 = vpack.c.bf16 %v143_v41, %v141_v40  ;;  %v145_v46 = vld [vmem:[#allocation2 + $0xc0] sm:$0xff] }
  0x1d   :  { %463 = vmatprep.subr.bf16.mxu1 %v462_v21  ;;  %523 = vmatprep.subr.bf16.mxu0 %v458_v14  ;;  %v478_v45 = vpack.c.bf16 %v148_v43, %v146_v42  ;;  %v147_v47 = vld [vmem:[#allocation2 + $0xd0] sm:$0xff]  ;;  %v150_v48 = vld [vmem:[#allocation2 + $0xe8] sm:$0xff]  ;;  %v152_v49 = vld [vmem:[#allocation2 + $0xf8] sm:$0xff] }
  0x1e   :  { %v480_v50 = vpack.c.bf16 %v147_v47, %v145_v46  ;;  %v482_v51 = vpack.c.bf16 %v152_v49, %v150_v48  ;;  %v149_v52 = vld [vmem:[#allocation2 + $0xe0] sm:$0xff]  ;;  %v151_v53 = vld [vmem:[#allocation2 + $0xf0] sm:$0xff]  ;;  %v154_v54 = vld [vmem:[#allocation2 + $0x108] sm:$0xff] }
  0x1f   :  { %v156_v55 = vld [vmem:[#allocation2 + $0x118] sm:$0xff]  ;;  %v484_v56 = vpack.c.bf16 %v151_v53, %v149_v52  ;;  %v153_v58 = vld [vmem:[#allocation2 + $0x100] sm:$0xff]  ;;  %v155_v59 = vld [vmem:[#allocation2 + $0x110] sm:$0xff] }
  0x20   :  { %465 = vmatpush1.bf16.msra.mxu1 %v464_v26  ;;  %525 = vmatpush1.bf16.msra.mxu0 %v460_v20  ;;  %v486_v57 = vpack.c.bf16 %v156_v55, %v154_v54  ;;  %v158_v60 = vld [vmem:[#allocation2 + $0x128] sm:$0xff]  ;;  %v160_v61 = vld [vmem:[#allocation2 + $0x138] sm:$0xff]  ;;  %v488_v62 = vpack.c.bf16 %v155_v59, %v153_v58  ;;  %v157_v0 = vld [vmem:[#allocation2 + $0x120] sm:$0xff] }
  0x21   :  { %467 = vmatprep.subr.bf16.mxu1 %v466_v27  ;;  %527 = vmatprep.subr.bf16.mxu0 %v462_v21  ;;  %v490_v63 = vpack.c.bf16 %v160_v61, %v158_v60  ;;  %v159_v1 = vld [vmem:[#allocation2 + $0x130] sm:$0xff]  ;;  %v162_v2 = vld [vmem:[#allocation2 + $0x148] sm:$0xff]  ;;  %v164_v3 = vld [vmem:[#allocation2 + $0x158] sm:$0xff] }
  0x22   :  { %v492_v4 = vpack.c.bf16 %v159_v1, %v157_v0  ;;  %v494_v5 = vpack.c.bf16 %v164_v3, %v162_v2  ;;  %v161_v6 = vld [vmem:[#allocation2 + $0x140] sm:$0xff]  ;;  %v163_v7 = vld [vmem:[#allocation2 + $0x150] sm:$0xff]  ;;  %v166_v8 = vld [vmem:[#allocation2 + $0x168] sm:$0xff] }
  0x23   :  { %v168_v9 = vld [vmem:[#allocation2 + $0x178] sm:$0xff]  ;;  %v496_v10 = vpack.c.bf16 %v163_v7, %v161_v6  ;;  %v165_v12 = vld [vmem:[#allocation2 + $0x160] sm:$0xff]  ;;  %v167_v13 = vld [vmem:[#allocation2 + $0x170] sm:$0xff] }
  0x24   :  { %469 = vmatpush1.bf16.msra.mxu1 %v468_v32  ;;  %529 = vmatpush1.bf16.msra.mxu0 %v464_v26  ;;  %v498_v11 = vpack.c.bf16 %v168_v9, %v166_v8  ;;  %v500_v14 = vpack.c.bf16 %v167_v13, %v165_v12  ;;  %v170_v15 = vld [vmem:[#allocation2 + $0x188] sm:$0xff]  ;;  %v172_v16 = vld [vmem:[#allocation2 + $0x198] sm:$0xff]  ;;  %v169_v18 = vld [vmem:[#allocation2 + $0x180] sm:$0xff] }
  0x25   :  { %471 = vmatprep.subr.bf16.mxu1 %v470_v33  ;;  %531 = vmatprep.subr.bf16.mxu0 %v466_v27  ;;  %v502_v17 = vpack.c.bf16 %v172_v16, %v170_v15  ;;  %v171_v19 = vld [vmem:[#allocation2 + $0x190] sm:$0xff]  ;;  %v174_v21 = vld [vmem:[#allocation2 + $0x1a8] sm:$0xff]  ;;  %v176_v22 = vld [vmem:[#allocation2 + $0x1b8] sm:$0xff] }
  0x26   :  { %v504_v20 = vpack.c.bf16 %v171_v19, %v169_v18  ;;  %v506_v23 = vpack.c.bf16 %v176_v22, %v174_v21  ;;  %v173_v24 = vld [vmem:[#allocation2 + $0x1a0] sm:$0xff]  ;;  %v175_v25 = vld [vmem:[#allocation2 + $0x1b0] sm:$0xff]  ;;  %v178_v27 = vld [vmem:[#allocation2 + $0x1c8] sm:$0xff] }
  0x27   :  { %v508_v26 = vpack.c.bf16 %v175_v25, %v173_v24  ;;  %v180_v28 = vld [vmem:[#allocation2 + $0x1d8] sm:$0xff]  ;;  %v177_v30 = vld [vmem:[#allocation2 + $0x1c0] sm:$0xff]  ;;  %v179_v31 = vld [vmem:[#allocation2 + $0x1d0] sm:$0xff] }
  0x28   :  { %473 = vmatpush1.bf16.msra.mxu1 %v472_v38  ;;  %533 = vmatpush1.bf16.msra.mxu0 %v468_v32  ;;  %v510_v29 = vpack.c.bf16 %v180_v28, %v178_v27  ;;  %v182_v32 = vld [vmem:[#allocation2 + $0x1e8] sm:$0xff]  ;;  %v184_v34 = vld [vmem:[#allocation2 + $0x1f8] sm:$0xff]  ;;  %v181_v35 = vld [vmem:[#allocation2 + $0x1e0] sm:$0xff] }
  0x29   :  { %475 = vmatprep.subr.bf16.mxu1 %v474_v39  ;;  %535 = vmatprep.subr.bf16.mxu0 %v470_v33  ;;  %v512_v33 = vpack.c.bf16 %v179_v31, %v177_v30  ;;  %v183_v36 = vld [vmem:[#allocation2 + $0x1f0] sm:$0xff]  ;;  %v514_v37 = vpack.c.bf16 %v184_v34, %v182_v32  ;;  %v357_v34 = vld [vmem:[%s709_s3] sm:$0x3] }
  0x2c   :  { %477 = vmatpush1.bf16.msra.mxu1 %v476_v44  ;;  %537 = vmatpush1.bf16.msra.mxu0 %v472_v38  ;;  %v516_v38 = vpack.c.bf16 %v183_v36, %v181_v35 }
  0x2d   :  { %479 = vmatprep.subr.bf16.mxu1 %v478_v45  ;;  %539 = vmatprep.subr.bf16.mxu0 %v474_v39 }
  0x30   :  { %481 = vmatpush1.bf16.msra.mxu1 %v480_v50  ;;  %541 = vmatpush1.bf16.msra.mxu0 %v476_v44 }
  0x31   :  { %483 = vmatprep.subr.bf16.mxu1 %v482_v51  ;;  %543 = vmatprep.subr.bf16.mxu0 %v478_v45 }
  0x34   :  { %485 = vmatpush1.bf16.msra.mxu1 %v484_v56  ;;  %545 = vmatpush1.bf16.msra.mxu0 %v480_v50 }
  0x35   :  { %487 = vmatprep.subr.bf16.mxu1 %v486_v57  ;;  %547 = vmatprep.subr.bf16.mxu0 %v482_v51 }
  0x38   :  { %489 = vmatpush1.bf16.msra.mxu1 %v488_v62  ;;  %549 = vmatpush1.bf16.msra.mxu0 %v484_v56 }
  0x39   :  { %491 = vmatprep.subr.bf16.mxu1 %v490_v63  ;;  %551 = vmatprep.subr.bf16.mxu0 %v486_v57  ;;  %v258_v57 = vlaneseq }
  0x3b   :  { %v259_v58 = vshrl.u32 %v258_v57, 7 }
  0x3c   :  { %493 = vmatpush1.bf16.msra.mxu1 %v492_v4  ;;  %553 = vmatpush1.bf16.msra.mxu0 %v488_v62 }
  0x3d   :  { %495 = vmatprep.subr.bf16.mxu1 %v494_v5  ;;  %555 = vmatprep.subr.bf16.mxu0 %v490_v63  ;;  %v260_v59 = vsub.s32 0, %v259_v58  ;;  %v389_v35 = vsub.s32 1, %v259_v58 }
  0x40   :  { %497 = vmatpush1.bf16.msra.mxu1 %v496_v10  ;;  %557 = vmatpush1.bf16.msra.mxu0 %v492_v4 }
  0x41   :  { %499 = vmatprep.subr.bf16.mxu1 %v498_v11  ;;  %559 = vmatprep.subr.bf16.mxu0 %v494_v5 }
  0x44   :  { %501 = vmatpush1.bf16.msra.mxu1 %v500_v14  ;;  %561 = vmatpush1.bf16.msra.mxu0 %v496_v10 }
  0x45   :  { %563 = vmatprep.subr.bf16.mxu0 %v498_v11  ;;  %503 = vmatprep.subr.bf16.mxu1 %v502_v17 }
  0x48   :  { %565 = vmatpush1.bf16.msra.mxu0 %v500_v14  ;;  %505 = vmatpush1.bf16.msra.mxu1 %v504_v20 }
  0x49   :  { %567 = vmatprep.subr.bf16.mxu0 %v502_v17  ;;  %507 = vmatprep.subr.bf16.mxu1 %v506_v23 }
  0x4c   :  { %569 = vmatpush1.bf16.msra.mxu0 %v504_v20  ;;  %509 = vmatpush1.bf16.msra.mxu1 %v508_v26 }
  0x4d   :  { %571 = vmatprep.subr.bf16.mxu0 %v506_v23  ;;  %511 = vmatprep.subr.bf16.mxu1 %v510_v29 }
  0x50   :  { %573 = vmatpush1.bf16.msra.mxu0 %v508_v26  ;;  %513 = vmatpush1.bf16.msra.mxu1 %v512_v33  ;;  %v625_v26 = vmov 1966171168  }
  0x51   :  { %575 = vmatprep.subr.bf16.mxu0 %v510_v29  ;;  %515 = vmatprep.subr.bf16.mxu1 %v514_v37  ;;  %v366_v27 = vunpack.c.l.s4 %v625_v26 }
  0x53   :  { %v367_v28 = vunpack.c.0.s8 %v366_v27 }
  0x54   :  { %577 = vmatpush1.bf16.msra.mxu0 %v512_v33  ;;  %517 = vmatpush1.bf16.msra.mxu1 %v516_v38 }
  0x55   :  { %579 = vmatprep.subr.bf16.mxu0 %v514_v37  ;;  %v370_v30 = vsub.s32 %v367_v28, %v259_v58 }
  0x58   :  { %581 = vmatpush1.bf16.msra.mxu0 %v516_v38 }
  0xee   :  { %v683_v39 = vpop.f32.mrb[0].mxu0 }
  0xef   :  { %v107_v40 = vsel %vm106_vm1, %v683_v39, 0.0  ;;  %v687_v41 = vpop.f32.mrb[1].mxu0 }
  0xf0   :  { %v108_v42 = vrot.slane %v107_v40, 4  ;;  %v114_v43 = vsel %vm106_vm1, %v687_v41, 0.0  ;;  %v103_v44 = vpop.f32.mrb[2].mxu0 }
  0xf1   :  { %v115_v45 = vrot.slane %v114_v43, 4  ;;  %v104_v46 = vpop.f32.mrb[3].mxu0 }
  0xf2   :  { %v109_v47 = vadd.f32 %v108_v42, %v107_v40 }
  0xf3   :  { %v116_v48 = vadd.f32 %v115_v45, %v114_v43 }
  0xf4   :  { %v110_v49 = vrot.slane %v109_v47, 2 }
  0xf5   :  { %v117_v50 = vrot.slane %v116_v48, 2 }
  0xf6   :  { %v111_v51 = vadd.f32 %v110_v49, %v109_v47 }
  0xf7   :  { %v118_v52 = vadd.f32 %v117_v50, %v116_v48  ;;  %v381_v48 = vld [vmem:[%s710_s4] sm:$0x3] }
  0xf8   :  { %v112_v53 = vrot.slane %v111_v51, 1 }
  0xf9   :  { %v119_v54 = vrot.slane %v118_v52, 1 }
  0xfa   :  { %v113_v56 = vadd.f32 %v112_v53, %v111_v51 }
  0xfb   :  { %v120_v55 = vadd.f32 %v119_v54, %v118_v52 }
  0xfd   :  { %249 = vmatprep.mubr.f32.mxu1 %v120_v55 }
  0xfe   :  { %250 = vmatmul.mubr.f32.vlgmr.msra.gmra.mrb[0].mxu1 %v113_v56 }
 0x1d1   :  { %v251_v60 = vpop.f32.mrb[0].mxu1 }
 0x1d2   :  { %v256_v61 = vmul.f32 0.03125, %v251_v60  ;;  %v253_v62 = vpop.f32.mrb[1].mxu1 }
 0x1d3   :  { %v257_v63 = vmul.f32 0.03125, %v253_v62 }
 0x1d4   :  { %v261_v0 = vrot.slane %v256_v61, %v260_v59 }
 0x1d5   :  { %v265_v1 = vrot.slane %v257_v63, %v260_v59 }
 0x1d6   :  { %v266_v2 = vsub.f32 %v683_v39, %v261_v0 }
 0x1d7   :  { %v267_v3 = vsub.f32 %v687_v41, %v265_v1 }
 0x1d8   :  { %v268_v4 = vmul.f32 %v266_v2, %v266_v2 }
 0x1d9   :  { %v269_v5 = vmul.f32 %v267_v3, %v267_v3 }
 0x1da   :  { %v270_v6 = vsel %vm106_vm1, %v268_v4, 0.0 }
 0x1db   :  { %v271_v7 = vrot.slane %v270_v6, 4  ;;  %v277_v8 = vsel %vm106_vm1, %v269_v5, 0.0 }
 0x1dc   :  { %v278_v9 = vrot.slane %v277_v8, 4 }
 0x1dd   :  { %v272_v10 = vadd.f32 %v271_v7, %v270_v6 }
 0x1de   :  { %v279_v11 = vadd.f32 %v278_v9, %v277_v8 }
 0x1df   :  { %v273_v12 = vrot.slane %v272_v10, 2 }
 0x1e0   :  { %v280_v13 = vrot.slane %v279_v11, 2 }
 0x1e1   :  { %v274_v14 = vadd.f32 %v273_v12, %v272_v10 }
 0x1e2   :  { %v281_v15 = vadd.f32 %v280_v13, %v279_v11 }
 0x1e3   :  { %v275_v16 = vrot.slane %v274_v14, 1 }
 0x1e4   :  { %v282_v17 = vrot.slane %v281_v15, 1 }
 0x1e5   :  { %v276_v19 = vadd.f32 %v275_v16, %v274_v14 }
 0x1e6   :  { %v283_v18 = vadd.f32 %v282_v17, %v281_v15 }
 0x1e8   :  { %348 = vmatprep.mubr.f32.mxu0 %v283_v18 }
 0x1e9   :  { %349 = vmatmul.mubr.f32.vlgmr.msra.gmra.mrb[4].mxu0 %v276_v19 }
 0x2bc   :  { %v350_v20 = vpop.f32.mrb[4].mxu0 }
 0x2bd   :  { %v355_v21 = vmul.f32 0.03125, %v350_v20  ;;  %v352_v22 = vpop.f32.mrb[5].mxu0 }
 0x2be   :  { %v356_v23 = vmul.f32 0.03125, %v352_v22 }
 0x2bf   :  { %v358_v24 = vadd.f32 1e-05, %v355_v21 }
 0x2c0   :  { %v359_v25 = vadd.f32 1e-05, %v356_v23 }
 0x2c1   :  { %593 = vrsqrt.f32 %v358_v24 }
 0x2c2   :  { %595 = vrsqrt.f32 %v359_v25 }
 0x2cb   :  { %v594_v29 = vpop.eup %593 }
 0x2cc   :  { %v596_v31 = vpop.eup %595 }
 0x2cd   :  { %v364_v32 = vcombine.low %v594_v29, %v596_v31 }
 0x2cf   :  { %v371_v33 = vrot.slane %v364_v32, %v370_v30 }
 0x2d1   :  { %v378_v36 = vrot.slane %v371_v33, %v370_v30 }
 0x2d3   :  { %v380_v37 = vmul.f32 %v378_v36, %v357_v34 }
 0x2d5   :  { %v386_v38 = vrot.slane %v380_v37, %v260_v59  ;;  %v390_v40 = vrot.slane %v380_v37, %v389_v35 }
 0x2d7   :  { %v393_v42 = vmul.f32 %v386_v38, %v256_v61  ;;  %v394_v43 = vmul.f32 %v390_v40, %v257_v63  ;;  %v414_v44 = vmul.f32 %v386_v38, %v683_v39  ;;  %v415_v45 = vmul.f32 %v390_v40, %v687_v41 }
 0x2d9   :  { %v397_v46 = vcombine.low %v393_v42, %v394_v43 }
 0x2db   :  { %v404_v47 = vrot.slane %v397_v46, %v370_v30 }
 0x2dd   :  { %v411_v49 = vrot.slane %v404_v47, %v370_v30 }
 0x2df   :  { %v413_v50 = vsub.f32 %v381_v48, %v411_v49 }
 0x2e1   :  { %v420_v51 = vrot.slane %v413_v50, %v260_v59  ;;  %v424_v52 = vrot.slane %v413_v50, %v389_v35 }
 0x2e3   :  { %v427_v53 = vadd.f32 %v420_v51, %v414_v44  ;;  %v428_v54 = vadd.f32 %v424_v52, %v415_v45 }
 0x2e5   :  { %v429_v55 = vmax.f32 %v427_v53, 0.0  ;;  %v430_v56 = vmax.f32 %v428_v54, 0.0 }
 0x2e7   :  { %v433_v57 = vcombine.low %v429_v55, %v430_v56 }
 0x2e9   :  { %453 = vst.sshfl [vmem:[%s711_s5] sm:$0x33 pattern:$0x76325410] %v433_v57 }
 0x2ea   :  { %447 = vsyncpa [#allocation3], 1 }

// kernel: a_call__.4
= control target key start
LH: loop header
LB: loop body
LE: loop exit
PB: predicated region body
PF: predicated region fallthrough
CT: control target
= control target key end

     0   :  { %v2056_v0 = vmov 0.0   ;;  %vm2057_vm0 = vmmov 0   ;;  %vm63_vm1 = vcmask 130048   ;;  %v2058_v53 = vmov 0   ;;  %s2707_s1 = inlined_call_operand.vmem [shape: bf16[9,16,128], index: 1, kind: input, shape index: {}]   ;;  %s2708_s0 = inlined_call_operand.vmem [shape: f32[86,16], index: 0, kind: input, shape index: {}]   ;;  %s2709_s5 = inlined_call_operand.vmem [shape: f32[72,1], index: 5, kind: input, shape index: {}]   ;;  %s2710_s2 = inlined_call_operand.vmem [shape: f32[128,128], index: 2, kind: input, shape index: {}]   ;;  %s2711_s3 = inlined_call_operand.vmem [shape: f32[1,128], index: 3, kind: input, shape index: {}]   ;;  %s2712_s4 = inlined_call_operand.vmem [shape: f32[1,128], index: 4, kind: input, shape index: {}]   ;;  %s2713_s6 = inlined_call_operand.vmem [shape: f32[72,128], index: 6, kind: output, shape index: {}]  }
   0x1   :  { %1574 = vmatprep.subr.bf16.mxu1 %v2056_v0  ;;  %1662 = vmatprep.subr.bf16.mxu0 %v2056_v0  ;;  %v2045_v1 = vld [vmem:[%s2707_s1 + $0x8] sm:$0xff]   ;;  %v2046_v2 = vld [vmem:[%s2707_s1 + $0x20] sm:$0xff]   ;;  %v42_v10 = vld [vmem:[%s2708_s0 + $0x11] sm:$0xff] }
   0x2   :  { %1576 = vmatprep.mubr.msk.bf16.mxu1 %vm2057_vm0, %v2056_v0  ;;  %1664 = vmatprep.mubr.msk.bf16.mxu0 %vm2057_vm0, %v2056_v0  ;;  %v40_v3 = vld [vmem:[%s2708_s0 + $0x1] sm:$0xff]  ;;  %v41_v4 = vld [vmem:[%s2708_s0 + $0x9] sm:$0xff]  ;;  %v43_v11 = vld [vmem:[%s2708_s0 + $0x19] sm:$0xff] }
   0x3   :  { %1575 = vmatpush3.bf16.msra.mxu1 %v2045_v1  ;;  %v482_v5 = vld [vmem:[%s2708_s0 + $0x7] sm:$0xff]  ;;  %1663 = vmatpush3.bf16.msra.mxu0 %v2046_v2  ;;  %v49_v6 = vpack.c.bf16 %v41_v4, %v40_v3  ;;  %v483_v7 = vld [vmem:[%s2708_s0 + $0xf] sm:$0xff]  ;;  %v484_v12 = vld [vmem:[%s2708_s0 + $0x17] sm:$0xff]  ;;  %v50_v14 = vpack.c.bf16 %v43_v11, %v42_v10 }
   0x4   :  { %1596 = vmatprep.subr.bf16.mxu1 %v2056_v0  ;;  %v491_v8 = vpack.c.bf16 %v483_v7, %v482_v5  ;;  %1684 = vmatprep.subr.bf16.mxu0 %v2056_v0  ;;  %v2047_v9 = vld [vmem:[%s2707_s1 + $0x28] sm:$0xff]   ;;  %v485_v13 = vld [vmem:[%s2708_s0 + $0x1f] sm:$0xff]  ;;  %v46_v23 = vld [vmem:[%s2708_s0 + $0x31] sm:$0xff] }
   0x5   :  { %v2048_v15 = vld [vmem:[%s2707_s1] sm:$0xff]   ;;  %v492_v16 = vpack.c.bf16 %v485_v13, %v484_v12  ;;  %v45_v18 = vld [vmem:[%s2708_s0 + $0x29] sm:$0xff]  ;;  %v488_v25 = vld [vmem:[%s2708_s0 + $0x37] sm:$0xff]  ;;  %2043 = vset.pattern.permute.xlu0 %v2058_v53  ;;  %2044 = vset.pattern.permute.xlu1 %v2058_v53 }
   0x6   :  { %1577 = vmatmul.mubr.msk.bf16.vlgmr.msra.gmra.mrb[0].mxu1 %vm63_vm1, %v49_v6  ;;  %1665 = vmatmul.mubr.msk.bf16.vlgmr.msra.gmra.mrb[0].mxu0 %vm63_vm1, %v491_v8  ;;  %v44_v17 = vld [vmem:[%s2708_s0 + $0x21] sm:$0xff]  ;;  %v487_v20 = vld [vmem:[%s2708_s0 + $0x2f] sm:$0xff]  ;;  %v47_v24 = vld [vmem:[%s2708_s0 + $0x39] sm:$0xff] }
   0x7   :  { %1580 = vmatprep.mubr.msk.bf16.mxu1 %vm2057_vm0, %v2056_v0  ;;  %1685 = vmatpush3.bf16.msra.mxu0 %v2047_v9  ;;  %v486_v19 = vld [vmem:[%s2708_s0 + $0x27] sm:$0xff]  ;;  %v51_v21 = vpack.c.bf16 %v45_v18, %v44_v17  ;;  %v489_v26 = vld [vmem:[%s2708_s0 + $0x3f] sm:$0xff]  ;;  %v52_v27 = vpack.c.bf16 %v47_v24, %v46_v23  ;;  %v602_v35 = vld [vmem:[%s2708_s0 + $0x10] sm:$0xff] }
   0x8   :  { %1668 = vmatprep.mubr.msk.bf16.mxu0 %vm2057_vm0, %v2056_v0  ;;  %1706 = vmatprep.subr.bf16.mxu0 %v2056_v0  ;;  %v493_v22 = vpack.c.bf16 %v487_v20, %v486_v19  ;;  %v494_v28 = vpack.c.bf16 %v489_v26, %v488_v25  ;;  %v48_v29 = vld [vmem:[%s2708_s0 + $0x41] sm:$0xff]  ;;  %v2049_v38 = vld [vmem:[%s2707_s1 + $0x30] sm:$0xff]   ;;  %v27_v40 = vld [vmem:[%s2708_s0 + $0x18] sm:$0xff] }
   0x9   :  { %1597 = vmatpush3.bf16.msra.mxu1 %v2048_v15  ;;  %v490_v30 = vld [vmem:[%s2708_s0 + $0x47] sm:$0xff]  ;;  %v53_v31 = vpack.c.bf16 %v48_v29, %v48_v29  ;;  %v2050_v39 = vld [vmem:[%s2707_s1 + $0x10] sm:$0xff]   ;;  %v34_v42 = vpack.c.bf16 %v27_v40, %v602_v35  ;;  %v31_v48 = vld [vmem:[%s2708_s0 + $0x38] sm:$0xff] }
   0xa   :  { %1618 = vmatprep.subr.bf16.mxu1 %v2056_v0  ;;  %v495_v32 = vpack.c.bf16 %v490_v30, %v490_v30  ;;  %v24_v33 = vld [vmem:[%s2708_s0] sm:$0xff]  ;;  %v25_v34 = vld [vmem:[%s2708_s0 + $0x8] sm:$0xff]  ;;  %v606_v45 = vld [vmem:[%s2708_s0 + $0x30] sm:$0xff] }
   0xb   :  { %v33_v36 = vpack.c.bf16 %v25_v34, %v24_v33  ;;  %v610_v37 = vpack.c.bf16 %v602_v35, %v25_v34  ;;  %v604_v41 = vld [vmem:[%s2708_s0 + $0x20] sm:$0xff]  ;;  %v29_v44 = vld [vmem:[%s2708_s0 + $0x28] sm:$0xff]  ;;  %v36_v50 = vpack.c.bf16 %v31_v48, %v606_v45  ;;  %v1079_v55 = vld [vmem:[%s2709_s5 + $0x10] sm:$0xff] }
   0xc   :  { %v611_v43 = vpack.c.bf16 %v604_v41, %v27_v40  ;;  %v35_v46 = vpack.c.bf16 %v29_v44, %v604_v41  ;;  %v612_v47 = vpack.c.bf16 %v606_v45, %v29_v44  ;;  %v608_v49 = vld [vmem:[%s2708_s0 + $0x40] sm:$0xff]  ;;  %v609_v52 = vld [vmem:[%s2708_s0 + $0x48] sm:$0xff]  ;;  %1098 = vperm.xlu1 %2044, %v1079_v55   ;;  %v1080_v59 = vld [vmem:[%s2709_s5 + $0x18] sm:$0xff] }
   0xd   :  { %v613_v51 = vpack.c.bf16 %v608_v49, %v31_v48  ;;  %v1077_v54 = vld [vmem:[%s2709_s5] sm:$0xff]  ;;  %v37_v56 = vpack.c.bf16 %v608_v49, %v608_v49  ;;  %v1078_v57 = vld [vmem:[%s2709_s5 + $0x8] sm:$0xff]  ;;  %v614_v58 = vpack.c.bf16 %v609_v52, %v609_v52  ;;  %v721_v2 = vld [vmem:[%s2708_s0 + $0x14] sm:$0xff] }
   0xe   :  { %1581 = vmatmul.mubr.msk.bf16.gmra.mrb[4].mxu1 %vm63_vm1, %v50_v14  ;;  %1669 = vmatmul.mubr.msk.bf16.gmra.mrb[4].mxu0 %vm63_vm1, %v492_v16  ;;  %v1081_v60 = vld [vmem:[%s2709_s5 + $0x20] sm:$0xff]  ;;  %v245_v62 = vld [vmem:[%s2708_s0 + $0xa] sm:$0xff]  ;;  %v1084_v6 = vld [vmem:[%s2709_s5 + $0x38] sm:$0xff] }
   0xf   :  { %1584 = vmatprep.mubr.msk.bf16.mxu1 %vm2057_vm0, %v2056_v0  ;;  %1672 = vmatprep.mubr.msk.bf16.mxu0 %vm2057_vm0, %v2056_v0  ;;  %v244_v61 = vld [vmem:[%s2708_s0 + $0x2] sm:$0xff]  ;;  %v720_v1 = vld [vmem:[%s2708_s0 + $0xc] sm:$0xff]  ;;  %v2051_v7 = vld [vmem:[%s2707_s1 + $0x38] sm:$0xff]  }
  0x10   :  { %1088 = vperm.xlu0 %2043, %v1077_v54   ;;  %1103 = vperm.xlu1 %2044, %v1080_v59   ;;  %v1082_v63 = vld [vmem:[%s2709_s5 + $0x28] sm:$0xff]  ;;  %v253_v3 = vpack.c.bf16 %v245_v62, %v244_v61  ;;  %v1083_v4 = vld [vmem:[%s2709_s5 + $0x30] sm:$0xff]  ;;  %v729_v5 = vpack.c.bf16 %v721_v2, %v720_v1  ;;  %v2052_v8 = vld [vmem:[%s2707_s1 + $0x18] sm:$0xff]  }
  0x11   :  { %v246_v9 = vld [vmem:[%s2708_s0 + $0x12] sm:$0xff]  ;;  %v247_v10 = vld [vmem:[%s2708_s0 + $0x1a] sm:$0xff]  ;;  %v723_v13 = vld [vmem:[%s2708_s0 + $0x24] sm:$0xff] }
  0x12   :  { %v1085_v11 = vld [vmem:[%s2709_s5 + $0x40] sm:$0xff]  ;;  %v254_v14 = vpack.c.bf16 %v247_v10, %v246_v9  ;;  %v249_v17 = vld [vmem:[%s2708_s0 + $0x2a] sm:$0xff]  ;;  %v725_v19 = vld [vmem:[%s2708_s0 + $0x34] sm:$0xff] }
  0x13   :  { %v722_v12 = vld [vmem:[%s2708_s0 + $0x1c] sm:$0xff]  ;;  %v724_v18 = vld [vmem:[%s2708_s0 + $0x2c] sm:$0xff]  ;;  %v727_v25 = vld [vmem:[%s2708_s0 + $0x44] sm:$0xff] }
  0x14   :  { %1093 = vperm.xlu0 %2043, %v1078_v57   ;;  %1113 = vperm.xlu1 %2044, %v1082_v63   ;;  %v730_v15 = vpack.c.bf16 %v723_v13, %v722_v12  ;;  %v248_v16 = vld [vmem:[%s2708_s0 + $0x22] sm:$0xff]  ;;  %v251_v23 = vld [vmem:[%s2708_s0 + $0x3a] sm:$0xff]  ;;  %v728_v29 = vld [vmem:[%s2708_s0 + $0x4c] sm:$0xff] }
  0x15   :  { %v255_v20 = vpack.c.bf16 %v249_v17, %v248_v16  ;;  %v726_v24 = vld [vmem:[%s2708_s0 + $0x3c] sm:$0xff]  ;;  %v364_v33 = vld [vmem:[%s2708_s0 + $0xe] sm:$0xff]  ;;  %v367_v45 = vld [vmem:[%s2708_s0 + $0x26] sm:$0xff] }
  0x16   :  { %1585 = vmatmul.mubr.msk.bf16.gmra.mrb[8].mxu1 %vm63_vm1, %v51_v21  ;;  %1673 = vmatmul.mubr.msk.bf16.gmra.mrb[8].mxu0 %vm63_vm1, %v493_v22  ;;  %v731_v21 = vpack.c.bf16 %v725_v19, %v724_v18  ;;  %v250_v22 = vld [vmem:[%s2708_s0 + $0x32] sm:$0xff]  ;;  %v366_v40 = vld [vmem:[%s2708_s0 + $0x1e] sm:$0xff]  ;;  %v371_v57 = vld [vmem:[%s2708_s0 + $0x46] sm:$0xff] }
  0x17   :  { %1588 = vmatprep.mubr.msk.bf16.mxu1 %vm2057_vm0, %v2056_v0  ;;  %1676 = vmatprep.mubr.msk.bf16.mxu0 %vm2057_vm0, %v2056_v0  ;;  %v256_v26 = vpack.c.bf16 %v251_v23, %v250_v22  ;;  %v839_v34 = vld [vmem:[%s2708_s0 + $0xd] sm:$0xff]  ;;  %v840_v35 = vld [vmem:[%s2708_s0 + $0x15] sm:$0xff]  ;;  %v841_v41 = vld [vmem:[%s2708_s0 + $0x1d] sm:$0xff]  ;;  %v376_v59 = vpack.c.bf16 %v371_v57, %v371_v57  ;;  %v968_v62 = vpack.c.bf16 %v367_v45, %v366_v40 }
  0x18   :  { %1108 = vperm.xlu0 %2043, %v1081_v60   ;;  %1123 = vperm.xlu1 %2044, %v1084_v6   ;;  %v844_v48 = vld [vmem:[%s2708_s0 + $0x35] sm:$0xff]  ;;  %v370_v52 = vld [vmem:[%s2708_s0 + $0x3e] sm:$0xff]  ;;  %v1155_v6 = vld [vmem:[%s2710_s2 + $0x8] sm:$0xff] }
  0x19   :  { %v845_v53 = vld [vmem:[%s2708_s0 + $0x3d] sm:$0xff]  ;;  %v846_v54 = vld [vmem:[%s2708_s0 + $0x45] sm:$0xff]  ;;  %v970_v1 = vpack.c.bf16 %v371_v57, %v370_v52  ;;  %v966_v2 = vld [vmem:[%s2708_s0 + $0x4e] sm:$0xff] }
  0x1a   :  { %v1157_v9 = vld [vmem:[%s2710_s2 + $0x18] sm:$0xff]  ;;  %v1159_v12 = vld [vmem:[%s2710_s2 + $0x28] sm:$0xff]  ;;  %v1162_v17 = vld [vmem:[%s2710_s2 + $0x40] sm:$0xff] }
  0x1b   :  { %v1163_v18 = vld [vmem:[%s2710_s2 + $0x48] sm:$0xff]  ;;  %v1166_v23 = vld [vmem:[%s2710_s2 + $0x60] sm:$0xff] }
  0x1c   :  { %1118 = vperm.xlu0 %2043, %v1083_v4   ;;  %v2059_v4 = vmov 0.0|0.0   ;;  %v2537_v19 = vpack.c.bf16 %v1163_v18, %v1162_v17 }
  0x1e   :  { %1589 = vmatmul.mubr.msk.bf16.gmra.mrb[12].mxu1 %vm63_vm1, %v52_v27  ;;  %1677 = vmatmul.mubr.msk.bf16.gmra.mrb[12].mxu0 %vm63_vm1, %v494_v28  ;;  %v732_v27 = vpack.c.bf16 %v727_v25, %v726_v24  ;;  %v252_v28 = vld [vmem:[%s2708_s0 + $0x42] sm:$0xff] }
  0x1f   :  { %1592 = vmatprep.mubr.msk.bf16.mxu1 %vm2057_vm0, %v2056_v0  ;;  %1680 = vmatprep.mubr.msk.bf16.mxu0 %vm2057_vm0, %v2056_v0  ;;  %v257_v30 = vpack.c.bf16 %v252_v28, %v252_v28  ;;  %v1167_v24 = vld [vmem:[%s2710_s2 + $0x68] sm:$0xff] }
  0x20   :  { %1128 = vperm.xlu0 %2043, %v1085_v11   ;;  %v1158_v11 = vld [vmem:[%s2710_s2 + $0x20] sm:$0xff]  ;;  %v2557_v25 = vpack.c.bf16 %v1167_v24, %v1166_v23 }
  0x21   :  { %v2516_v13 = vpack.c.bf16 %v1159_v12, %v1158_v11 }
  0x26   :  { %1593 = vmatmul.mubr.msk.bf16.gmra.mrb[16].mxu1 %vm63_vm1, %v53_v31  ;;  %1681 = vmatmul.mubr.msk.bf16.gmra.mrb[16].mxu0 %vm63_vm1, %v495_v32  ;;  %v733_v31 = vpack.c.bf16 %v728_v29, %v728_v29  ;;  %v363_v32 = vld [vmem:[%s2708_s0 + $0x6] sm:$0xff] }
  0x27   :  { %1598 = vmatprep.mubr.msk.bf16.mxu1 %vm2057_vm0, %v2056_v0  ;;  %1686 = vmatprep.mubr.msk.bf16.mxu0 %vm2057_vm0, %v2056_v0 }
  0x2e   :  { %1599 = vmatmul.mubr.msk.bf16.vlgmr.msra.gmra.mrb[0].mxu1 %vm63_vm1, %v33_v36  ;;  %1687 = vmatmul.mubr.msk.bf16.vlgmr.msra.gmra.mrb[0].mxu0 %vm63_vm1, %v610_v37  ;;  %v372_v36 = vpack.c.bf16 %v364_v33, %v363_v32  ;;  %v848_v37 = vpack.c.bf16 %v840_v35, %v839_v34 }
  0x2f   :  { %1602 = vmatprep.mubr.msk.bf16.mxu1 %vm2057_vm0, %v2056_v0  ;;  %1707 = vmatpush3.bf16.msra.mxu0 %v2049_v38  ;;  %v2053_v38 = vld [vmem:[%s2707_s1 + $0x40] sm:$0xff]  }
  0x30   :  { %1690 = vmatprep.mubr.msk.bf16.mxu0 %vm2057_vm0, %v2056_v0  ;;  %1619 = vmatpush3.bf16.msra.mxu1 %v2050_v39  ;;  %v365_v39 = vld [vmem:[%s2708_s0 + $0x16] sm:$0xff] }
  0x31   :  { %1728 = vmatprep.subr.bf16.mxu0 %v2056_v0  ;;  %1640 = vmatprep.subr.bf16.mxu1 %v2056_v0  ;;  %v967_v61 = vpack.c.bf16 %v365_v39, %v364_v33 }
  0x36   :  { %1603 = vmatmul.mubr.msk.bf16.gmra.mrb[4].mxu1 %vm63_vm1, %v34_v42  ;;  %1691 = vmatmul.mubr.msk.bf16.gmra.mrb[4].mxu0 %vm63_vm1, %v611_v43  ;;  %v842_v42 = vld [vmem:[%s2708_s0 + $0x25] sm:$0xff]  ;;  %v373_v43 = vpack.c.bf16 %v366_v40, %v365_v39 }
  0x37   :  { %1606 = vmatprep.mubr.msk.bf16.mxu1 %vm2057_vm0, %v2056_v0  ;;  %1694 = vmatprep.mubr.msk.bf16.mxu0 %vm2057_vm0, %v2056_v0  ;;  %v849_v44 = vpack.c.bf16 %v842_v42, %v841_v41 }
  0x3e   :  { %1607 = vmatmul.mubr.msk.bf16.gmra.mrb[8].mxu1 %vm63_vm1, %v35_v46  ;;  %1695 = vmatmul.mubr.msk.bf16.gmra.mrb[8].mxu0 %vm63_vm1, %v612_v47  ;;  %v368_v46 = vld [vmem:[%s2708_s0 + $0x2e] sm:$0xff] }
  0x3f   :  { %1610 = vmatprep.mubr.msk.bf16.mxu1 %vm2057_vm0, %v2056_v0  ;;  %1698 = vmatprep.mubr.msk.bf16.mxu0 %vm2057_vm0, %v2056_v0  ;;  %v843_v47 = vld [vmem:[%s2708_s0 + $0x2d] sm:$0xff]  ;;  %v374_v49 = vpack.c.bf16 %v368_v46, %v367_v45 }
  0x46   :  { %1611 = vmatmul.mubr.msk.bf16.gmra.mrb[12].mxu1 %vm63_vm1, %v36_v50  ;;  %1699 = vmatmul.mubr.msk.bf16.gmra.mrb[12].mxu0 %vm63_vm1, %v613_v51  ;;  %v850_v50 = vpack.c.bf16 %v844_v48, %v843_v47  ;;  %v369_v51 = vld [vmem:[%s2708_s0 + $0x36] sm:$0xff] }
  0x47   :  { %1614 = vmatprep.mubr.msk.bf16.mxu1 %vm2057_vm0, %v2056_v0  ;;  %1702 = vmatprep.mubr.msk.bf16.mxu0 %vm2057_vm0, %v2056_v0  ;;  %v375_v55 = vpack.c.bf16 %v370_v52, %v369_v51  ;;  %v969_v63 = vpack.c.bf16 %v369_v51, %v368_v46 }
  0x4e   :  { %1615 = vmatmul.mubr.msk.bf16.gmra.mrb[16].mxu1 %vm63_vm1, %v37_v56  ;;  %1703 = vmatmul.mubr.msk.bf16.gmra.mrb[16].mxu0 %vm63_vm1, %v614_v58  ;;  %v851_v56 = vpack.c.bf16 %v846_v54, %v845_v53  ;;  %v847_v58 = vld [vmem:[%s2708_s0 + $0x4d] sm:$0xff] }
  0x4f   :  { %1620 = vmatprep.mubr.msk.bf16.mxu1 %vm2057_vm0, %v2056_v0  ;;  %1708 = vmatprep.mubr.msk.bf16.mxu0 %vm2057_vm0, %v2056_v0  ;;  %v852_v60 = vpack.c.bf16 %v847_v58, %v847_v58 }
  0x56   :  { %1621 = vmatmul.mubr.msk.bf16.vlgmr.msra.gmra.mrb[0].mxu1 %vm63_vm1, %v253_v3  ;;  %1709 = vmatmul.mubr.msk.bf16.vlgmr.msra.gmra.mrb[0].mxu0 %vm63_vm1, %v729_v5  ;;  %v971_v3 = vpack.c.bf16 %v966_v2, %v966_v2  ;;  %v1154_v5 = vld [vmem:[%s2710_s2] sm:$0xff] }
  0x57   :  { %1624 = vmatprep.mubr.msk.bf16.mxu1 %vm2057_vm0, %v2056_v0  ;;  %1729 = vmatpush3.bf16.msra.mxu0 %v2051_v7  ;;  %v2497_v7 = vpack.c.bf16 %v1155_v6, %v1154_v5 }
  0x58   :  { %1712 = vmatprep.mubr.msk.bf16.mxu0 %vm2057_vm0, %v2056_v0  ;;  %1641 = vmatpush3.bf16.msra.mxu1 %v2052_v8  ;;  %v1156_v8 = vld [vmem:[%s2710_s2 + $0x10] sm:$0xff] }
  0x59   :  { %1750 = vmatprep.subr.bf16.mxu0 %v2056_v0  ;;  %1842 = vmatprep.subr.bf16.mxu1 %v2059_v4  ;;  %v2507_v10 = vpack.c.bf16 %v1157_v9, %v1156_v8 }
  0x5e   :  { %1625 = vmatmul.mubr.msk.bf16.gmra.mrb[4].mxu1 %vm63_vm1, %v254_v14  ;;  %1713 = vmatmul.mubr.msk.bf16.gmra.mrb[4].mxu0 %vm63_vm1, %v730_v15  ;;  %v1160_v14 = vld [vmem:[%s2710_s2 + $0x30] sm:$0xff]  ;;  %v1161_v15 = vld [vmem:[%s2710_s2 + $0x38] sm:$0xff] }
  0x5f   :  { %1628 = vmatprep.mubr.msk.bf16.mxu1 %vm2057_vm0, %v2056_v0  ;;  %1716 = vmatprep.mubr.msk.bf16.mxu0 %vm2057_vm0, %v2056_v0  ;;  %v2527_v16 = vpack.c.bf16 %v1161_v15, %v1160_v14 }
  0x66   :  { %1629 = vmatmul.mubr.msk.bf16.gmra.mrb[8].mxu1 %vm63_vm1, %v255_v20  ;;  %1717 = vmatmul.mubr.msk.bf16.gmra.mrb[8].mxu0 %vm63_vm1, %v731_v21  ;;  %v1164_v20 = vld [vmem:[%s2710_s2 + $0x50] sm:$0xff]  ;;  %v1165_v21 = vld [vmem:[%s2710_s2 + $0x58] sm:$0xff] }
  0x67   :  { %1632 = vmatprep.mubr.msk.bf16.mxu1 %vm2057_vm0, %v2056_v0  ;;  %1720 = vmatprep.mubr.msk.bf16.mxu0 %vm2057_vm0, %v2056_v0  ;;  %v2547_v22 = vpack.c.bf16 %v1165_v21, %v1164_v20 }
  0x6e   :  { %1633 = vmatmul.mubr.msk.bf16.gmra.mrb[12].mxu1 %vm63_vm1, %v256_v26  ;;  %1721 = vmatmul.mubr.msk.bf16.gmra.mrb[12].mxu0 %vm63_vm1, %v732_v27  ;;  %v1168_v26 = vld [vmem:[%s2710_s2 + $0x70] sm:$0xff]  ;;  %v1169_v27 = vld [vmem:[%s2710_s2 + $0x78] sm:$0xff] }
  0x6f   :  { %1636 = vmatprep.mubr.msk.bf16.mxu1 %vm2057_vm0, %v2056_v0  ;;  %1724 = vmatprep.mubr.msk.bf16.mxu0 %vm2057_vm0, %v2056_v0  ;;  %v2567_v28 = vpack.c.bf16 %v1169_v27, %v1168_v26 }
  0x76   :  { %1637 = vmatmul.mubr.msk.bf16.gmra.mrb[16].mxu1 %vm63_vm1, %v257_v30  ;;  %1725 = vmatmul.mubr.msk.bf16.gmra.mrb[16].mxu0 %vm63_vm1, %v733_v31 }
  0x77   :  { %1642 = vmatprep.mubr.msk.bf16.mxu1 %vm2057_vm0, %v2056_v0  ;;  %1730 = vmatprep.mubr.msk.bf16.mxu0 %vm2057_vm0, %v2056_v0 }
  0x7e   :  { %1643 = vmatmul.mubr.msk.bf16.vlgmr.msra.gmra.mrb[0].mxu1 %vm63_vm1, %v372_v36  ;;  %1731 = vmatmul.mubr.msk.bf16.vlgmr.msra.gmra.mrb[0].mxu0 %vm63_vm1, %v848_v37 }
  0x7f   :  { %1646 = vmatprep.mubr.msk.bf16.mxu1 %vm2057_vm0, %v2056_v0  ;;  %1751 = vmatpush3.bf16.msra.mxu0 %v2053_v38 }
  0x80   :  { %1734 = vmatprep.mubr.msk.bf16.mxu0 %vm2057_vm0, %v2056_v0  ;;  %1844 = vmatpush3.bf16.msra.mxu1 %v2497_v7 }
  0x81   :  { %1845 = vmatprep.subr.bf16.mxu1 %v2059_v4 }
  0x84   :  { %1847 = vmatpush3.bf16.msra.mxu1 %v2507_v10 }
  0x85   :  { %1848 = vmatprep.subr.bf16.mxu1 %v2059_v4 }
  0x86   :  { %1647 = vmatmul.mubr.msk.bf16.gmra.mrb[4].mxu1 %vm63_vm1, %v373_v43  ;;  %1735 = vmatmul.mubr.msk.bf16.gmra.mrb[4].mxu0 %vm63_vm1, %v849_v44 }
  0x87   :  { %1650 = vmatprep.mubr.msk.bf16.mxu1 %vm2057_vm0, %v2056_v0  ;;  %1738 = vmatprep.mubr.msk.bf16.mxu0 %vm2057_vm0, %v2056_v0 }
  0x88   :  { %1850 = vmatpush3.bf16.msra.mxu1 %v2516_v13 }
  0x89   :  { %1851 = vmatprep.subr.bf16.mxu1 %v2059_v4 }
  0x8c   :  { %1853 = vmatpush3.bf16.msra.mxu1 %v2527_v16 }
  0x8d   :  { %1854 = vmatprep.subr.bf16.mxu1 %v2059_v4 }
  0x8e   :  { %1651 = vmatmul.mubr.msk.bf16.gmra.mrb[8].mxu1 %vm63_vm1, %v374_v49  ;;  %1739 = vmatmul.mubr.msk.bf16.gmra.mrb[8].mxu0 %vm63_vm1, %v850_v50 }
  0x8f   :  { %1654 = vmatprep.mubr.msk.bf16.mxu1 %vm2057_vm0, %v2056_v0  ;;  %1742 = vmatprep.mubr.msk.bf16.mxu0 %vm2057_vm0, %v2056_v0  ;;  %v2573_v53 = vpop.permute.xlu0 %1088 }
  0x90   :  { %1856 = vmatpush3.bf16.msra.mxu1 %v2537_v19 }
  0x91   :  { %1857 = vmatprep.subr.bf16.mxu1 %v2059_v4 }
  0x93   :  { %v2577_v57 = vpop.permute.xlu0 %1093 }
  0x94   :  { %1859 = vmatpush3.bf16.msra.mxu1 %v2547_v22 }
  0x95   :  { %1860 = vmatprep.subr.bf16.mxu1 %v2059_v4 }
  0x96   :  { %1655 = vmatmul.mubr.msk.bf16.gmra.mrb[12].mxu1 %vm63_vm1, %v375_v55  ;;  %1743 = vmatmul.mubr.msk.bf16.gmra.mrb[12].mxu0 %vm63_vm1, %v851_v56 }
  0x97   :  { %1658 = vmatprep.mubr.msk.bf16.mxu1 %vm2057_vm0, %v2056_v0  ;;  %1746 = vmatprep.mubr.msk.bf16.mxu0 %vm2057_vm0, %v2056_v0  ;;  %v2599_v20 = vpop.permute.xlu0 %1108 }
  0x98   :  { %1862 = vmatpush3.bf16.msra.mxu1 %v2557_v25 }
  0x99   :  { %1863 = vmatprep.subr.bf16.mxu1 %v2059_v4 }
  0x9c   :  { %1865 = vmatpush3.bf16.msra.mxu1 %v2567_v28 }
  0x9d   :  { %1866 = vmatprep.subr.bf16.mxu1 %v2059_v4 }
  0x9e   :  { %1659 = vmatmul.mubr.msk.bf16.gmra.mrb[16].mxu1 %vm63_vm1, %v376_v59  ;;  %1747 = vmatmul.mubr.msk.bf16.gmra.mrb[16].mxu0 %vm63_vm1, %v852_v60  ;;  %v2581_v60 = vpop.permute.xlu1 %1098 }
  0x9f   :  { %1804 = vmatprep.mubr.msk.f32.mxu1 %vm2057_vm0, %v2056_v0  ;;  %1752 = vmatprep.mubr.msk.bf16.mxu0 %vm2057_vm0, %v2056_v0 }
  0xa2   :  { %v2591_v5 = vpop.permute.xlu1 %1103 }
  0xa6   :  { %1753 = vmatmul.mubr.msk.bf16.vlgmr.msra.gmra.mrb[0].mxu0 %vm63_vm1, %v967_v61  ;;  %v2603_v24 = vpop.permute.xlu1 %1113 }
  0xa7   :  { %1756 = vmatprep.mubr.msk.bf16.mxu0 %vm2057_vm0, %v2056_v0 }
  0xae   :  { %1757 = vmatmul.mubr.msk.bf16.gmra.mrb[4].mxu0 %vm63_vm1, %v968_v62 }
  0xaf   :  { %1760 = vmatprep.mubr.msk.bf16.mxu0 %vm2057_vm0, %v2056_v0 }
  0xb6   :  { %1761 = vmatmul.mubr.msk.bf16.gmra.mrb[8].mxu0 %vm63_vm1, %v969_v63 }
  0xb7   :  { %1764 = vmatprep.mubr.msk.bf16.mxu0 %vm2057_vm0, %v2056_v0 }
  0xbe   :  { %1765 = vmatmul.mubr.msk.bf16.gmra.mrb[12].mxu0 %vm63_vm1, %v970_v1 }
  0xbf   :  { %1768 = vmatprep.mubr.msk.bf16.mxu0 %vm2057_vm0, %v2056_v0 }
  0xc6   :  { %1769 = vmatmul.mubr.msk.bf16.gmra.mrb[16].mxu0 %vm63_vm1, %v971_v3 }
 0x151   :  { %v435_v29 = vpop.f32.mrb[0].mxu1 }
 0x152   :  { %v1644_v30 = vpop.f32.mrb[1].mxu1 }
 0x153   :  { %v438_v31 = vpop.f32.mrb[2].mxu1 }
 0x154   :  { %v1645_v32 = vpop.f32.mrb[3].mxu1 }
 0x155   :  { %v2609_v32 = vpop.permute.xlu0 %1118 }
 0x159   :  { %v443_v33 = vpop.f32.mrb[4].mxu1 }
 0x15a   :  { %v1648_v34 = vpop.f32.mrb[5].mxu1 }
 0x15b   :  { %v446_v35 = vpop.f32.mrb[6].mxu1 }
 0x15c   :  { %v1649_v36 = vpop.f32.mrb[7].mxu1 }
 0x161   :  { %v451_v37 = vpop.f32.mrb[8].mxu1 }
 0x162   :  { %v1652_v38 = vpop.f32.mrb[9].mxu1 }
 0x163   :  { %v454_v39 = vpop.f32.mrb[10].mxu1  ;;  %v2615_v38 = vpop.permute.xlu1 %1123 }
 0x164   :  { %v1653_v40 = vpop.f32.mrb[11].mxu1 }
 0x169   :  { %v459_v41 = vpop.f32.mrb[12].mxu1 }
 0x16a   :  { %v1656_v42 = vpop.f32.mrb[13].mxu1 }
 0x16b   :  { %v462_v43 = vpop.f32.mrb[14].mxu1 }
 0x16c   :  { %v1657_v44 = vpop.f32.mrb[15].mxu1 }
 0x171   :  { %v467_v45 = vpop.f32.mrb[16].mxu1 }
 0x172   :  { %v1660_v46 = vpop.f32.mrb[17].mxu1 }
 0x173   :  { %v470_v47 = vpop.f32.mrb[18].mxu1  ;;  %v2621_v46 = vpop.permute.xlu0 %1128 }
 0x174   :  { %v1661_v48 = vpop.f32.mrb[19].mxu1 }
 0x179   :  { %v1030_v49 = vpop.f32.mrb[0].mxu0 }
 0x17a   :  { %v2571_v50 = vadd.f32 %v1030_v49, %v435_v29  ;;  %v1754_v51 = vpop.f32.mrb[1].mxu0 }
 0x17b   :  { %v1033_v52 = vpop.f32.mrb[2].mxu0 }
 0x17c   :  { %v2575_v54 = vadd.f32 %v1033_v52, %v438_v31  ;;  %v1755_v55 = vpop.f32.mrb[3].mxu0  ;;  %v1131_v2 = vmul.f32 %v2571_v50, %v2573_v53 }
 0x17e   :  { %v1132_v1 = vmul.f32 %v2575_v54, %v2577_v57 }
 0x180   :  { %v1140_v8 = vadd.f32 %v1132_v1, %v1131_v2 }
 0x181   :  { %v1038_v56 = vpop.f32.mrb[4].mxu0 }
 0x182   :  { %v2579_v58 = vadd.f32 %v1038_v56, %v443_v33  ;;  %v1758_v59 = vpop.f32.mrb[5].mxu0 }
 0x183   :  { %v1041_v61 = vpop.f32.mrb[6].mxu0 }
 0x184   :  { %v2583_v62 = vadd.f32 %v1041_v61, %v446_v35  ;;  %v1759_v63 = vpop.f32.mrb[7].mxu0  ;;  %v1133_v3 = vmul.f32 %v2579_v58, %v2581_v60 }
 0x186   :  { %v1134_v14 = vmul.f32 %v2583_v62, %v2591_v5  ;;  %v1141_v15 = vadd.f32 %v1140_v8, %v1133_v3 }
 0x188   :  { %v1142_v23 = vadd.f32 %v1141_v15, %v1134_v14 }
 0x189   :  { %v1046_v6 = vpop.f32.mrb[8].mxu0 }
 0x18a   :  { %v2593_v9 = vadd.f32 %v1046_v6, %v451_v37  ;;  %v1762_v11 = vpop.f32.mrb[9].mxu0 }
 0x18b   :  { %v1049_v12 = vpop.f32.mrb[10].mxu0 }
 0x18c   :  { %v2597_v17 = vadd.f32 %v1049_v12, %v454_v39  ;;  %v1763_v18 = vpop.f32.mrb[11].mxu0  ;;  %v1135_v21 = vmul.f32 %v2593_v9, %v2599_v20 }
 0x18e   :  { %v1143_v27 = vadd.f32 %v1142_v23, %v1135_v21  ;;  %v1136_v29 = vmul.f32 %v2597_v17, %v2603_v24 }
 0x190   :  { %v1144_v37 = vadd.f32 %v1143_v27, %v1136_v29 }
 0x191   :  { %v1054_v26 = vpop.f32.mrb[12].mxu0 }
 0x192   :  { %v2607_v30 = vadd.f32 %v1054_v26, %v459_v41  ;;  %v1766_v31 = vpop.f32.mrb[13].mxu0 }
 0x193   :  { %v1057_v33 = vpop.f32.mrb[14].mxu0 }
 0x194   :  { %v1137_v34 = vmul.f32 %v2607_v30, %v2609_v32  ;;  %v2613_v35 = vadd.f32 %v1057_v33, %v462_v43  ;;  %v1767_v36 = vpop.f32.mrb[15].mxu0 }
 0x196   :  { %v1145_v39 = vadd.f32 %v1144_v37, %v1137_v34  ;;  %v1138_v40 = vmul.f32 %v2613_v35, %v2615_v38 }
 0x198   :  { %v1146_v48 = vadd.f32 %v1145_v39, %v1138_v40 }
 0x199   :  { %v1062_v42 = vpop.f32.mrb[16].mxu0 }
 0x19a   :  { %v2619_v41 = vadd.f32 %v1062_v42, %v467_v45  ;;  %v1770_v44 = vpop.f32.mrb[17].mxu0 }
 0x19b   :  { %v1065_v47 = vpop.f32.mrb[18].mxu0 }
 0x19c   :  { %v1139_v43 = vmul.f32 %v2619_v41, %v2621_v46  ;;  %v1771_v49 = vpop.f32.mrb[19].mxu0 }
 0x19e   :  { %v1147_v51 = vadd.f32 %v1146_v48, %v1139_v43 }
 0x1a0   :  { %v1148_v52 = vrot.slane %v1147_v51, 4 }
 0x1a2   :  { %v1149_v55 = vadd.f32 %v1148_v52, %v1147_v51 }
 0x1a4   :  { %v1150_v56 = vrot.slane %v1149_v55, 2 }
 0x1a6   :  { %v1151_v59 = vadd.f32 %v1150_v56, %v1149_v55 }
 0x1a8   :  { %v1152_v61 = vrot.slane %v1151_v59, 1 }
 0x1aa   :  { %v1153_v63 = vadd.f32 %v1152_v61, %v1151_v59 }
 0x1ac   :  { %1805 = vmatmul.mubr.f32.vlgmr.msra.gmra.mrb[20].mxu1 %v1153_v63 }
 0x1ad   :  { %1868 = vmatpush3.bf16.msra.mxu1 %v2497_v7  ;;  %1839 = vmatprep.mubr.msk.f32.mxu1 %vm2057_vm0, %v2056_v0  ;;  %v1241_v0 = vlaneseq }
 0x1ae   :  { %1869 = vmatprep.subr.bf16.mxu1 %v2059_v4 }
 0x1af   :  { %v1242_v7 = vshrl.u32 %v1241_v0, 7  ;;  %v1361_v0 = vld [vmem:[%s2712_s4] sm:$0x1] }
 0x1b1   :  { %1871 = vmatpush3.bf16.msra.mxu1 %v2507_v10  ;;  %v2642_v10 = vsub.s32 0, %v1242_v7 }
 0x1b2   :  { %1872 = vmatprep.subr.bf16.mxu1 %v2059_v4 }
 0x1b5   :  { %1874 = vmatpush3.bf16.msra.mxu1 %v2516_v13 }
 0x1b6   :  { %1875 = vmatprep.subr.bf16.mxu1 %v2059_v4 }
 0x1b9   :  { %1877 = vmatpush3.bf16.msra.mxu1 %v2527_v16 }
 0x1ba   :  { %1878 = vmatprep.subr.bf16.mxu1 %v2059_v4 }
 0x1bd   :  { %1880 = vmatpush3.bf16.msra.mxu1 %v2537_v19 }
 0x1be   :  { %1881 = vmatprep.subr.bf16.mxu1 %v2059_v4 }
 0x1c1   :  { %1883 = vmatpush3.bf16.msra.mxu1 %v2547_v22 }
 0x1c2   :  { %1884 = vmatprep.subr.bf16.mxu1 %v2059_v4 }
 0x1c5   :  { %1886 = vmatpush3.bf16.msra.mxu1 %v2557_v25 }
 0x1c6   :  { %1887 = vmatprep.subr.bf16.mxu1 %v2059_v4 }
 0x1c9   :  { %1889 = vmatpush3.bf16.msra.mxu1 %v2567_v28 }
 0x27f   :  { %v1236_v13 = vpop.f32.mrb[20].mxu1 }
 0x280   :  { %v1240_v16 = vmul.f32 0.0078125, %v1236_v13  ;;  %v1806_v45 = vpop.f32.mrb[21].mxu1 }
 0x282   :  { %v1244_v19 = vrot.slane %v1240_v16, %v2642_v10 }
 0x284   :  { %v1245_v1 = vsub.f32 %v2571_v50, %v1244_v19  ;;  %v1246_v22 = vsub.f32 %v2575_v54, %v1244_v19  ;;  %v1247_v2 = vsub.f32 %v2579_v58, %v1244_v19  ;;  %v1248_v25 = vsub.f32 %v2583_v62, %v1244_v19 }
 0x285   :  { %v1249_v4 = vsub.f32 %v2593_v9, %v1244_v19  ;;  %v1250_v8 = vsub.f32 %v2597_v17, %v1244_v19  ;;  %v1251_v15 = vsub.f32 %v2607_v30, %v1244_v19  ;;  %v1252_v26 = vsub.f32 %v2613_v35, %v1244_v19 }
 0x286   :  { %v1254_v28 = vmul.f32 %v1245_v1, %v2573_v53  ;;  %v1255_v3 = vmul.f32 %v1246_v22, %v2577_v57  ;;  %v1256_v6 = vmul.f32 %v1247_v2, %v2581_v60  ;;  %v1257_v11 = vmul.f32 %v1248_v25, %v2591_v5 }
 0x287   :  { %v1258_v18 = vmul.f32 %v1249_v4, %v2599_v20  ;;  %v1259_v53 = vmul.f32 %v1250_v8, %v2603_v24  ;;  %v1253_v60 = vsub.f32 %v2619_v41, %v1244_v19  ;;  %v1260_v29 = vmul.f32 %v1251_v15, %v2609_v32 }
 0x288   :  { %v1263_v12 = vmul.f32 %v1254_v28, %v1254_v28  ;;  %v1264_v14 = vmul.f32 %v1255_v3, %v1255_v3  ;;  %v1265_v21 = vmul.f32 %v1256_v6, %v1256_v6  ;;  %v1266_v27 = vmul.f32 %v1257_v11, %v1257_v11 }
 0x289   :  { %v1267_v31 = vmul.f32 %v1258_v18, %v1258_v18  ;;  %v1261_v33 = vmul.f32 %v1252_v26, %v2615_v38  ;;  %v1268_v34 = vmul.f32 %v1259_v53, %v1259_v53  ;;  %v1262_v20 = vmul.f32 %v1253_v60, %v2621_v46  ;;  %v1357_v46 = vld [vmem:[%s2711_s3] sm:$0x1] }
 0x28a   :  { %v1272_v23 = vadd.f32 %v1264_v14, %v1263_v12  ;;  %v1269_v37 = vmul.f32 %v1260_v29, %v1260_v29 }
 0x28b   :  { %v1270_v40 = vmul.f32 %v1261_v33, %v1261_v33  ;;  %v1271_v44 = vmul.f32 %v1262_v20, %v1262_v20 }
 0x28c   :  { %v1273_v57 = vadd.f32 %v1272_v23, %v1265_v21 }
 0x28e   :  { %v1274_v5 = vadd.f32 %v1273_v57, %v1266_v27 }
 0x290   :  { %v1275_v36 = vadd.f32 %v1274_v5, %v1267_v31 }
 0x292   :  { %v1276_v39 = vadd.f32 %v1275_v36, %v1268_v34 }
 0x294   :  { %v1277_v42 = vadd.f32 %v1276_v39, %v1269_v37 }
 0x296   :  { %v1278_v24 = vadd.f32 %v1277_v42, %v1270_v40 }
 0x298   :  { %v1279_v47 = vadd.f32 %v1278_v24, %v1271_v44 }
 0x29a   :  { %v1280_v48 = vrot.slane %v1279_v47, 4 }
 0x29c   :  { %v1281_v43 = vadd.f32 %v1280_v48, %v1279_v47 }
 0x29e   :  { %v1282_v49 = vrot.slane %v1281_v43, 2 }
 0x2a0   :  { %v1283_v51 = vadd.f32 %v1282_v49, %v1281_v43 }
 0x2a2   :  { %v1284_v32 = vrot.slane %v1283_v51, 1 }
 0x2a4   :  { %v1285_v52 = vadd.f32 %v1284_v32, %v1283_v51 }
 0x2a6   :  { %1840 = vmatmul.mubr.f32.vlgmr.msra.gmra.mrb[22].mxu1 %v1285_v52 }
 0x379   :  { %v1352_v55 = vpop.f32.mrb[22].mxu1 }
 0x37a   :  { %v1356_v38 = vmul.f32 0.0078125, %v1352_v55  ;;  %v1841_v56 = vpop.f32.mrb[23].mxu1 }
 0x37c   :  { %v1358_v59 = vadd.f32 1e-05, %v1356_v38 }
 0x37e   :  { %2054 = vrsqrt.f32 %v1358_v59 }
 0x388   :  { %v2055_v61 = vpop.eup %2054 }
 0x389   :  { %v1360_v63 = vmul.f32 %v2055_v61, %v1357_v46 }
 0x38b   :  { %v1362_v7 = vmul.f32 %v1360_v63, %v1240_v16  ;;  %v1368_v13 = vrot.slane %v1360_v63, %v2642_v10 }
 0x38d   :  { %v1363_v45 = vsub.f32 %v1361_v0, %v1362_v7  ;;  %v1370_v19 = vmul.f32 %v2571_v50, %v1368_v13  ;;  %v1371_v1 = vmul.f32 %v2575_v54, %v1368_v13  ;;  %v1372_v22 = vmul.f32 %v2579_v58, %v1368_v13 }
 0x38e   :  { %v1373_v2 = vmul.f32 %v2583_v62, %v1368_v13  ;;  %v1374_v25 = vmul.f32 %v2593_v9, %v1368_v13  ;;  %v1375_v28 = vmul.f32 %v2597_v17, %v1368_v13  ;;  %v1376_v3 = vmul.f32 %v2607_v30, %v1368_v13 }
 0x38f   :  { %v1383_v4 = vrot.slane %v1363_v45, %v2642_v10  ;;  %v1377_v16 = vmul.f32 %v2613_v35, %v1368_v13  ;;  %v1378_v6 = vmul.f32 %v2619_v41, %v1368_v13 }
 0x391   :  { %v1385_v8 = vadd.f32 %v1383_v4, %v1370_v19  ;;  %v1386_v50 = vadd.f32 %v1383_v4, %v1371_v1  ;;  %v1387_v11 = vadd.f32 %v1383_v4, %v1372_v22  ;;  %v1388_v54 = vadd.f32 %v1383_v4, %v1373_v2 }
 0x392   :  { %v1389_v12 = vadd.f32 %v1383_v4, %v1374_v25  ;;  %v1390_v58 = vadd.f32 %v1383_v4, %v1375_v28  ;;  %v1391_v14 = vadd.f32 %v1383_v4, %v1376_v3  ;;  %v1392_v62 = vadd.f32 %v1383_v4, %v1377_v16 }
 0x393   :  { %v1393_v15 = vadd.f32 %v1383_v4, %v1378_v6  ;;  %v1394_v9 = vmax.f32 %v1385_v8, 0.0  ;;  %v1395_v18 = vmax.f32 %v1386_v50, 0.0  ;;  %v1396_v10 = vmax.f32 %v1387_v11, 0.0 }
 0x394   :  { %v1397_v21 = vmax.f32 %v1388_v54, 0.0  ;;  %v1398_v17 = vmax.f32 %v1389_v12, 0.0  ;;  %v1399_v23 = vmax.f32 %v1390_v58, 0.0  ;;  %v1400_v30 = vmax.f32 %v1391_v14, 0.0 }
 0x395   :  { %v1401_v26 = vmax.f32 %v1392_v62, 0.0  ;;  %v1402_v35 = vmax.f32 %v1393_v15, 0.0  ;;  %1403 = vst [vmem:[%s2713_s6] sm:$0xff] %v1394_v9  ;;  %1404 = vst [vmem:[%s2713_s6 + $0x8] sm:$0xff] %v1395_v18 }
 0x396   :  { %1405 = vst [vmem:[%s2713_s6 + $0x10] sm:$0xff] %v1396_v10  ;;  %1406 = vst [vmem:[%s2713_s6 + $0x18] sm:$0xff] %v1397_v21 }
 0x397   :  { %1407 = vst [vmem:[%s2713_s6 + $0x20] sm:$0xff] %v1398_v17  ;;  %1408 = vst [vmem:[%s2713_s6 + $0x28] sm:$0xff] %v1399_v23 }
 0x398   :  { %1409 = vst [vmem:[%s2713_s6 + $0x30] sm:$0xff] %v1400_v30  ;;  %1410 = vst [vmem:[%s2713_s6 + $0x38] sm:$0xff] %v1401_v26 }
 0x399   :  { %1411 = vst [vmem:[%s2713_s6 + $0x40] sm:$0xff] %v1402_v35 }

// kernel: a_call__.5
= control target key start
LH: loop header
LB: loop body
LE: loop exit
PB: predicated region body
PF: predicated region fallthrough
CT: control target
= control target key end

     0   :  { %vm131_vm0 = vcmask 1043456   ;;  %v3384_v0 = vmov 0.0   ;;  %vm3385_vm1 = vmmov 0   ;;  %vm91_vm2 = vcmask 64512   ;;  %s4635_s1 = inlined_call_operand.vmem [shape: bf16[9,8,128], index: 1, kind: input, shape index: {}]   ;;  %s4636_s0 = inlined_call_operand.vmem [shape: f32[222,8], index: 0, kind: input, shape index: {}]   ;;  %s4637_s2 = inlined_call_operand.vmem [shape: f32[200,128], index: 2, kind: output, shape index: {}]  }
   0x1   :  { %2455 = vmatprep.subr.bf16.mxu1 %v3384_v0  ;;  %2671 = vmatprep.subr.bf16.mxu0 %v3384_v0  ;;  %v2204_v1 = vld [vmem:[%s4635_s1 + $0x4] sm:$0xf]  ;;  %v2259_v2 = vld [vmem:[%s4635_s1 + $0x10] sm:$0xf]  ;;  %v2273_v11 = vld [vmem:[%s4635_s1 + $0x14] sm:$0xf] }
   0x2   :  { %v51_v3 = vld [vmem:[%s4636_s0 + $0x1] sm:$0xff]  ;;  %v133_v4 = vsel %vm131_vm0, %v2204_v1, 0  ;;  %v3414_v5 = vsel %vm131_vm0, %v2259_v2, 0  ;;  %2457 = vmatprep.mubr.msk.bf16.mxu1 %vm3385_vm1, %v3384_v0  ;;  %2673 = vmatprep.mubr.msk.bf16.mxu0 %vm3385_vm1, %v3384_v0  ;;  %v52_v6 = vld [vmem:[%s4636_s0 + $0x9] sm:$0xff]  ;;  %v936_v8 = vld [vmem:[%s4636_s0 + $0x13] sm:$0xff]  ;;  %v1258_v12 = vsel %vm131_vm0, %v2273_v11, 0 }
   0x3   :  { %v935_v7 = vld [vmem:[%s4636_s0 + $0xb] sm:$0xff]  ;;  %2456 = vmatpush3.bf16.msra.mxu1 %v133_v4  ;;  %2672 = vmatpush3.bf16.msra.mxu0 %v3414_v5  ;;  %v76_v9 = vpack.c.bf16 %v52_v6, %v51_v3  ;;  %v50_v13 = vld [vmem:[%s4635_s1] sm:$0xf]  ;;  %v940_v24 = vld [vmem:[%s4636_s0 + $0x33] sm:$0xff] }
   0x4   :  { %v960_v10 = vpack.c.bf16 %v936_v8, %v935_v7  ;;  %2725 = vmatprep.subr.bf16.mxu0 %v3384_v0  ;;  %2509 = vmatprep.subr.bf16.mxu1 %v3384_v0  ;;  %v311_v14 = vsel %vm131_vm0, %v50_v13, 0  ;;  %v53_v15 = vld [vmem:[%s4636_s0 + $0x11] sm:$0xff]  ;;  %v54_v16 = vld [vmem:[%s4636_s0 + $0x19] sm:$0xff]  ;;  %v938_v18 = vld [vmem:[%s4636_s0 + $0x23] sm:$0xff] }
   0x5   :  { %v937_v17 = vld [vmem:[%s4636_s0 + $0x1b] sm:$0xff]  ;;  %v77_v19 = vpack.c.bf16 %v54_v16, %v53_v15  ;;  %v56_v22 = vld [vmem:[%s4636_s0 + $0x29] sm:$0xff]  ;;  %v57_v27 = vld [vmem:[%s4636_s0 + $0x31] sm:$0xff] }
   0x6   :  { %2458 = vmatmul.mubr.msk.bf16.vlgmr.msra.gmra.mrb[0].mxu1 %vm91_vm2, %v76_v9  ;;  %2674 = vmatmul.mubr.msk.bf16.vlgmr.msra.gmra.mrb[0].mxu0 %vm91_vm2, %v960_v10  ;;  %v961_v20 = vpack.c.bf16 %v938_v18, %v937_v17  ;;  %v55_v21 = vld [vmem:[%s4636_s0 + $0x21] sm:$0xff]  ;;  %v939_v23 = vld [vmem:[%s4636_s0 + $0x2b] sm:$0xff]  ;;  %v58_v28 = vld [vmem:[%s4636_s0 + $0x39] sm:$0xff] }
   0x7   :  { %2726 = vmatpush3.bf16.msra.mxu0 %v1258_v12  ;;  %2461 = vmatprep.mubr.msk.bf16.mxu1 %vm3385_vm1, %v3384_v0  ;;  %v78_v25 = vpack.c.bf16 %v56_v22, %v55_v21  ;;  %v962_v26 = vpack.c.bf16 %v940_v24, %v939_v23  ;;  %v941_v29 = vld [vmem:[%s4636_s0 + $0x3b] sm:$0xff]  ;;  %v942_v30 = vld [vmem:[%s4636_s0 + $0x43] sm:$0xff]  ;;  %v79_v31 = vpack.c.bf16 %v58_v28, %v57_v27  ;;  %v943_v35 = vld [vmem:[%s4636_s0 + $0x4b] sm:$0xff] }
   0x8   :  { %2677 = vmatprep.mubr.msk.bf16.mxu0 %vm3385_vm1, %v3384_v0  ;;  %2510 = vmatpush3.bf16.msra.mxu1 %v311_v14  ;;  %v963_v32 = vpack.c.bf16 %v942_v30, %v941_v29  ;;  %v59_v33 = vld [vmem:[%s4636_s0 + $0x41] sm:$0xff]  ;;  %v60_v34 = vld [vmem:[%s4636_s0 + $0x49] sm:$0xff]  ;;  %v944_v36 = vld [vmem:[%s4636_s0 + $0x53] sm:$0xff] }
   0x9   :  { %2779 = vmatprep.subr.bf16.mxu0 %v3384_v0  ;;  %2563 = vmatprep.subr.bf16.mxu1 %v3384_v0  ;;  %v80_v37 = vpack.c.bf16 %v60_v34, %v59_v33  ;;  %v964_v38 = vpack.c.bf16 %v944_v36, %v943_v35  ;;  %v3517_v39 = vld [vmem:[%s4636_s0 + $0x14] sm:$0xff]  ;;  %v3522_v40 = vld [vmem:[%s4636_s0 + $0x1c] sm:$0xff]  ;;  %v3547_v48 = vld [vmem:[%s4636_s0 + $0x24] sm:$0xff] }
   0xa   :  { %v1446_v41 = vpack.c.bf16 %v3522_v40, %v3517_v39  ;;  %v61_v42 = vld [vmem:[%s4636_s0 + $0x51] sm:$0xff]  ;;  %v62_v43 = vld [vmem:[%s4636_s0 + $0x59] sm:$0xff]  ;;  %v946_v45 = vld [vmem:[%s4636_s0 + $0x63] sm:$0xff]  ;;  %v1204_v11 = vpack.c.bf16 %v3547_v48, %v3522_v40 }
   0xb   :  { %v945_v44 = vld [vmem:[%s4636_s0 + $0x5b] sm:$0xff]  ;;  %v81_v46 = vpack.c.bf16 %v62_v43, %v61_v42  ;;  %v3552_v49 = vld [vmem:[%s4636_s0 + $0x2c] sm:$0xff]  ;;  %v3608_v3 = vld [vmem:[%s4636_s0 + $0x44] sm:$0xff] }
   0xc   :  { %v965_v47 = vpack.c.bf16 %v946_v45, %v945_v44  ;;  %v1447_v50 = vpack.c.bf16 %v3552_v49, %v3547_v48  ;;  %v63_v51 = vld [vmem:[%s4636_s0 + $0x61] sm:$0xff]  ;;  %v64_v52 = vld [vmem:[%s4636_s0 + $0x69] sm:$0xff]  ;;  %v948_v54 = vld [vmem:[%s4636_s0 + $0x73] sm:$0xff] }
   0xd   :  { %v947_v53 = vld [vmem:[%s4636_s0 + $0x6b] sm:$0xff]  ;;  %v82_v55 = vpack.c.bf16 %v64_v52, %v63_v51  ;;  %v3577_v57 = vld [vmem:[%s4636_s0 + $0x34] sm:$0xff]  ;;  %v3582_v58 = vld [vmem:[%s4636_s0 + $0x3c] sm:$0xff] }
   0xe   :  { %2462 = vmatmul.mubr.msk.bf16.gmra.mrb[4].mxu1 %vm91_vm2, %v77_v19  ;;  %2678 = vmatmul.mubr.msk.bf16.gmra.mrb[4].mxu0 %vm91_vm2, %v961_v20  ;;  %v966_v56 = vpack.c.bf16 %v948_v54, %v947_v53  ;;  %v1448_v59 = vpack.c.bf16 %v3582_v58, %v3577_v57  ;;  %v65_v60 = vld [vmem:[%s4636_s0 + $0x71] sm:$0xff]  ;;  %v66_v61 = vld [vmem:[%s4636_s0 + $0x79] sm:$0xff]  ;;  %v67_v8 = vld [vmem:[%s4636_s0 + $0x81] sm:$0xff]  ;;  %v1205_v18 = vpack.c.bf16 %v3577_v57, %v3552_v49 }
   0xf   :  { %2465 = vmatprep.mubr.msk.bf16.mxu1 %vm3385_vm1, %v3384_v0  ;;  %2681 = vmatprep.mubr.msk.bf16.mxu0 %vm3385_vm1, %v3384_v0  ;;  %v1178_v62 = vld [vmem:[%s4636_s0 + $0xc] sm:$0xff]  ;;  %v2287_v63 = vld [vmem:[%s4635_s1 + $0x18] sm:$0xf]  ;;  %v83_v1 = vpack.c.bf16 %v66_v61, %v65_v60  ;;  %v3641_v13 = vld [vmem:[%s4636_s0 + $0x5c] sm:$0xff] }
  0x10   :  { %v1203_v2 = vpack.c.bf16 %v3517_v39, %v1178_v62  ;;  %v3613_v4 = vld [vmem:[%s4636_s0 + $0x4c] sm:$0xff]  ;;  %v1501_v6 = vsel %vm131_vm0, %v2287_v63, 0  ;;  %v3636_v12 = vld [vmem:[%s4636_s0 + $0x54] sm:$0xff]  ;;  %v3662_v19 = vld [vmem:[%s4636_s0 + $0x64] sm:$0xff] }
  0x11   :  { %v1449_v7 = vpack.c.bf16 %v3613_v4, %v3608_v3  ;;  %v68_v9 = vld [vmem:[%s4636_s0 + $0x89] sm:$0xff]  ;;  %v1450_v14 = vpack.c.bf16 %v3641_v13, %v3636_v12  ;;  %v69_v15 = vld [vmem:[%s4636_s0 + $0x91] sm:$0xff]  ;;  %v70_v16 = vld [vmem:[%s4636_s0 + $0x99] sm:$0xff]  ;;  %v1208_v35 = vpack.c.bf16 %v3662_v19, %v3641_v13 }
  0x12   :  { %v84_v10 = vpack.c.bf16 %v68_v9, %v67_v8  ;;  %v85_v17 = vpack.c.bf16 %v70_v16, %v69_v15  ;;  %v3667_v20 = vld [vmem:[%s4636_s0 + $0x6c] sm:$0xff]  ;;  %v71_v22 = vld [vmem:[%s4636_s0 + $0xa1] sm:$0xff]  ;;  %v74_v30 = vld [vmem:[%s4636_s0 + $0xb9] sm:$0xff] }
  0x13   :  { %v1451_v21 = vpack.c.bf16 %v3667_v20, %v3662_v19  ;;  %v72_v23 = vld [vmem:[%s4636_s0 + $0xa9] sm:$0xff]  ;;  %v3693_v27 = vld [vmem:[%s4636_s0 + $0x7c] sm:$0xff]  ;;  %v73_v29 = vld [vmem:[%s4636_s0 + $0xb1] sm:$0xff] }
  0x14   :  { %v86_v24 = vpack.c.bf16 %v72_v23, %v71_v22  ;;  %v75_v33 = vld [vmem:[%s4636_s0 + $0xc1] sm:$0xff]  ;;  %v14_v45 = vld [vmem:[%s4636_s0 + $0x10] sm:$0xff]  ;;  %v19_v63 = vld [vmem:[%s4636_s0 + $0x38] sm:$0xff] }
  0x15   :  { %v88_v34 = vpack.c.bf16 %v75_v33, %v75_v33  ;;  %v12_v36 = vld [vmem:[%s4636_s0] sm:$0xff]  ;;  %v2231_v43 = vld [vmem:[%s4635_s1 + $0x8] sm:$0xf]  ;;  %v18_v62 = vld [vmem:[%s4636_s0 + $0x30] sm:$0xff] }
  0x16   :  { %2466 = vmatmul.mubr.msk.bf16.gmra.mrb[8].mxu1 %vm91_vm2, %v78_v25  ;;  %2682 = vmatmul.mubr.msk.bf16.gmra.mrb[8].mxu0 %vm91_vm2, %v962_v26  ;;  %v1206_v25 = vpack.c.bf16 %v3608_v3, %v3582_v58  ;;  %v3688_v26 = vld [vmem:[%s4636_s0 + $0x74] sm:$0xff]  ;;  %v529_v44 = vsel %vm131_vm0, %v2231_v43, 0  ;;  %v16_v53 = vld [vmem:[%s4636_s0 + $0x20] sm:$0xff]  ;;  %v17_v54 = vld [vmem:[%s4636_s0 + $0x28] sm:$0xff] }
  0x17   :  { %2469 = vmatprep.mubr.msk.bf16.mxu1 %vm3385_vm1, %v3384_v0  ;;  %2685 = vmatprep.mubr.msk.bf16.mxu0 %vm3385_vm1, %v3384_v0  ;;  %v1452_v28 = vpack.c.bf16 %v3693_v27, %v3688_v26  ;;  %v1209_v42 = vpack.c.bf16 %v3688_v26, %v3667_v20  ;;  %v39_v60 = vpack.c.bf16 %v17_v54, %v16_v53  ;;  %v20_v9 = vld [vmem:[%s4636_s0 + $0x40] sm:$0xff]  ;;  %v3828_v15 = vld [vmem:[%s4636_s0 + $0xb4] sm:$0xff]  ;;  %v33_v49 = vld [vmem:[%s4636_s0 + $0xa8] sm:$0xff] }
  0x18   :  { %v23_v22 = vld [vmem:[%s4636_s0 + $0x58] sm:$0xff]  ;;  %v28_v43 = vld [vmem:[%s4636_s0 + $0x80] sm:$0xff]  ;;  %v30_v40 = vld [vmem:[%s4636_s0 + $0x90] sm:$0xff] }
  0x19   :  { %v3847_v23 = vld [vmem:[%s4636_s0 + $0xbc] sm:$0xff]  ;;  %v34_v57 = vld [vmem:[%s4636_s0 + $0xb0] sm:$0xff] }
  0x1a   :  { %v32_v48 = vld [vmem:[%s4636_s0 + $0xa0] sm:$0xff]  ;;  %v35_v58 = vld [vmem:[%s4636_s0 + $0xb8] sm:$0xff] }
  0x1b   :  { %v36_v3 = vld [vmem:[%s4636_s0 + $0xc0] sm:$0xff]  ;;  %v3998_v20 = vld [vmem:[%s4636_s0 + $0x12] sm:$0xff] }
  0x1c   :  { %v4044_v53 = vld [vmem:[%s4636_s0 + $0x3a] sm:$0xff] }
  0x1e   :  { %2470 = vmatmul.mubr.msk.bf16.gmra.mrb[12].mxu1 %vm91_vm2, %v79_v31  ;;  %2686 = vmatmul.mubr.msk.bf16.gmra.mrb[12].mxu0 %vm91_vm2, %v963_v32  ;;  %v87_v31 = vpack.c.bf16 %v74_v30, %v73_v29  ;;  %v1207_v32 = vpack.c.bf16 %v3636_v12, %v3613_v4  ;;  %v24_v30 = vld [vmem:[%s4636_s0 + $0x60] sm:$0xff]  ;;  %v49_v4 = vpack.c.bf16 %v36_v3, %v36_v3  ;;  %v3979_v12 = vld [vmem:[%s4636_s0 + $0xa] sm:$0xff] }
  0x1f   :  { %2473 = vmatprep.mubr.msk.bf16.mxu1 %vm3385_vm1, %v3384_v0  ;;  %2689 = vmatprep.mubr.msk.bf16.mxu0 %vm3385_vm1, %v3384_v0 }
  0x26   :  { %2474 = vmatmul.mubr.msk.bf16.gmra.mrb[16].mxu1 %vm91_vm2, %v80_v37  ;;  %2690 = vmatmul.mubr.msk.bf16.gmra.mrb[16].mxu0 %vm91_vm2, %v964_v38  ;;  %v13_v37 = vld [vmem:[%s4636_s0 + $0x8] sm:$0xff] }
  0x27   :  { %2477 = vmatprep.mubr.msk.bf16.mxu1 %vm3385_vm1, %v3384_v0  ;;  %2693 = vmatprep.mubr.msk.bf16.mxu0 %vm3385_vm1, %v3384_v0  ;;  %v37_v38 = vpack.c.bf16 %v13_v37, %v12_v36  ;;  %v27_v36 = vld [vmem:[%s4636_s0 + $0x78] sm:$0xff] }
  0x28   :  { %v2301_v37 = vld [vmem:[%s4635_s1 + $0x1c] sm:$0xf] }
  0x2e   :  { %2478 = vmatmul.mubr.msk.bf16.gmra.mrb[20].mxu1 %vm91_vm2, %v81_v46  ;;  %2694 = vmatmul.mubr.msk.bf16.gmra.mrb[20].mxu0 %vm91_vm2, %v965_v47  ;;  %v15_v46 = vld [vmem:[%s4636_s0 + $0x18] sm:$0xff]  ;;  %v3755_v47 = vld [vmem:[%s4636_s0 + $0x84] sm:$0xff] }
  0x2f   :  { %2481 = vmatprep.mubr.msk.bf16.mxu1 %vm3385_vm1, %v3384_v0  ;;  %2697 = vmatprep.mubr.msk.bf16.mxu0 %vm3385_vm1, %v3384_v0  ;;  %v38_v51 = vpack.c.bf16 %v15_v46, %v14_v45  ;;  %v1210_v52 = vpack.c.bf16 %v3755_v47, %v3693_v27  ;;  %v4024_v46 = vld [vmem:[%s4636_s0 + $0x2a] sm:$0xff] }
  0x36   :  { %2482 = vmatmul.mubr.msk.bf16.gmra.mrb[24].mxu1 %vm91_vm2, %v82_v55  ;;  %2698 = vmatmul.mubr.msk.bf16.gmra.mrb[24].mxu0 %vm91_vm2, %v966_v56  ;;  %v3775_v55 = vld [vmem:[%s4636_s0 + $0x8c] sm:$0xff]  ;;  %v3780_v56 = vld [vmem:[%s4636_s0 + $0x94] sm:$0xff] }
  0x37   :  { %2485 = vmatprep.mubr.msk.bf16.mxu1 %vm3385_vm1, %v3384_v0  ;;  %2727 = vmatprep.mubr.msk.bf16.mxu0 %vm3385_vm1, %v3384_v0  ;;  %v1211_v61 = vpack.c.bf16 %v3780_v56, %v3775_v55  ;;  %v1453_v27 = vpack.c.bf16 %v3775_v55, %v3755_v47 }
  0x3e   :  { %2486 = vmatmul.mubr.msk.bf16.gmra.mrb[28].mxu1 %vm91_vm2, %v83_v1  ;;  %2728 = vmatmul.mubr.msk.bf16.vlgmr.msra.gmra.mrb[0].mxu0 %vm91_vm2, %v1203_v2  ;;  %v3799_v1 = vld [vmem:[%s4636_s0 + $0x9c] sm:$0xff]  ;;  %v3804_v2 = vld [vmem:[%s4636_s0 + $0xa4] sm:$0xff] }
  0x3f   :  { %2780 = vmatpush3.bf16.msra.mxu0 %v1501_v6  ;;  %2489 = vmatprep.mubr.msk.bf16.mxu1 %vm3385_vm1, %v3384_v0  ;;  %v40_v6 = vpack.c.bf16 %v19_v63, %v18_v62  ;;  %v1212_v8 = vpack.c.bf16 %v3804_v2, %v3799_v1  ;;  %v1456_v62 = vpack.c.bf16 %v3847_v23, %v3828_v15  ;;  %v4079_v63 = vld [vmem:[%s4636_s0 + $0x52] sm:$0xff] }
  0x40   :  { %2731 = vmatprep.mubr.msk.bf16.mxu0 %vm3385_vm1, %v3384_v0  ;;  %2833 = vmatprep.subr.bf16.mxu0 %v3384_v0 }
  0x46   :  { %2490 = vmatmul.mubr.msk.bf16.gmra.mrb[32].mxu1 %vm91_vm2, %v84_v10  ;;  %2732 = vmatmul.mubr.msk.bf16.gmra.mrb[4].mxu0 %vm91_vm2, %v1204_v11  ;;  %v21_v10 = vld [vmem:[%s4636_s0 + $0x48] sm:$0xff] }
  0x47   :  { %2493 = vmatprep.mubr.msk.bf16.mxu1 %vm3385_vm1, %v3384_v0  ;;  %2735 = vmatprep.mubr.msk.bf16.mxu0 %vm3385_vm1, %v3384_v0  ;;  %v3823_v11 = vld [vmem:[%s4636_s0 + $0xac] sm:$0xff]  ;;  %v41_v16 = vpack.c.bf16 %v21_v10, %v20_v9  ;;  %v1445_v10 = vld [vmem:[%s4636_s0 + $0xd4] sm:$0xff] }
  0x48   :  { %v1455_v55 = vpack.c.bf16 %v3823_v11, %v3804_v2  ;;  %v4104_v9 = vld [vmem:[%s4636_s0 + $0x6a] sm:$0xff] }
  0x4e   :  { %2494 = vmatmul.mubr.msk.bf16.gmra.mrb[36].mxu1 %vm91_vm2, %v85_v17  ;;  %2736 = vmatmul.mubr.msk.bf16.gmra.mrb[8].mxu0 %vm91_vm2, %v1205_v18  ;;  %v1213_v17 = vpack.c.bf16 %v3828_v15, %v3823_v11  ;;  %v22_v18 = vld [vmem:[%s4636_s0 + $0x50] sm:$0xff]  ;;  %v1458_v15 = vpack.c.bf16 %v1445_v10, %v1445_v10 }
  0x4f   :  { %2497 = vmatprep.mubr.msk.bf16.mxu1 %vm3385_vm1, %v3384_v0  ;;  %2739 = vmatprep.mubr.msk.bf16.mxu0 %vm3385_vm1, %v3384_v0  ;;  %v1684_v10 = vld [vmem:[%s4636_s0 + $0xb5] sm:$0xff] }
  0x56   :  { %2498 = vmatmul.mubr.msk.bf16.gmra.mrb[40].mxu1 %vm91_vm2, %v86_v24  ;;  %2740 = vmatmul.mubr.msk.bf16.gmra.mrb[12].mxu0 %vm91_vm2, %v1206_v25  ;;  %v3852_v24 = vld [vmem:[%s4636_s0 + $0xc4] sm:$0xff]  ;;  %v42_v25 = vpack.c.bf16 %v23_v22, %v22_v18  ;;  %v1664_v18 = vld [vmem:[%s4636_s0 + $0x15] sm:$0xff] }
  0x57   :  { %2501 = vmatprep.mubr.msk.bf16.mxu1 %vm3385_vm1, %v3384_v0  ;;  %2743 = vmatprep.mubr.msk.bf16.mxu0 %vm3385_vm1, %v3384_v0  ;;  %v1214_v29 = vpack.c.bf16 %v3852_v24, %v3847_v23  ;;  %v1665_v22 = vld [vmem:[%s4636_s0 + $0x1d] sm:$0xff] }
  0x58   :  { %v2315_v23 = vld [vmem:[%s4635_s1 + $0x20] sm:$0xf] }
  0x5e   :  { %2502 = vmatmul.mubr.msk.bf16.gmra.mrb[44].mxu1 %vm91_vm2, %v87_v31  ;;  %2744 = vmatmul.mubr.msk.bf16.gmra.mrb[16].mxu0 %vm91_vm2, %v1207_v32  ;;  %v25_v31 = vld [vmem:[%s4636_s0 + $0x68] sm:$0xff] }
  0x5f   :  { %2505 = vmatprep.mubr.msk.bf16.mxu1 %vm3385_vm1, %v3384_v0  ;;  %2747 = vmatprep.mubr.msk.bf16.mxu0 %vm3385_vm1, %v3384_v0  ;;  %v3871_v32 = vld [vmem:[%s4636_s0 + $0xcc] sm:$0xff]  ;;  %v43_v33 = vpack.c.bf16 %v25_v31, %v24_v30  ;;  %v4144_v30 = vld [vmem:[%s4636_s0 + $0x82] sm:$0xff] }
  0x60   :  { %v4151_v31 = vld [vmem:[%s4636_s0 + $0x8a] sm:$0xff] }
  0x66   :  { %2506 = vmatmul.mubr.msk.bf16.gmra.mrb[48].mxu1 %vm91_vm2, %v88_v34  ;;  %2748 = vmatmul.mubr.msk.bf16.gmra.mrb[20].mxu0 %vm91_vm2, %v1208_v35  ;;  %v1215_v34 = vpack.c.bf16 %v3871_v32, %v3871_v32  ;;  %v26_v35 = vld [vmem:[%s4636_s0 + $0x70] sm:$0xff] }
  0x67   :  { %2511 = vmatprep.mubr.msk.bf16.mxu1 %vm3385_vm1, %v3384_v0  ;;  %2751 = vmatprep.mubr.msk.bf16.mxu0 %vm3385_vm1, %v3384_v0 }
  0x6e   :  { %2512 = vmatmul.mubr.msk.bf16.vlgmr.msra.gmra.mrb[0].mxu1 %vm91_vm2, %v37_v38  ;;  %2752 = vmatmul.mubr.msk.bf16.gmra.mrb[24].mxu0 %vm91_vm2, %v1209_v42  ;;  %v44_v38 = vpack.c.bf16 %v27_v36, %v26_v35  ;;  %v1744_v42 = vsel %vm131_vm0, %v2301_v37, 0  ;;  %v4168_v36 = vld [vmem:[%s4636_s0 + $0x92] sm:$0xff]  ;;  %v4177_v37 = vld [vmem:[%s4636_s0 + $0x9a] sm:$0xff] }
  0x6f   :  { %2515 = vmatprep.mubr.msk.bf16.mxu1 %vm3385_vm1, %v3384_v0  ;;  %2755 = vmatprep.mubr.msk.bf16.mxu0 %vm3385_vm1, %v3384_v0 }
  0x70   :  { %2564 = vmatpush3.bf16.msra.mxu1 %v529_v44  ;;  %v29_v44 = vld [vmem:[%s4636_s0 + $0x88] sm:$0xff] }
  0x71   :  { %2617 = vmatprep.subr.bf16.mxu1 %v3384_v0  ;;  %v45_v39 = vpack.c.bf16 %v29_v44, %v28_v43  ;;  %v483_v43 = vpack.c.bf16 %v4177_v37, %v4168_v36 }
  0x76   :  { %2516 = vmatmul.mubr.msk.bf16.gmra.mrb[4].mxu1 %vm91_vm2, %v38_v51  ;;  %2756 = vmatmul.mubr.msk.bf16.gmra.mrb[28].mxu0 %vm91_vm2, %v1210_v52  ;;  %v1454_v51 = vpack.c.bf16 %v3799_v1, %v3780_v56  ;;  %v4039_v52 = vld [vmem:[%s4636_s0 + $0x32] sm:$0xff]  ;;  %v4059_v56 = vld [vmem:[%s4636_s0 + $0x42] sm:$0xff]  ;;  %v4084_v1 = vld [vmem:[%s4636_s0 + $0x5a] sm:$0xff] }
  0x77   :  { %2519 = vmatprep.mubr.msk.bf16.mxu1 %vm3385_vm1, %v3384_v0  ;;  %2759 = vmatprep.mubr.msk.bf16.mxu0 %vm3385_vm1, %v3384_v0  ;;  %v477_v54 = vpack.c.bf16 %v4044_v53, %v4039_v52  ;;  %v479_v2 = vpack.c.bf16 %v4084_v1, %v4079_v63 }
  0x7e   :  { %2520 = vmatmul.mubr.msk.bf16.gmra.mrb[8].mxu1 %vm91_vm2, %v39_v60  ;;  %2760 = vmatmul.mubr.msk.bf16.gmra.mrb[32].mxu0 %vm91_vm2, %v1211_v61  ;;  %v4064_v60 = vld [vmem:[%s4636_s0 + $0x4a] sm:$0xff] }
  0x7f   :  { %2523 = vmatprep.mubr.msk.bf16.mxu1 %vm3385_vm1, %v3384_v0  ;;  %2763 = vmatprep.mubr.msk.bf16.mxu0 %vm3385_vm1, %v3384_v0  ;;  %v478_v61 = vpack.c.bf16 %v4064_v60, %v4059_v56 }
  0x86   :  { %2524 = vmatmul.mubr.msk.bf16.gmra.mrb[12].mxu1 %vm91_vm2, %v40_v6  ;;  %2764 = vmatmul.mubr.msk.bf16.gmra.mrb[36].mxu0 %vm91_vm2, %v1212_v8  ;;  %v1457_v6 = vpack.c.bf16 %v3871_v32, %v3852_v24  ;;  %v4099_v8 = vld [vmem:[%s4636_s0 + $0x62] sm:$0xff] }
  0x87   :  { %2527 = vmatprep.mubr.msk.bf16.mxu1 %vm3385_vm1, %v3384_v0  ;;  %2767 = vmatprep.mubr.msk.bf16.mxu0 %vm3385_vm1, %v3384_v0  ;;  %v480_v11 = vpack.c.bf16 %v4104_v9, %v4099_v8  ;;  %v1666_v32 = vld [vmem:[%s4636_s0 + $0x25] sm:$0xff] }
  0x8e   :  { %2528 = vmatmul.mubr.msk.bf16.gmra.mrb[16].mxu1 %vm91_vm2, %v41_v16  ;;  %2768 = vmatmul.mubr.msk.bf16.gmra.mrb[40].mxu0 %vm91_vm2, %v1213_v17  ;;  %v4116_v16 = vld [vmem:[%s4636_s0 + $0x72] sm:$0xff]  ;;  %v4125_v17 = vld [vmem:[%s4636_s0 + $0x7a] sm:$0xff] }
  0x8f   :  { %2531 = vmatprep.mubr.msk.bf16.mxu1 %vm3385_vm1, %v3384_v0  ;;  %2771 = vmatprep.mubr.msk.bf16.mxu0 %vm3385_vm1, %v3384_v0  ;;  %v481_v24 = vpack.c.bf16 %v4125_v17, %v4116_v16 }
  0x96   :  { %2532 = vmatmul.mubr.msk.bf16.gmra.mrb[20].mxu1 %vm91_vm2, %v42_v25  ;;  %2772 = vmatmul.mubr.msk.bf16.gmra.mrb[44].mxu0 %vm91_vm2, %v1214_v29  ;;  %v1689_v25 = vpack.c.bf16 %v1665_v22, %v1664_v18  ;;  %v1987_v29 = vsel %vm131_vm0, %v2315_v23, 0  ;;  %v1687_v18 = vld [vmem:[%s4636_s0 + $0xcd] sm:$0xff]  ;;  %v1688_v22 = vld [vmem:[%s4636_s0 + $0xd5] sm:$0xff]  ;;  %v723_v23 = vpack.c.bf16 %v4116_v16, %v4104_v9  ;;  %v724_v9 = vpack.c.bf16 %v4144_v30, %v4125_v17 }
  0x97   :  { %2535 = vmatprep.mubr.msk.bf16.mxu1 %vm3385_vm1, %v3384_v0  ;;  %2775 = vmatprep.mubr.msk.bf16.mxu0 %vm3385_vm1, %v3384_v0  ;;  %v725_v17 = vpack.c.bf16 %v4168_v36, %v4151_v31  ;;  %v1914_v36 = vld [vmem:[%s4636_s0 + $0x4e] sm:$0xff] }
  0x9e   :  { %2536 = vmatmul.mubr.msk.bf16.gmra.mrb[24].mxu1 %vm91_vm2, %v43_v33  ;;  %2776 = vmatmul.mubr.msk.bf16.gmra.mrb[48].mxu0 %vm91_vm2, %v1215_v34  ;;  %v1667_v33 = vld [vmem:[%s4636_s0 + $0x2d] sm:$0xff]  ;;  %v482_v34 = vpack.c.bf16 %v4151_v31, %v4144_v30 }
  0x9f   :  { %2539 = vmatprep.mubr.msk.bf16.mxu1 %vm3385_vm1, %v3384_v0  ;;  %2781 = vmatprep.mubr.msk.bf16.mxu0 %vm3385_vm1, %v3384_v0  ;;  %v1690_v35 = vpack.c.bf16 %v1667_v33, %v1666_v32  ;;  %v1911_v32 = vld [vmem:[%s4636_s0 + $0x36] sm:$0xff]  ;;  %v1912_v33 = vld [vmem:[%s4636_s0 + $0x3e] sm:$0xff] }
  0xa6   :  { %2540 = vmatmul.mubr.msk.bf16.gmra.mrb[28].mxu1 %vm91_vm2, %v44_v38  ;;  %2782 = vmatmul.mubr.msk.bf16.vlgmr.msra.gmra.mrb[0].mxu0 %vm91_vm2, %v1446_v41  ;;  %v31_v41 = vld [vmem:[%s4636_s0 + $0x98] sm:$0xff] }
  0xa7   :  { %2834 = vmatpush3.bf16.msra.mxu0 %v1744_v42  ;;  %2543 = vmatprep.mubr.msk.bf16.mxu1 %vm3385_vm1, %v3384_v0  ;;  %v46_v45 = vpack.c.bf16 %v31_v41, %v30_v40  ;;  %v1668_v38 = vld [vmem:[%s4636_s0 + $0x35] sm:$0xff]  ;;  %v1669_v42 = vld [vmem:[%s4636_s0 + $0x3d] sm:$0xff]  ;;  %v4201_v40 = vld [vmem:[%s4636_s0 + $0xaa] sm:$0xff] }
  0xa8   :  { %2785 = vmatprep.mubr.msk.bf16.mxu0 %vm3385_vm1, %v3384_v0  ;;  %2887 = vmatprep.subr.bf16.mxu0 %v3384_v0  ;;  %v1691_v44 = vpack.c.bf16 %v1669_v42, %v1668_v38  ;;  %v1670_v41 = vld [vmem:[%s4636_s0 + $0x45] sm:$0xff]  ;;  %v1915_v42 = vld [vmem:[%s4636_s0 + $0x56] sm:$0xff] }
  0xae   :  { %2544 = vmatmul.mubr.msk.bf16.gmra.mrb[32].mxu1 %vm91_vm2, %v45_v39  ;;  %2786 = vmatmul.mubr.msk.bf16.gmra.mrb[4].mxu0 %vm91_vm2, %v1447_v50  ;;  %v47_v50 = vpack.c.bf16 %v33_v49, %v32_v48  ;;  %v4192_v39 = vld [vmem:[%s4636_s0 + $0xa2] sm:$0xff] }
  0xaf   :  { %2547 = vmatprep.mubr.msk.bf16.mxu1 %vm3385_vm1, %v3384_v0  ;;  %2789 = vmatprep.mubr.msk.bf16.mxu0 %vm3385_vm1, %v3384_v0  ;;  %v484_v48 = vpack.c.bf16 %v4201_v40, %v4192_v39  ;;  %v726_v31 = vpack.c.bf16 %v4192_v39, %v4177_v37 }
  0xb6   :  { %2548 = vmatmul.mubr.msk.bf16.gmra.mrb[36].mxu1 %vm91_vm2, %v46_v45  ;;  %2790 = vmatmul.mubr.msk.bf16.gmra.mrb[8].mxu0 %vm91_vm2, %v1448_v59  ;;  %v48_v59 = vpack.c.bf16 %v35_v58, %v34_v57  ;;  %v1671_v45 = vld [vmem:[%s4636_s0 + $0x4d] sm:$0xff]  ;;  %v4225_v57 = vld [vmem:[%s4636_s0 + $0xba] sm:$0xff] }
  0xb7   :  { %2551 = vmatprep.mubr.msk.bf16.mxu1 %vm3385_vm1, %v3384_v0  ;;  %2793 = vmatprep.mubr.msk.bf16.mxu0 %vm3385_vm1, %v3384_v0  ;;  %v1692_v49 = vpack.c.bf16 %v1671_v45, %v1670_v41  ;;  %v1672_v58 = vld [vmem:[%s4636_s0 + $0x55] sm:$0xff]  ;;  %v1917_v41 = vld [vmem:[%s4636_s0 + $0x66] sm:$0xff] }
  0xb8   :  { %v1918_v45 = vld [vmem:[%s4636_s0 + $0x6e] sm:$0xff] }
  0xbe   :  { %2552 = vmatmul.mubr.msk.bf16.gmra.mrb[40].mxu1 %vm91_vm2, %v47_v50  ;;  %2794 = vmatmul.mubr.msk.bf16.gmra.mrb[12].mxu0 %vm91_vm2, %v1449_v7  ;;  %v449_v7 = vld [vmem:[%s4636_s0 + $0x2] sm:$0xff]  ;;  %v4216_v50 = vld [vmem:[%s4636_s0 + $0xb2] sm:$0xff] }
  0xbf   :  { %2555 = vmatprep.mubr.msk.bf16.mxu1 %vm3385_vm1, %v3384_v0  ;;  %2797 = vmatprep.mubr.msk.bf16.mxu0 %vm3385_vm1, %v3384_v0  ;;  %v474_v13 = vpack.c.bf16 %v3979_v12, %v449_v7  ;;  %v485_v3 = vpack.c.bf16 %v4225_v57, %v4216_v50  ;;  %v4244_v7 = vld [vmem:[%s4636_s0 + $0xc2] sm:$0xff]  ;;  %v727_v37 = vpack.c.bf16 %v4216_v50, %v4201_v40  ;;  %v716_v40 = vld [vmem:[%s4636_s0 + $0xca] sm:$0xff] }
  0xc0   :  { %v949_v50 = vld [vmem:[%s4636_s0 + $0x7b] sm:$0xff] }
  0xc6   :  { %2556 = vmatmul.mubr.msk.bf16.gmra.mrb[44].mxu1 %vm91_vm2, %v48_v59  ;;  %2798 = vmatmul.mubr.msk.bf16.gmra.mrb[16].mxu0 %vm91_vm2, %v1450_v14  ;;  %v2245_v14 = vld [vmem:[%s4635_s1 + $0xc] sm:$0xf]  ;;  %v1673_v59 = vld [vmem:[%s4636_s0 + $0x5d] sm:$0xff] }
  0xc7   :  { %2559 = vmatprep.mubr.msk.bf16.mxu1 %vm3385_vm1, %v3384_v0  ;;  %2801 = vmatprep.mubr.msk.bf16.mxu0 %vm3385_vm1, %v3384_v0  ;;  %v772_v19 = vsel %vm131_vm0, %v2245_v14, 0  ;;  %v1675_v14 = vld [vmem:[%s4636_s0 + $0x6d] sm:$0xff] }
  0xce   :  { %2560 = vmatmul.mubr.msk.bf16.gmra.mrb[48].mxu1 %vm91_vm2, %v49_v4  ;;  %2802 = vmatmul.mubr.msk.bf16.gmra.mrb[20].mxu0 %vm91_vm2, %v1451_v21  ;;  %v4003_v21 = vld [vmem:[%s4636_s0 + $0x1a] sm:$0xff]  ;;  %v1693_v4 = vpack.c.bf16 %v1673_v59, %v1672_v58 }
  0xcf   :  { %2565 = vmatprep.mubr.msk.bf16.mxu1 %vm3385_vm1, %v3384_v0  ;;  %2805 = vmatprep.mubr.msk.bf16.mxu0 %vm3385_vm1, %v3384_v0  ;;  %v475_v26 = vpack.c.bf16 %v4003_v21, %v3998_v20  ;;  %v1919_v58 = vld [vmem:[%s4636_s0 + $0x76] sm:$0xff]  ;;  %v1920_v59 = vld [vmem:[%s4636_s0 + $0x7e] sm:$0xff] }
  0xd6   :  { %2566 = vmatmul.mubr.msk.bf16.vlgmr.msra.gmra.mrb[0].mxu1 %vm91_vm2, %v474_v13  ;;  %2806 = vmatmul.mubr.msk.bf16.gmra.mrb[24].mxu0 %vm91_vm2, %v1452_v28  ;;  %v4019_v28 = vld [vmem:[%s4636_s0 + $0x22] sm:$0xff] }
  0xd7   :  { %2569 = vmatprep.mubr.msk.bf16.mxu1 %vm3385_vm1, %v3384_v0  ;;  %2809 = vmatprep.mubr.msk.bf16.mxu0 %vm3385_vm1, %v3384_v0  ;;  %v476_v47 = vpack.c.bf16 %v4024_v46, %v4019_v28  ;;  %v1674_v13 = vld [vmem:[%s4636_s0 + $0x65] sm:$0xff] }
  0xd8   :  { %2618 = vmatpush3.bf16.msra.mxu1 %v772_v19  ;;  %v486_v19 = vpack.c.bf16 %v4244_v7, %v4244_v7 }
  0xd9   :  { %2941 = vmatprep.subr.bf16.mxu1 %v3384_v0 }
  0xde   :  { %2570 = vmatmul.mubr.msk.bf16.gmra.mrb[4].mxu1 %vm91_vm2, %v475_v26  ;;  %2810 = vmatmul.mubr.msk.bf16.gmra.mrb[28].mxu0 %vm91_vm2, %v1453_v27  ;;  %v1694_v26 = vpack.c.bf16 %v1675_v14, %v1674_v13  ;;  %v1676_v27 = vld [vmem:[%s4636_s0 + $0x75] sm:$0xff]  ;;  %v1921_v14 = vld [vmem:[%s4636_s0 + $0x86] sm:$0xff] }
  0xdf   :  { %2573 = vmatprep.mubr.msk.bf16.mxu1 %vm3385_vm1, %v3384_v0  ;;  %2813 = vmatprep.mubr.msk.bf16.mxu0 %vm3385_vm1, %v3384_v0  ;;  %v952_v13 = vld [vmem:[%s4636_s0 + $0x93] sm:$0xff] }
  0xe6   :  { %2574 = vmatmul.mubr.msk.bf16.gmra.mrb[8].mxu1 %vm91_vm2, %v476_v47  ;;  %2814 = vmatmul.mubr.msk.bf16.gmra.mrb[32].mxu0 %vm91_vm2, %v1454_v51  ;;  %v1677_v47 = vld [vmem:[%s4636_s0 + $0x7d] sm:$0xff]  ;;  %v717_v51 = vpack.c.bf16 %v3998_v20, %v3979_v12  ;;  %v718_v12 = vpack.c.bf16 %v4019_v28, %v4003_v21  ;;  %v719_v21 = vpack.c.bf16 %v4039_v52, %v4024_v46 }
  0xe7   :  { %2577 = vmatprep.mubr.msk.bf16.mxu1 %vm3385_vm1, %v3384_v0  ;;  %2817 = vmatprep.mubr.msk.bf16.mxu0 %vm3385_vm1, %v3384_v0  ;;  %v720_v46 = vpack.c.bf16 %v4059_v56, %v4044_v53  ;;  %v721_v53 = vpack.c.bf16 %v4079_v63, %v4064_v60  ;;  %v722_v60 = vpack.c.bf16 %v4099_v8, %v4084_v1  ;;  %v1907_v1 = vld [vmem:[%s4636_s0 + $0x16] sm:$0xff]  ;;  %v1908_v8 = vld [vmem:[%s4636_s0 + $0x1e] sm:$0xff] }
  0xe8   :  { %v1932_v16 = vpack.c.bf16 %v1908_v8, %v1907_v1 }
  0xee   :  { %2578 = vmatmul.mubr.msk.bf16.gmra.mrb[12].mxu1 %vm91_vm2, %v477_v54  ;;  %2818 = vmatmul.mubr.msk.bf16.gmra.mrb[36].mxu0 %vm91_vm2, %v1455_v55  ;;  %v1695_v54 = vpack.c.bf16 %v1677_v47, %v1676_v27  ;;  %v1678_v55 = vld [vmem:[%s4636_s0 + $0x85] sm:$0xff]  ;;  %v953_v47 = vld [vmem:[%s4636_s0 + $0x9b] sm:$0xff] }
  0xef   :  { %2581 = vmatprep.mubr.msk.bf16.mxu1 %vm3385_vm1, %v3384_v0  ;;  %2821 = vmatprep.mubr.msk.bf16.mxu0 %vm3385_vm1, %v3384_v0 }
  0xf6   :  { %2582 = vmatmul.mubr.msk.bf16.gmra.mrb[16].mxu1 %vm91_vm2, %v478_v61  ;;  %2822 = vmatmul.mubr.msk.bf16.gmra.mrb[40].mxu0 %vm91_vm2, %v1456_v62  ;;  %v1679_v61 = vld [vmem:[%s4636_s0 + $0x8d] sm:$0xff]  ;;  %v1680_v62 = vld [vmem:[%s4636_s0 + $0x95] sm:$0xff] }
  0xf7   :  { %2585 = vmatprep.mubr.msk.bf16.mxu1 %vm3385_vm1, %v3384_v0  ;;  %2825 = vmatprep.mubr.msk.bf16.mxu0 %vm3385_vm1, %v3384_v0  ;;  %v1696_v20 = vpack.c.bf16 %v1679_v61, %v1678_v55  ;;  %v1924_v55 = vld [vmem:[%s4636_s0 + $0x9e] sm:$0xff] }
  0xfe   :  { %2586 = vmatmul.mubr.msk.bf16.gmra.mrb[20].mxu1 %vm91_vm2, %v479_v2  ;;  %2826 = vmatmul.mubr.msk.bf16.gmra.mrb[44].mxu0 %vm91_vm2, %v1457_v6  ;;  %v1682_v2 = vld [vmem:[%s4636_s0 + $0xa5] sm:$0xff]  ;;  %v1683_v6 = vld [vmem:[%s4636_s0 + $0xad] sm:$0xff] }
  0xff   :  { %2589 = vmatprep.mubr.msk.bf16.mxu1 %vm3385_vm1, %v3384_v0  ;;  %2829 = vmatprep.mubr.msk.bf16.mxu0 %vm3385_vm1, %v3384_v0  ;;  %v1698_v52 = vpack.c.bf16 %v1683_v6, %v1682_v2  ;;  %v957_v6 = vld [vmem:[%s4636_s0 + $0xbb] sm:$0xff] }
 0x106   :  { %2590 = vmatmul.mubr.msk.bf16.gmra.mrb[24].mxu1 %vm91_vm2, %v480_v11  ;;  %2830 = vmatmul.mubr.msk.bf16.gmra.mrb[48].mxu0 %vm91_vm2, %v1458_v15  ;;  %v1685_v11 = vld [vmem:[%s4636_s0 + $0xbd] sm:$0xff]  ;;  %v1686_v15 = vld [vmem:[%s4636_s0 + $0xc5] sm:$0xff] }
 0x107   :  { %2593 = vmatprep.mubr.msk.bf16.mxu1 %vm3385_vm1, %v3384_v0  ;;  %2835 = vmatprep.mubr.msk.bf16.mxu0 %vm3385_vm1, %v3384_v0  ;;  %v1699_v56 = vpack.c.bf16 %v1685_v11, %v1684_v10  ;;  %v1700_v63 = vpack.c.bf16 %v1687_v18, %v1686_v15  ;;  %v1928_v10 = vld [vmem:[%s4636_s0 + $0xbe] sm:$0xff]  ;;  %v1929_v15 = vld [vmem:[%s4636_s0 + $0xc6] sm:$0xff]  ;;  %v1930_v18 = vld [vmem:[%s4636_s0 + $0xce] sm:$0xff] }
 0x10e   :  { %2594 = vmatmul.mubr.msk.bf16.gmra.mrb[28].mxu1 %vm91_vm2, %v481_v24  ;;  %2836 = vmatmul.mubr.msk.bf16.vlgmr.msra.gmra.mrb[0].mxu0 %vm91_vm2, %v1689_v25  ;;  %v1701_v24 = vpack.c.bf16 %v1688_v22, %v1688_v22  ;;  %v1909_v25 = vld [vmem:[%s4636_s0 + $0x26] sm:$0xff]  ;;  %v1931_v22 = vld [vmem:[%s4636_s0 + $0xd6] sm:$0xff] }
 0x10f   :  { %2888 = vmatpush3.bf16.msra.mxu0 %v1987_v29  ;;  %2597 = vmatprep.mubr.msk.bf16.mxu1 %vm3385_vm1, %v3384_v0  ;;  %v1910_v29 = vld [vmem:[%s4636_s0 + $0x2e] sm:$0xff] }
 0x110   :  { %2839 = vmatprep.mubr.msk.bf16.mxu0 %vm3385_vm1, %v3384_v0  ;;  %v1933_v30 = vpack.c.bf16 %v1910_v29, %v1909_v25 }
 0x116   :  { %2598 = vmatmul.mubr.msk.bf16.gmra.mrb[32].mxu1 %vm91_vm2, %v482_v34  ;;  %2840 = vmatmul.mubr.msk.bf16.gmra.mrb[4].mxu0 %vm91_vm2, %v1690_v35  ;;  %v1934_v34 = vpack.c.bf16 %v1912_v33, %v1911_v32  ;;  %v1913_v35 = vld [vmem:[%s4636_s0 + $0x46] sm:$0xff] }
 0x117   :  { %2601 = vmatprep.mubr.msk.bf16.mxu1 %vm3385_vm1, %v3384_v0  ;;  %2843 = vmatprep.mubr.msk.bf16.mxu0 %vm3385_vm1, %v3384_v0  ;;  %v1935_v38 = vpack.c.bf16 %v1914_v36, %v1913_v35 }
 0x11e   :  { %2602 = vmatmul.mubr.msk.bf16.gmra.mrb[36].mxu1 %vm91_vm2, %v483_v43  ;;  %2844 = vmatmul.mubr.msk.bf16.gmra.mrb[8].mxu0 %vm91_vm2, %v1691_v44  ;;  %v1916_v43 = vld [vmem:[%s4636_s0 + $0x5e] sm:$0xff]  ;;  %v728_v44 = vpack.c.bf16 %v4244_v7, %v4225_v57  ;;  %v951_v7 = vld [vmem:[%s4636_s0 + $0x8b] sm:$0xff] }
 0x11f   :  { %2605 = vmatprep.mubr.msk.bf16.mxu1 %vm3385_vm1, %v3384_v0  ;;  %2847 = vmatprep.mubr.msk.bf16.mxu0 %vm3385_vm1, %v3384_v0  ;;  %v1936_v39 = vpack.c.bf16 %v1916_v43, %v1915_v42  ;;  %v950_v57 = vld [vmem:[%s4636_s0 + $0x83] sm:$0xff] }
 0x126   :  { %2606 = vmatmul.mubr.msk.bf16.gmra.mrb[40].mxu1 %vm91_vm2, %v484_v48  ;;  %2848 = vmatmul.mubr.msk.bf16.gmra.mrb[12].mxu0 %vm91_vm2, %v1692_v49  ;;  %v729_v48 = vpack.c.bf16 %v716_v40, %v716_v40  ;;  %v1937_v49 = vpack.c.bf16 %v1918_v45, %v1917_v41 }
 0x127   :  { %2609 = vmatprep.mubr.msk.bf16.mxu1 %vm3385_vm1, %v3384_v0  ;;  %2851 = vmatprep.mubr.msk.bf16.mxu0 %vm3385_vm1, %v3384_v0 }
 0x12e   :  { %2610 = vmatmul.mubr.msk.bf16.gmra.mrb[44].mxu1 %vm91_vm2, %v485_v3  ;;  %2852 = vmatmul.mubr.msk.bf16.gmra.mrb[16].mxu0 %vm91_vm2, %v1693_v4  ;;  %v967_v3 = vpack.c.bf16 %v950_v57, %v949_v50  ;;  %v1938_v4 = vpack.c.bf16 %v1920_v59, %v1919_v58 }
 0x12f   :  { %2613 = vmatprep.mubr.msk.bf16.mxu1 %vm3385_vm1, %v3384_v0  ;;  %2855 = vmatprep.mubr.msk.bf16.mxu0 %vm3385_vm1, %v3384_v0 }
 0x136   :  { %2614 = vmatmul.mubr.msk.bf16.gmra.mrb[48].mxu1 %vm91_vm2, %v486_v19  ;;  %2856 = vmatmul.mubr.msk.bf16.gmra.mrb[20].mxu0 %vm91_vm2, %v1694_v26  ;;  %v1922_v19 = vld [vmem:[%s4636_s0 + $0x8e] sm:$0xff]  ;;  %v968_v26 = vpack.c.bf16 %v952_v13, %v951_v7 }
 0x137   :  { %2619 = vmatprep.mubr.msk.bf16.mxu1 %vm3385_vm1, %v3384_v0  ;;  %2859 = vmatprep.mubr.msk.bf16.mxu0 %vm3385_vm1, %v3384_v0  ;;  %v1939_v27 = vpack.c.bf16 %v1922_v19, %v1921_v14 }
 0x13e   :  { %2620 = vmatmul.mubr.msk.bf16.vlgmr.msra.gmra.mrb[0].mxu1 %vm91_vm2, %v717_v51  ;;  %2860 = vmatmul.mubr.msk.bf16.gmra.mrb[24].mxu0 %vm91_vm2, %v1695_v54  ;;  %v954_v51 = vld [vmem:[%s4636_s0 + $0xa3] sm:$0xff]  ;;  %v1923_v54 = vld [vmem:[%s4636_s0 + $0x96] sm:$0xff] }
 0x13f   :  { %2623 = vmatprep.mubr.msk.bf16.mxu1 %vm3385_vm1, %v3384_v0  ;;  %2863 = vmatprep.mubr.msk.bf16.mxu0 %vm3385_vm1, %v3384_v0  ;;  %v969_v61 = vpack.c.bf16 %v954_v51, %v953_v47 }
 0x140   :  { %2942 = vmatpush3.bf16.msra.mxu1 %v3414_v5  ;;  %v1681_v5 = vld [vmem:[%s4636_s0 + $0x9d] sm:$0xff] }
 0x141   :  { %v1697_v28 = vpack.c.bf16 %v1681_v5, %v1680_v62  ;;  %v956_v62 = vld [vmem:[%s4636_s0 + $0xb3] sm:$0xff]  ;;  %v1925_v5 = vld [vmem:[%s4636_s0 + $0xa6] sm:$0xff] }
 0x146   :  { %2624 = vmatmul.mubr.msk.bf16.gmra.mrb[4].mxu1 %vm91_vm2, %v718_v12  ;;  %2864 = vmatmul.mubr.msk.bf16.gmra.mrb[28].mxu0 %vm91_vm2, %v1696_v20  ;;  %v1940_v12 = vpack.c.bf16 %v1924_v55, %v1923_v54  ;;  %v955_v20 = vld [vmem:[%s4636_s0 + $0xab] sm:$0xff] }
 0x147   :  { %2627 = vmatprep.mubr.msk.bf16.mxu1 %vm3385_vm1, %v3384_v0  ;;  %2867 = vmatprep.mubr.msk.bf16.mxu0 %vm3385_vm1, %v3384_v0 }
 0x14e   :  { %2628 = vmatmul.mubr.msk.bf16.gmra.mrb[8].mxu1 %vm91_vm2, %v719_v21  ;;  %2868 = vmatmul.mubr.msk.bf16.gmra.mrb[32].mxu0 %vm91_vm2, %v1697_v28  ;;  %v1926_v21 = vld [vmem:[%s4636_s0 + $0xae] sm:$0xff]  ;;  %v970_v28 = vpack.c.bf16 %v956_v62, %v955_v20 }
 0x14f   :  { %2631 = vmatprep.mubr.msk.bf16.mxu1 %vm3385_vm1, %v3384_v0  ;;  %2871 = vmatprep.mubr.msk.bf16.mxu0 %vm3385_vm1, %v3384_v0  ;;  %v1941_v2 = vpack.c.bf16 %v1926_v21, %v1925_v5 }
 0x156   :  { %2632 = vmatmul.mubr.msk.bf16.gmra.mrb[12].mxu1 %vm91_vm2, %v720_v46  ;;  %2872 = vmatmul.mubr.msk.bf16.gmra.mrb[36].mxu0 %vm91_vm2, %v1698_v52  ;;  %v958_v46 = vld [vmem:[%s4636_s0 + $0xc3] sm:$0xff]  ;;  %v1927_v52 = vld [vmem:[%s4636_s0 + $0xb6] sm:$0xff] }
 0x157   :  { %2635 = vmatprep.mubr.msk.bf16.mxu1 %vm3385_vm1, %v3384_v0  ;;  %2875 = vmatprep.mubr.msk.bf16.mxu0 %vm3385_vm1, %v3384_v0  ;;  %v971_v11 = vpack.c.bf16 %v958_v46, %v957_v6 }
 0x15e   :  { %2636 = vmatmul.mubr.msk.bf16.gmra.mrb[16].mxu1 %vm91_vm2, %v721_v53  ;;  %2876 = vmatmul.mubr.msk.bf16.gmra.mrb[40].mxu0 %vm91_vm2, %v1699_v56  ;;  %v1942_v53 = vpack.c.bf16 %v1928_v10, %v1927_v52  ;;  %v959_v56 = vld [vmem:[%s4636_s0 + $0xcb] sm:$0xff] }
 0x15f   :  { %2639 = vmatprep.mubr.msk.bf16.mxu1 %vm3385_vm1, %v3384_v0  ;;  %2879 = vmatprep.mubr.msk.bf16.mxu0 %vm3385_vm1, %v3384_v0 }
 0x166   :  { %2640 = vmatmul.mubr.msk.bf16.gmra.mrb[20].mxu1 %vm91_vm2, %v722_v60  ;;  %2880 = vmatmul.mubr.msk.bf16.gmra.mrb[44].mxu0 %vm91_vm2, %v1700_v63  ;;  %v972_v60 = vpack.c.bf16 %v959_v56, %v959_v56  ;;  %v1943_v63 = vpack.c.bf16 %v1930_v18, %v1929_v15 }
 0x167   :  { %2643 = vmatprep.mubr.msk.bf16.mxu1 %vm3385_vm1, %v3384_v0  ;;  %2883 = vmatprep.mubr.msk.bf16.mxu0 %vm3385_vm1, %v3384_v0 }
 0x16e   :  { %2644 = vmatmul.mubr.msk.bf16.gmra.mrb[24].mxu1 %vm91_vm2, %v723_v23  ;;  %2884 = vmatmul.mubr.msk.bf16.gmra.mrb[48].mxu0 %vm91_vm2, %v1701_v24  ;;  %v1944_v23 = vpack.c.bf16 %v1931_v22, %v1931_v22 }
 0x16f   :  { %2647 = vmatprep.mubr.msk.bf16.mxu1 %vm3385_vm1, %v3384_v0  ;;  %2889 = vmatprep.mubr.msk.bf16.mxu0 %vm3385_vm1, %v3384_v0 }
 0x176   :  { %2648 = vmatmul.mubr.msk.bf16.gmra.mrb[28].mxu1 %vm91_vm2, %v724_v9  ;;  %2890 = vmatmul.mubr.msk.bf16.vlgmr.msra.gmra.mrb[0].mxu0 %vm91_vm2, %v1932_v16 }
 0x177   :  { %2651 = vmatprep.mubr.msk.bf16.mxu1 %vm3385_vm1, %v3384_v0  ;;  %2893 = vmatprep.mubr.msk.bf16.mxu0 %vm3385_vm1, %v3384_v0 }
 0x17e   :  { %2652 = vmatmul.mubr.msk.bf16.gmra.mrb[32].mxu1 %vm91_vm2, %v725_v17  ;;  %2894 = vmatmul.mubr.msk.bf16.gmra.mrb[4].mxu0 %vm91_vm2, %v1933_v30 }
 0x17f   :  { %2655 = vmatprep.mubr.msk.bf16.mxu1 %vm3385_vm1, %v3384_v0  ;;  %2897 = vmatprep.mubr.msk.bf16.mxu0 %vm3385_vm1, %v3384_v0 }
 0x186   :  { %2656 = vmatmul.mubr.msk.bf16.gmra.mrb[36].mxu1 %vm91_vm2, %v726_v31  ;;  %2898 = vmatmul.mubr.msk.bf16.gmra.mrb[8].mxu0 %vm91_vm2, %v1934_v34 }
 0x187   :  { %2659 = vmatprep.mubr.msk.bf16.mxu1 %vm3385_vm1, %v3384_v0  ;;  %2901 = vmatprep.mubr.msk.bf16.mxu0 %vm3385_vm1, %v3384_v0 }
 0x18e   :  { %2660 = vmatmul.mubr.msk.bf16.gmra.mrb[40].mxu1 %vm91_vm2, %v727_v37  ;;  %2902 = vmatmul.mubr.msk.bf16.gmra.mrb[12].mxu0 %vm91_vm2, %v1935_v38 }
 0x18f   :  { %2663 = vmatprep.mubr.msk.bf16.mxu1 %vm3385_vm1, %v3384_v0  ;;  %2905 = vmatprep.mubr.msk.bf16.mxu0 %vm3385_vm1, %v3384_v0 }
 0x196   :  { %2664 = vmatmul.mubr.msk.bf16.gmra.mrb[44].mxu1 %vm91_vm2, %v728_v44  ;;  %2906 = vmatmul.mubr.msk.bf16.gmra.mrb[16].mxu0 %vm91_vm2, %v1936_v39 }
 0x197   :  { %2667 = vmatprep.mubr.msk.bf16.mxu1 %vm3385_vm1, %v3384_v0  ;;  %2909 = vmatprep.mubr.msk.bf16.mxu0 %vm3385_vm1, %v3384_v0 }
 0x19e   :  { %2668 = vmatmul.mubr.msk.bf16.gmra.mrb[48].mxu1 %vm91_vm2, %v729_v48  ;;  %2910 = vmatmul.mubr.msk.bf16.gmra.mrb[20].mxu0 %vm91_vm2, %v1937_v49 }
 0x19f   :  { %2701 = vmatprep.mubr.msk.bf16.mxu1 %vm3385_vm1, %v3384_v0  ;;  %2913 = vmatprep.mubr.msk.bf16.mxu0 %vm3385_vm1, %v3384_v0 }
 0x1a6   :  { %2702 = vmatmul.mubr.msk.bf16.vlgmr.msra.gmra.mrb[28].mxu1 %vm91_vm2, %v967_v3  ;;  %2914 = vmatmul.mubr.msk.bf16.gmra.mrb[24].mxu0 %vm91_vm2, %v1938_v4 }
 0x1a7   :  { %2705 = vmatprep.mubr.msk.bf16.mxu1 %vm3385_vm1, %v3384_v0  ;;  %2917 = vmatprep.mubr.msk.bf16.mxu0 %vm3385_vm1, %v3384_v0 }
 0x1ae   :  { %2706 = vmatmul.mubr.msk.bf16.gmra.mrb[32].mxu1 %vm91_vm2, %v968_v26  ;;  %2918 = vmatmul.mubr.msk.bf16.gmra.mrb[28].mxu0 %vm91_vm2, %v1939_v27 }
 0x1af   :  { %2709 = vmatprep.mubr.msk.bf16.mxu1 %vm3385_vm1, %v3384_v0  ;;  %2921 = vmatprep.mubr.msk.bf16.mxu0 %vm3385_vm1, %v3384_v0 }
 0x1b6   :  { %2710 = vmatmul.mubr.msk.bf16.gmra.mrb[36].mxu1 %vm91_vm2, %v969_v61  ;;  %2922 = vmatmul.mubr.msk.bf16.gmra.mrb[32].mxu0 %vm91_vm2, %v1940_v12 }
 0x1b7   :  { %2713 = vmatprep.mubr.msk.bf16.mxu1 %vm3385_vm1, %v3384_v0  ;;  %2925 = vmatprep.mubr.msk.bf16.mxu0 %vm3385_vm1, %v3384_v0 }
 0x1be   :  { %2714 = vmatmul.mubr.msk.bf16.gmra.mrb[40].mxu1 %vm91_vm2, %v970_v28  ;;  %2926 = vmatmul.mubr.msk.bf16.gmra.mrb[36].mxu0 %vm91_vm2, %v1941_v2 }
 0x1bf   :  { %2717 = vmatprep.mubr.msk.bf16.mxu1 %vm3385_vm1, %v3384_v0  ;;  %2929 = vmatprep.mubr.msk.bf16.mxu0 %vm3385_vm1, %v3384_v0 }
 0x1c6   :  { %2718 = vmatmul.mubr.msk.bf16.gmra.mrb[44].mxu1 %vm91_vm2, %v971_v11  ;;  %2930 = vmatmul.mubr.msk.bf16.gmra.mrb[40].mxu0 %vm91_vm2, %v1942_v53 }
 0x1c7   :  { %2721 = vmatprep.mubr.msk.bf16.mxu1 %vm3385_vm1, %v3384_v0  ;;  %2933 = vmatprep.mubr.msk.bf16.mxu0 %vm3385_vm1, %v3384_v0 }
 0x1ce   :  { %2722 = vmatmul.mubr.msk.bf16.gmra.mrb[48].mxu1 %vm91_vm2, %v972_v60  ;;  %2934 = vmatmul.mubr.msk.bf16.gmra.mrb[44].mxu0 %vm91_vm2, %v1943_v63 }
 0x1cf   :  { %2937 = vmatprep.mubr.msk.bf16.mxu0 %vm3385_vm1, %v3384_v0 }
 0x1d6   :  { %2938 = vmatmul.mubr.msk.bf16.gmra.mrb[48].mxu0 %vm91_vm2, %v1944_v23 }
 0x211   :  { %v808_v24 = vpop.f32.mrb[0].mxu1 }
 0x212   :  { %v2621_v1 = vpop.f32.mrb[1].mxu1 }
 0x213   :  { %v811_v8 = vpop.f32.mrb[2].mxu1 }
 0x214   :  { %v2622_v9 = vpop.f32.mrb[3].mxu1 }
 0x219   :  { %v816_v16 = vpop.f32.mrb[4].mxu1 }
 0x21a   :  { %v2625_v25 = vpop.f32.mrb[5].mxu1 }
 0x21b   :  { %v819_v29 = vpop.f32.mrb[6].mxu1 }
 0x21c   :  { %v2626_v17 = vpop.f32.mrb[7].mxu1 }
 0x221   :  { %v824_v30 = vpop.f32.mrb[8].mxu1 }
 0x222   :  { %v2629_v32 = vpop.f32.mrb[9].mxu1 }
 0x223   :  { %v827_v33 = vpop.f32.mrb[10].mxu1 }
 0x224   :  { %v2630_v31 = vpop.f32.mrb[11].mxu1 }
 0x229   :  { %v832_v0 = vpop.f32.mrb[12].mxu1 }
 0x22a   :  { %v2633_v34 = vpop.f32.mrb[13].mxu1 }
 0x22b   :  { %v835_v35 = vpop.f32.mrb[14].mxu1 }
 0x22c   :  { %v2634_v36 = vpop.f32.mrb[15].mxu1 }
 0x231   :  { %v840_v37 = vpop.f32.mrb[16].mxu1 }
 0x232   :  { %v2637_v38 = vpop.f32.mrb[17].mxu1 }
 0x233   :  { %v843_v42 = vpop.f32.mrb[18].mxu1 }
 0x234   :  { %v2638_v43 = vpop.f32.mrb[19].mxu1 }
 0x239   :  { %v4548_v44 = vpop.f32.mrb[20].mxu1 }
 0x23a   :  { %v2641_v39 = vpop.f32.mrb[21].mxu1 }
 0x23b   :  { %v4550_v40 = vpop.f32.mrb[22].mxu1 }
 0x23c   :  { %v2642_v41 = vpop.f32.mrb[23].mxu1 }
 0x241   :  { %v4552_v45 = vpop.f32.mrb[24].mxu1 }
 0x242   :  { %v2645_v48 = vpop.f32.mrb[25].mxu1 }
 0x243   :  { %v4554_v49 = vpop.f32.mrb[26].mxu1 }
 0x244   :  { %v2646_v50 = vpop.f32.mrb[27].mxu1 }
 0x249   :  { %v2023_v57 = vpop.f32.mrb[0].mxu0 }
 0x24a   :  { %v2943_v58 = vadd.f32 %v2023_v57, %v808_v24  ;;  %v2891_v59 = vpop.f32.mrb[1].mxu0 }
 0x24b   :  { %v2026_v3 = vpop.f32.mrb[2].mxu0 }
 0x24c   :  { %3334 = vtanh.f32 %v2943_v58  ;;  %v2944_v4 = vadd.f32 %v2026_v3, %v811_v8  ;;  %v2892_v7 = vpop.f32.mrb[3].mxu0 }
 0x24e   :  { %3336 = vtanh.f32 %v2944_v4 }
 0x251   :  { %v2031_v13 = vpop.f32.mrb[4].mxu0 }
 0x252   :  { %v2945_v14 = vadd.f32 %v2031_v13, %v816_v16  ;;  %v2895_v19 = vpop.f32.mrb[5].mxu0 }
 0x253   :  { %v2034_v26 = vpop.f32.mrb[6].mxu0 }
 0x254   :  { %3338 = vtanh.f32 %v2945_v14  ;;  %v2946_v27 = vadd.f32 %v2034_v26, %v819_v29  ;;  %v2896_v47 = vpop.f32.mrb[7].mxu0 }
 0x256   :  { %v3335_v51 = vpop.eup %3334  ;;  %3340 = vtanh.f32 %v2946_v27 }
 0x257   :  { %2175 = vst [vmem:[%s4637_s2] sm:$0xff] %v3335_v51 }
 0x258   :  { %v3337_v54 = vpop.eup %3336 }
 0x259   :  { %2176 = vst [vmem:[%s4637_s2 + $0x8] sm:$0xff] %v3337_v54  ;;  %v2039_v55 = vpop.f32.mrb[8].mxu0 }
 0x25a   :  { %v2947_v61 = vadd.f32 %v2039_v55, %v824_v30  ;;  %v2899_v12 = vpop.f32.mrb[9].mxu0 }
 0x25b   :  { %v2042_v20 = vpop.f32.mrb[10].mxu0 }
 0x25c   :  { %3342 = vtanh.f32 %v2947_v61  ;;  %v2948_v62 = vadd.f32 %v2042_v20, %v827_v33  ;;  %v2900_v5 = vpop.f32.mrb[11].mxu0 }
 0x25e   :  { %v3339_v21 = vpop.eup %3338  ;;  %3344 = vtanh.f32 %v2948_v62 }
 0x25f   :  { %2177 = vst [vmem:[%s4637_s2 + $0x10] sm:$0xff] %v3339_v21 }
 0x260   :  { %v3341_v28 = vpop.eup %3340 }
 0x261   :  { %2178 = vst [vmem:[%s4637_s2 + $0x18] sm:$0xff] %v3341_v28  ;;  %v2047_v2 = vpop.f32.mrb[12].mxu0 }
 0x262   :  { %v2949_v6 = vadd.f32 %v2047_v2, %v832_v0  ;;  %v2903_v46 = vpop.f32.mrb[13].mxu0 }
 0x263   :  { %v2050_v52 = vpop.f32.mrb[14].mxu0 }
 0x264   :  { %3346 = vtanh.f32 %v2949_v6  ;;  %v2950_v10 = vadd.f32 %v2050_v52, %v835_v35  ;;  %v2904_v11 = vpop.f32.mrb[15].mxu0 }
 0x266   :  { %v3343_v53 = vpop.eup %3342  ;;  %3348 = vtanh.f32 %v2950_v10 }
 0x267   :  { %2179 = vst [vmem:[%s4637_s2 + $0x20] sm:$0xff] %v3343_v53 }
 0x268   :  { %v3345_v56 = vpop.eup %3344 }
 0x269   :  { %2180 = vst [vmem:[%s4637_s2 + $0x28] sm:$0xff] %v3345_v56  ;;  %v2055_v15 = vpop.f32.mrb[16].mxu0 }
 0x26a   :  { %v2951_v18 = vadd.f32 %v2055_v15, %v840_v37  ;;  %v2907_v60 = vpop.f32.mrb[17].mxu0 }
 0x26b   :  { %v2058_v63 = vpop.f32.mrb[18].mxu0 }
 0x26c   :  { %3350 = vtanh.f32 %v2951_v18  ;;  %v2952_v22 = vadd.f32 %v2058_v63, %v843_v42  ;;  %v2908_v23 = vpop.f32.mrb[19].mxu0 }
 0x26e   :  { %v3347_v24 = vpop.eup %3346  ;;  %3352 = vtanh.f32 %v2952_v22 }
 0x26f   :  { %2181 = vst [vmem:[%s4637_s2 + $0x30] sm:$0xff] %v3347_v24 }
 0x270   :  { %v3349_v1 = vpop.eup %3348 }
 0x271   :  { %2182 = vst [vmem:[%s4637_s2 + $0x38] sm:$0xff] %v3349_v1  ;;  %v2063_v8 = vpop.f32.mrb[20].mxu0 }
 0x272   :  { %v2953_v9 = vadd.f32 %v2063_v8, %v4548_v44  ;;  %v2911_v16 = vpop.f32.mrb[21].mxu0 }
 0x273   :  { %v2066_v25 = vpop.f32.mrb[22].mxu0 }
 0x274   :  { %3354 = vtanh.f32 %v2953_v9  ;;  %v2954_v29 = vadd.f32 %v2066_v25, %v4550_v40  ;;  %v2912_v17 = vpop.f32.mrb[23].mxu0 }
 0x276   :  { %v3351_v30 = vpop.eup %3350  ;;  %3356 = vtanh.f32 %v2954_v29 }
 0x277   :  { %2183 = vst [vmem:[%s4637_s2 + $0x40] sm:$0xff] %v3351_v30 }
 0x278   :  { %v3353_v32 = vpop.eup %3352 }
 0x279   :  { %2184 = vst [vmem:[%s4637_s2 + $0x48] sm:$0xff] %v3353_v32  ;;  %v1107_v33 = vpop.f32.mrb[28].mxu1  ;;  %v2071_v31 = vpop.f32.mrb[24].mxu0 }
 0x27a   :  { %v2955_v0 = vadd.f32 %v2071_v31, %v4552_v45  ;;  %v2703_v34 = vpop.f32.mrb[29].mxu1  ;;  %v2915_v35 = vpop.f32.mrb[25].mxu0 }
 0x27b   :  { %v1110_v36 = vpop.f32.mrb[30].mxu1  ;;  %v2074_v37 = vpop.f32.mrb[26].mxu0 }
 0x27c   :  { %3358 = vtanh.f32 %v2955_v0  ;;  %v2956_v38 = vadd.f32 %v2074_v37, %v4554_v49  ;;  %v2704_v42 = vpop.f32.mrb[31].mxu1  ;;  %v2916_v43 = vpop.f32.mrb[27].mxu0 }
 0x27e   :  { %v3355_v44 = vpop.eup %3354  ;;  %3360 = vtanh.f32 %v2956_v38 }
 0x27f   :  { %2185 = vst [vmem:[%s4637_s2 + $0x50] sm:$0xff] %v3355_v44 }
 0x280   :  { %v3357_v39 = vpop.eup %3356 }
 0x281   :  { %2186 = vst [vmem:[%s4637_s2 + $0x58] sm:$0xff] %v3357_v39  ;;  %v1115_v40 = vpop.f32.mrb[32].mxu1  ;;  %v2079_v41 = vpop.f32.mrb[28].mxu0 }
 0x282   :  { %v2957_v45 = vadd.f32 %v2079_v41, %v1107_v33  ;;  %v2707_v48 = vpop.f32.mrb[33].mxu1  ;;  %v2919_v50 = vpop.f32.mrb[29].mxu0 }
 0x283   :  { %v1118_v57 = vpop.f32.mrb[34].mxu1  ;;  %v2082_v49 = vpop.f32.mrb[30].mxu0 }
 0x284   :  { %3362 = vtanh.f32 %v2957_v45  ;;  %v2958_v58 = vadd.f32 %v2082_v49, %v1110_v36  ;;  %v2708_v59 = vpop.f32.mrb[35].mxu1  ;;  %v2920_v3 = vpop.f32.mrb[31].mxu0 }
 0x286   :  { %v3359_v4 = vpop.eup %3358  ;;  %3364 = vtanh.f32 %v2958_v58 }
 0x287   :  { %2187 = vst [vmem:[%s4637_s2 + $0x60] sm:$0xff] %v3359_v4 }
 0x288   :  { %v3361_v7 = vpop.eup %3360 }
 0x289   :  { %2188 = vst [vmem:[%s4637_s2 + $0x68] sm:$0xff] %v3361_v7  ;;  %v1123_v13 = vpop.f32.mrb[36].mxu1  ;;  %v2087_v14 = vpop.f32.mrb[32].mxu0 }
 0x28a   :  { %v2959_v19 = vadd.f32 %v2087_v14, %v1115_v40  ;;  %v2711_v26 = vpop.f32.mrb[37].mxu1  ;;  %v2923_v27 = vpop.f32.mrb[33].mxu0 }
 0x28b   :  { %v1126_v47 = vpop.f32.mrb[38].mxu1  ;;  %v2090_v51 = vpop.f32.mrb[34].mxu0 }
 0x28c   :  { %3366 = vtanh.f32 %v2959_v19  ;;  %v2960_v54 = vadd.f32 %v2090_v51, %v1118_v57  ;;  %v2712_v55 = vpop.f32.mrb[39].mxu1  ;;  %v2924_v61 = vpop.f32.mrb[35].mxu0 }
 0x28e   :  { %v3363_v12 = vpop.eup %3362  ;;  %3368 = vtanh.f32 %v2960_v54 }
 0x28f   :  { %2189 = vst [vmem:[%s4637_s2 + $0x70] sm:$0xff] %v3363_v12 }
 0x290   :  { %v3365_v20 = vpop.eup %3364 }
 0x291   :  { %2190 = vst [vmem:[%s4637_s2 + $0x78] sm:$0xff] %v3365_v20  ;;  %v1131_v62 = vpop.f32.mrb[40].mxu1  ;;  %v2095_v5 = vpop.f32.mrb[36].mxu0 }
 0x292   :  { %v2961_v21 = vadd.f32 %v2095_v5, %v1123_v13  ;;  %v2715_v28 = vpop.f32.mrb[41].mxu1  ;;  %v2927_v2 = vpop.f32.mrb[37].mxu0 }
 0x293   :  { %v1134_v6 = vpop.f32.mrb[42].mxu1  ;;  %v2098_v46 = vpop.f32.mrb[38].mxu0 }
 0x294   :  { %3370 = vtanh.f32 %v2961_v21  ;;  %v2962_v52 = vadd.f32 %v2098_v46, %v1126_v47  ;;  %v2716_v10 = vpop.f32.mrb[43].mxu1  ;;  %v2928_v11 = vpop.f32.mrb[39].mxu0 }
 0x296   :  { %v3367_v53 = vpop.eup %3366  ;;  %3372 = vtanh.f32 %v2962_v52 }
 0x297   :  { %2191 = vst [vmem:[%s4637_s2 + $0x80] sm:$0xff] %v3367_v53 }
 0x298   :  { %v3369_v56 = vpop.eup %3368 }
 0x299   :  { %2192 = vst [vmem:[%s4637_s2 + $0x88] sm:$0xff] %v3369_v56  ;;  %v1139_v15 = vpop.f32.mrb[44].mxu1  ;;  %v2103_v18 = vpop.f32.mrb[40].mxu0 }
 0x29a   :  { %v2963_v60 = vadd.f32 %v2103_v18, %v1131_v62  ;;  %v2719_v63 = vpop.f32.mrb[45].mxu1  ;;  %v2931_v22 = vpop.f32.mrb[41].mxu0 }
 0x29b   :  { %v1142_v23 = vpop.f32.mrb[46].mxu1  ;;  %v2106_v24 = vpop.f32.mrb[42].mxu0 }
 0x29c   :  { %3374 = vtanh.f32 %v2963_v60  ;;  %v2964_v1 = vadd.f32 %v2106_v24, %v1134_v6  ;;  %v2720_v8 = vpop.f32.mrb[47].mxu1  ;;  %v2932_v9 = vpop.f32.mrb[43].mxu0 }
 0x29e   :  { %v3371_v16 = vpop.eup %3370  ;;  %3376 = vtanh.f32 %v2964_v1 }
 0x29f   :  { %2193 = vst [vmem:[%s4637_s2 + $0x90] sm:$0xff] %v3371_v16 }
 0x2a0   :  { %v3373_v25 = vpop.eup %3372 }
 0x2a1   :  { %2194 = vst [vmem:[%s4637_s2 + $0x98] sm:$0xff] %v3373_v25  ;;  %v1147_v29 = vpop.f32.mrb[48].mxu1  ;;  %v2111_v17 = vpop.f32.mrb[44].mxu0 }
 0x2a2   :  { %v2965_v30 = vadd.f32 %v2111_v17, %v1139_v15  ;;  %v2723_v32 = vpop.f32.mrb[49].mxu1  ;;  %v2935_v33 = vpop.f32.mrb[45].mxu0 }
 0x2a3   :  { %v1150_v31 = vpop.f32.mrb[50].mxu1  ;;  %v2114_v0 = vpop.f32.mrb[46].mxu0 }
 0x2a4   :  { %3378 = vtanh.f32 %v2965_v30  ;;  %v2966_v34 = vadd.f32 %v2114_v0, %v1142_v23  ;;  %v2724_v35 = vpop.f32.mrb[51].mxu1  ;;  %v2936_v36 = vpop.f32.mrb[47].mxu0 }
 0x2a6   :  { %v3375_v37 = vpop.eup %3374  ;;  %3380 = vtanh.f32 %v2966_v34 }
 0x2a7   :  { %2195 = vst [vmem:[%s4637_s2 + $0xa0] sm:$0xff] %v3375_v37 }
 0x2a8   :  { %v3377_v38 = vpop.eup %3376 }
 0x2a9   :  { %2196 = vst [vmem:[%s4637_s2 + $0xa8] sm:$0xff] %v3377_v38  ;;  %v2119_v42 = vpop.f32.mrb[48].mxu0 }
 0x2aa   :  { %v2967_v43 = vadd.f32 %v2119_v42, %v1147_v29  ;;  %v2939_v44 = vpop.f32.mrb[49].mxu0 }
 0x2ab   :  { %v2122_v39 = vpop.f32.mrb[50].mxu0 }
 0x2ac   :  { %3382 = vtanh.f32 %v2967_v43  ;;  %v2940_v40 = vpop.f32.mrb[51].mxu0 }
 0x2ae   :  { %v3379_v41 = vpop.eup %3378 }
 0x2af   :  { %2197 = vst [vmem:[%s4637_s2 + $0xb0] sm:$0xff] %v3379_v41 }
 0x2b0   :  { %v3381_v45 = vpop.eup %3380 }
 0x2b1   :  { %2198 = vst [vmem:[%s4637_s2 + $0xb8] sm:$0xff] %v3381_v45 }
 0x2b6   :  { %v3383_v48 = vpop.eup %3382 }
 0x2b7   :  { %2199 = vst [vmem:[%s4637_s2 + $0xc0] sm:$0xff] %v3383_v48 }

</bundles_post_ra>
